<compile_context>
chip_gen: v7x
topology: tpu7x:2x2x1
jax: 0.10.0
libtpu: 0.0.40
codegen_flags: <defaults>
</compile_context>

<pallas_src>
import math
import functools

import jax
import jax.numpy as jnp
from jax.experimental import pallas as pl
from jax.experimental.pallas import tpu as pltpu

LN_EPS = 1e-5          # PyTorch nn.LayerNorm default
NEG_INF = -1e30


# ----------------------------------------------------------------------------
# small helpers
# ----------------------------------------------------------------------------

def _round_up(x, m):
    return ((x + m - 1) // m) * m


def _pick_tile(dim, max_tile, align):
    """Block size for `dim`: full extent when small, else an aligned tile + padded dim."""
    if dim <= max_tile:
        return dim, dim                       # full-extent block (alignment exempt)
    tile = max(align, (max_tile // align) * align)
    return tile, _round_up(dim, tile)


def _erf(x):
    # Abramowitz & Stegun 7.1.26 polynomial (|err| < 1.5e-7): exact-erf GELU flavor.
    a1, a2, a3, a4, a5 = 0.254829592, -0.284496736, 1.421413741, -1.453152027, 1.061405429
    p = 0.3275911
    sgn = jnp.where(x >= 0, 1.0, -1.0)
    z = jnp.abs(x)
    tt = 1.0 / (1.0 + p * z)
    poly = ((((a5 * tt + a4) * tt + a3) * tt + a2) * tt + a1) * tt
    return sgn * (1.0 - poly * jnp.exp(-z * z))


def _apply_activation(r, activation):
    if activation == "gelu":
        return 0.5 * r * (1.0 + _erf(r * (1.0 / math.sqrt(2.0))))
    if activation == "silu":
        return r * jax.nn.sigmoid(r)
    return r


# ----------------------------------------------------------------------------
# Pallas kernels
# ----------------------------------------------------------------------------

def _linear_kernel(*refs, activation, has_bias):
    """K-tiled matmul: bf16 MXU inputs, f32 VMEM accumulator, fused bias + activation."""
    if has_bias:
        x_ref, w_ref, b_ref, o_ref, acc_ref = refs
    else:
        x_ref, w_ref, o_ref, acc_ref = refs
        b_ref = None

    @pl.when(pl.program_id(2) == 0)
    def _init():
        acc_ref[...] = jnp.zeros_like(acc_ref)

    acc_ref[...] += jnp.dot(x_ref[...], w_ref[...],
                            preferred_element_type=jnp.float32)

    @pl.when(pl.program_id(2) == pl.num_programs(2) - 1)
    def _finalize():
        r = acc_ref[...]
        if has_bias:
            r = r + b_ref[...]
        r = _apply_activation(r, activation)
        o_ref[...] = r.astype(o_ref.dtype)


def pallas_linear(x, w, b=None, activation=None, out_dtype=jnp.bfloat16,
                  max_tile_m=256, max_tile_n=512, max_tile_k=512):
    """y = act(x @ w + b).  x: [..., K], w: [K, N], b: [N] or None."""
    *lead, K = x.shape
    N = w.shape[1]
    x2 = x.reshape(-1, K).astype(jnp.bfloat16)
    w2 = w.astype(jnp.bfloat16)
    M = x2.shape[0]
    has_bias = b is not None

    tm, Mp = _pick_tile(M, max_tile_m, 8)
    tk, Kp = _pick_tile(K, max_tile_k, 128)
    tn, Np = _pick_tile(_round_up(N, 128), max_tile_n, 128)   # lane-dense output

    if Mp != M or Kp != K:
        x2 = jnp.pad(x2, ((0, Mp - M), (0, Kp - K)))
    if Kp != K or Np != N:
        w2 = jnp.pad(w2, ((0, Kp - K), (0, Np - N)))

    operands = [x2, w2]
    in_specs = [
        pl.BlockSpec((tm, tk), lambda i, j, k: (i, k)),
        pl.BlockSpec((tk, tn), lambda i, j, k: (k, j)),
    ]
    if has_bias:
        b2 = b.reshape(1, N).astype(jnp.float32)
        if Np != N:
            b2 = jnp.pad(b2, ((0, 0), (0, Np - N)))
        operands.append(b2)
        in_specs.append(pl.BlockSpec((1, tn), lambda i, j, k: (0, j)))

    out = pl.pallas_call(
        functools.partial(_linear_kernel, activation=activation, has_bias=has_bias),
        out_shape=jax.ShapeDtypeStruct((Mp, Np), out_dtype),
        grid=(Mp // tm, Np // tn, Kp // tk),
        in_specs=in_specs,
        out_specs=pl.BlockSpec((tm, tn), lambda i, j, k: (i, j)),
        scratch_shapes=[pltpu.VMEM((tm, tn), jnp.float32)],
        compiler_params=pltpu.CompilerParams(
            dimension_semantics=("parallel", "parallel", "arbitrary")),
    )(*operands)
    return out[:M, :N].reshape(*lead, N)


def _flash_attn_kernel(q_ref, kv_ref, o_ref, m_sc, l_sc, acc_sc,
                       *, n_heads, head_dim, scale, seq_len, tile_kv):
    """Online-softmax attention; all heads of one batch element handled per block."""
    kv_i = pl.program_id(2)

    @pl.when(kv_i == 0)
    def _init():
        m_sc[...] = jnp.full_like(m_sc, NEG_INF)
        l_sc[...] = jnp.zeros_like(l_sc)
        acc_sc[...] = jnp.zeros_like(acc_sc)

    d = n_heads * head_dim
    q_all = q_ref[0]                                   # (tq, 3d) bf16
    kv_all = kv_ref[0]                                 # (tk, 3d) bf16
    q = q_all[:, 0:d]
    k = kv_all[:, d:2 * d]
    v = kv_all[:, 2 * d:3 * d]

    kv_pos = kv_i * tile_kv + jax.lax.broadcasted_iota(jnp.int32, (1, tile_kv), 1)
    kv_bias = jnp.where(kv_pos < seq_len, 0.0, NEG_INF)   # mask padded keys

    for h in range(n_heads):
        cs = slice(h * head_dim, (h + 1) * head_dim)
        s = jax.lax.dot_general(q[:, cs], k[:, cs],
                                (((1,), (1,)), ((), ())),
                                preferred_element_type=jnp.float32)
        s = s * scale + kv_bias
        m_prev = m_sc[:, h:h + 1]
        m_new = jnp.maximum(m_prev, jnp.max(s, axis=-1, keepdims=True))
        alpha = jnp.exp(m_prev - m_new)
        p = jnp.exp(s - m_new)
        l_sc[:, h:h + 1] = alpha * l_sc[:, h:h + 1] + jnp.sum(p, axis=-1, keepdims=True)
        acc_sc[:, cs] = alpha * acc_sc[:, cs] + jnp.dot(
            p.astype(jnp.bfloat16), v[:, cs], preferred_element_type=jnp.float32)
        m_sc[:, h:h + 1] = m_new

    @pl.when(kv_i == pl.num_programs(2) - 1)
    def _finalize():
        for h in range(n_heads):
            cs = slice(h * head_dim, (h + 1) * head_dim)
            acc_sc[:, cs] = acc_sc[:, cs] * pl.reciprocal(l_sc[:, h:h + 1], approx=True)
        o_ref[0] = acc_sc[...].astype(o_ref.dtype)


def pallas_attention(qkv, n_heads):
    """qkv: [B, S, 3*d] (heads fused in the lane dim) -> attention output [B, S, d]."""
    B, S, three_d = qkv.shape
    d = three_d // 3
    head_dim = d // n_heads
    scale = 1.0 / math.sqrt(head_dim)

    tile = _round_up(S, 8) if S <= 512 else 256
    Sp = _round_up(S, tile)
    qkv = qkv.astype(jnp.bfloat16)
    if Sp != S:
        qkv = jnp.pad(qkv, ((0, 0), (0, Sp - S), (0, 0)))

    out = pl.pallas_call(
        functools.partial(_flash_attn_kernel, n_heads=n_heads, head_dim=head_dim,
                          scale=scale, seq_len=S, tile_kv=tile),
        out_shape=jax.ShapeDtypeStruct((B, Sp, d), jnp.bfloat16),
        grid=(B, Sp // tile, Sp // tile),
        in_specs=[
            pl.BlockSpec((1, tile, three_d), lambda b, qi, ki: (b, qi, 0)),
            pl.BlockSpec((1, tile, three_d), lambda b, qi, ki: (b, ki, 0)),
        ],
        out_specs=pl.BlockSpec((1, tile, d), lambda b, qi, ki: (b, qi, 0)),
        scratch_shapes=[
            pltpu.VMEM((tile, n_heads), jnp.float32),
            pltpu.VMEM((tile, n_heads), jnp.float32),
            pltpu.VMEM((tile, d), jnp.float32),
        ],
        compiler_params=pltpu.CompilerParams(
            dimension_semantics=("parallel", "parallel", "arbitrary")),
    )(qkv, qkv)
    return out[:, :S, :]


def _adaln_kernel(x_ref, sh_ref, sc_ref, o_ref, *, eps):
    """Per-frame LayerNorm (no affine) + adaLN modulate with in-kernel broadcast."""
    x = x_ref[0].astype(jnp.float32)                       # (F, D)
    mu = jnp.mean(x, axis=-1, keepdims=True)
    var = jnp.mean(jnp.square(x - mu), axis=-1, keepdims=True)
    xn = (x - mu) * jax.lax.rsqrt(var + eps)
    sh = sh_ref[0].astype(jnp.float32)                     # (1, D) -> broadcast
    sc = sc_ref[0].astype(jnp.float32)
    o_ref[0] = (xn * (1.0 + sc) + sh).astype(o_ref.dtype)


def pallas_adaln_modulate(x, shift, scale):
    """x: [G, F, D]; shift/scale: [G, 1, D] per-frame (no jnp.repeat materialization)."""
    G, F, D = x.shape
    spec_x = pl.BlockSpec((1, F, D), lambda i: (i, 0, 0))
    spec_c = pl.BlockSpec((1, 1, D), lambda i: (i, 0, 0))
    return pl.pallas_call(
        functools.partial(_adaln_kernel, eps=LN_EPS),
        out_shape=jax.ShapeDtypeStruct((G, F, D), jnp.bfloat16),
        grid=(G,),
        in_specs=[spec_x, spec_c, spec_c],
        out_specs=spec_x,
        compiler_params=pltpu.CompilerParams(dimension_semantics=("parallel",)),
    )(x, shift, scale)


def _gate_res_kernel(x_ref, h_ref, g_ref, o_ref):
    x = x_ref[0].astype(jnp.float32)
    h = h_ref[0].astype(jnp.float32)
    g = g_ref[0].astype(jnp.float32)
    o_ref[0] = (x + g * h).astype(o_ref.dtype)


def pallas_gate_residual(x, h, gate):
    """x_new = x + gate * h with per-frame gate [G, 1, D]."""
    G, F, D = x.shape
    spec_x = pl.BlockSpec((1, F, D), lambda i: (i, 0, 0))
    spec_c = pl.BlockSpec((1, 1, D), lambda i: (i, 0, 0))
    return pl.pallas_call(
        _gate_res_kernel,
        out_shape=jax.ShapeDtypeStruct((G, F, D), jnp.bfloat16),
        grid=(G,),
        in_specs=[spec_x, spec_x, spec_c],
        out_specs=spec_x,
        compiler_params=pltpu.CompilerParams(dimension_semantics=("parallel",)),
    )(x, h, gate)


def _gate_res_adaln_kernel(x_ref, h_ref, g_ref, sh_ref, sc_ref, xo_ref, mo_ref, *, eps):
    """Fused: x_new = x + g*h ; mod = modulate(LN(x_new), sh, sc) — one HBM pass."""
    x = x_ref[0].astype(jnp.float32)
    h = h_ref[0].astype(jnp.float32)
    g = g_ref[0].astype(jnp.float32)
    xn = x + g * h
    xo_ref[0] = xn.astype(xo_ref.dtype)
    mu = jnp.mean(xn, axis=-1, keepdims=True)
    var = jnp.mean(jnp.square(xn - mu), axis=-1, keepdims=True)
    nrm = (xn - mu) * jax.lax.rsqrt(var + eps)
    sh = sh_ref[0].astype(jnp.float32)
    sc = sc_ref[0].astype(jnp.float32)
    mo_ref[0] = (nrm * (1.0 + sc) + sh).astype(mo_ref.dtype)


def pallas_gate_residual_adaln(x, h, gate, shift, scale):
    G, F, D = x.shape
    spec_x = pl.BlockSpec((1, F, D), lambda i: (i, 0, 0))
    spec_c = pl.BlockSpec((1, 1, D), lambda i: (i, 0, 0))
    return pl.pallas_call(
        functools.partial(_gate_res_adaln_kernel, eps=LN_EPS),
        out_shape=(jax.ShapeDtypeStruct((G, F, D), jnp.bfloat16),
                   jax.ShapeDtypeStruct((G, F, D), jnp.bfloat16)),
        grid=(G,),
        in_specs=[spec_x, spec_x, spec_c, spec_c, spec_c],
        out_specs=(spec_x, spec_x),
        compiler_params=pltpu.CompilerParams(dimension_semantics=("parallel",)),
    )(x, h, gate, shift, scale)


# ----------------------------------------------------------------------------
# Model components (glue in plain JAX, all hot paths via the Pallas kernels above)
# ----------------------------------------------------------------------------

def timestep_features(t, dim, max_period=10000.0):
    half = dim // 2
    freqs = jnp.exp(-math.log(max_period) * jnp.arange(half, dtype=jnp.float32) / half)
    args = t[..., None].astype(jnp.float32) * freqs
    return jnp.concatenate([jnp.cos(args), jnp.sin(args)], axis=-1)


def control_embed(cp, mouse, btn):
    m = pallas_linear(mouse, cp["mouse_w1"], cp["mouse_b1"], activation="silu",
                      out_dtype=jnp.float32)
    m = pallas_linear(m, cp["mouse_w2"], cp["mouse_b2"], out_dtype=jnp.float32)
    bt = pallas_linear(btn, cp["btn_w1"], cp["btn_b1"], activation="silu",
                       out_dtype=jnp.float32)
    bt = pallas_linear(bt, cp["btn_w2"], cp["btn_b2"], out_dtype=jnp.float32)
    return m + bt


def t_embed(tp, t, d_model):
    emb = timestep_features(t, d_model)
    h = pallas_linear(emb, tp["w1"], tp["b1"], activation="silu", out_dtype=jnp.float32)
    return pallas_linear(h, tp["w2"], tp["b2"], out_dtype=jnp.float32)


def dit_block(blk, cfg, x_frames, cond_silu):
    """x_frames: [B*n, f, d] bf16; cond_silu: [B, n, d] f32 (already SiLU'd)."""
    b, n, d = cond_silu.shape
    G = b * n
    f = x_frames.shape[1]
    T = n * f

    mod = pallas_linear(cond_silu, blk["adaln_w"], blk["adaln_b"],
                        out_dtype=jnp.float32)                      # [b, n, 6d]
    sh1, sc1, g1, sh2, sc2, g2 = [m.reshape(G, 1, d) for m in jnp.split(mod, 6, axis=-1)]

    # attention sub-block
    h = pallas_adaln_modulate(x_frames, sh1, sc1)                   # [G, f, d]
    qkv = pallas_linear(h.reshape(b, T, d), blk["qkv_w"], blk["qkv_b"])   # [b, T, 3d]
    attn = pallas_attention(qkv, cfg["n_heads"])                    # [b, T, d]
    o = pallas_linear(attn, blk["o_w"], blk["o_b"])                 # [b, T, d]

    # fused: x = x + g1*o  and  h2 = modulate(LN(x), sh2, sc2)
    x_frames, h2 = pallas_gate_residual_adaln(x_frames, o.reshape(G, f, d), g1, sh2, sc2)

    # MLP sub-block
    m1 = pallas_linear(h2.reshape(b, T, d), blk["mlp_w1"], blk["mlp_b1"], activation="gelu")
    m2 = pallas_linear(m1, blk["mlp_w2"], blk["mlp_b2"])
    x_frames = pallas_gate_residual(x_frames, m2.reshape(G, f, d), g2)
    return x_frames


def final_layer(fp, x_frames, cond_silu, out_dtype=jnp.float32):
    """FinalLayer: adaLN(SiLU(cond)) -> modulate(LN(x)) -> Linear(d, out_channels)."""
    b, n, d = cond_silu.shape
    G, F, _ = x_frames.shape
    mod = pallas_linear(cond_silu, fp["adaln_w"], fp["adaln_b"],
                        out_dtype=jnp.float32)                      # [b, n, 2d]
    sh, sc = [m.reshape(G, 1, d) for m in jnp.split(mod, 2, axis=-1)]
    h = pallas_adaln_modulate(x_frames, sh, sc)                     # [G, F, d]
    return pallas_linear(h.reshape(b, n * F, d), fp["lin_w"], fp["lin_b"],
                         out_dtype=out_dtype)


def gamerft_audio_forward(params, cfg, x, audio, t, mouse, btn):
    d = cfg["d_model"]
    b, n, c, h, w = x.shape
    f = h * w + 1
    T = n * f
    G = b * n

    cond = control_embed(params["ctrl"], mouse, btn) + t_embed(params["t_mlp"], t, d)
    cond_silu = jax.nn.silu(cond)                                   # [b, n, d] f32

    # 'b n c h w -> b (n h w) c'
    xv = jnp.transpose(x, (0, 1, 3, 4, 2)).reshape(b, n * h * w, c)
    xv = pallas_linear(xv, params["proj_in_w"])                     # no bias, bf16
    au = pallas_linear(audio, params["audio_proj_in_w"])[:, :, None, :]   # [b, n, 1, d]

    xt = jnp.concatenate([xv.reshape(b, n, h * w, d), au], axis=2)  # [b, n, f, d]
    xt = (xt.reshape(b, T, d).astype(jnp.float32) + params["pos_enc"][None]
          ).astype(jnp.bfloat16)

    x_frames = xt.reshape(G, f, d)
    for blk in params["blocks"]:
        x_frames = dit_block(blk, cfg, x_frames, cond_silu)

    x4 = x_frames.reshape(b, n, f, d)
    video_tok = x4[:, :, :-1, :].reshape(G, h * w, d)
    audio_tok = x4[:, :, -1:, :].reshape(G, 1, d)

    video = final_layer(params["final_video"], video_tok, cond_silu)      # [b, n*h*w, c]
    video = video.reshape(b, n, h, w, c).transpose(0, 1, 4, 2, 3)         # -> b n c h w
    audio_out = final_layer(params["final_audio"], audio_tok, cond_silu)  # [b, n, ac]
    return video, audio_out


# ----------------------------------------------------------------------------
# Deterministic parameter initialization (matmul weights stored bf16, biases f32)
# ----------------------------------------------------------------------------

def init_params(key, cfg):
    d = cfg["d_model"]
    keys = iter(jax.random.split(key, 256))
    nk = lambda: next(keys)

    def dense(fan_in, fan_out, scale=None):
        if scale is None:
            scale = 1.0 / math.sqrt(fan_in)
        w = jax.random.normal(nk(), (fan_in, fan_out), jnp.float32) * scale
        return w.astype(jnp.bfloat16)

    zeros = lambda m: jnp.zeros((m,), jnp.float32)

    p = {}
    p["proj_in_w"] = dense(cfg["channels"], d)
    p["audio_proj_in_w"] = dense(cfg["audio_channels"], d)
    p["pos_enc"] = jax.random.normal(
        nk(), (cfg["tokens_per_frame"] * cfg["n_frames"], d), jnp.float32) * 0.02

    p["ctrl"] = {
        "mouse_w1": dense(2, d), "mouse_b1": zeros(d),
        "mouse_w2": dense(d, d), "mouse_b2": zeros(d),
        "btn_w1": dense(cfg["n_buttons"], d), "btn_b1": zeros(d),
        "btn_w2": dense(d, d), "btn_b2": zeros(d),
    }
    p["t_mlp"] = {"w1": dense(d, d), "b1": zeros(d), "w2": dense(d, d), "b2": zeros(d)}

    blocks = []
    for _ in range(cfg["n_layers"]):
        blocks.append({
            "adaln_w": dense(d, 6 * d, scale=0.02), "adaln_b": zeros(6 * d),
            "qkv_w": dense(d, 3 * d), "qkv_b": zeros(3 * d),
            "o_w": dense(d, d), "o_b": zeros(d),
            "mlp_w1": dense(d, 4 * d), "mlp_b1": zeros(4 * d),
            "mlp_w2": dense(4 * d, d), "mlp_b2": zeros(d),
        })
    p["blocks"] = blocks

    p["final_video"] = {
        "adaln_w": dense(d, 2 * d, scale=0.02), "adaln_b": zeros(2 * d),
        "lin_w": dense(d, cfg["channels"]), "lin_b": zeros(cfg["channels"]),
    }
    p["final_audio"] = {
        "adaln_w": dense(d, 2 * d, scale=0.02), "adaln_b": zeros(2 * d),
        "lin_w": dense(d, cfg["audio_channels"]), "lin_b": zeros(cfg["audio_channels"]),
    }
    return p


# ----------------------------------------------------------------------------
# Main
# ----------------------------------------------------------------------------

if __name__ == "__main__":
    cfg = dict(
        d_model=32,
        n_heads=4,
        n_layers=2,
        channels=4,
        audio_channels=2,
        sample_size=4,                 # h = w = 4
        n_buttons=8,
        n_frames=2,
        tokens_per_frame=4 * 4 + 1,    # h*w video tokens + 1 audio token per frame
    )

    key = jax.random.PRNGKey(0)
    kp, kx, ka, kt, km, kb = jax.random.split(key, 6)
    params = init_params(kp, cfg)

    b = 2
    n = cfg["n_frames"]
    c = cfg["channels"]
    h = cfg["sample_size"]

    x = jax.random.normal(kx, (b, n, c, h, h), jnp.float32)
    audio = jax.random.normal(ka, (b, n, cfg["audio_channels"]), jnp.float32)
    t = jax.random.uniform(kt, (b, n), jnp.float32)
    mouse = jax.random.normal(km, (b, n, 2), jnp.float32)
    btn = (jax.random.uniform(kb, (b, n, cfg["n_buttons"])) > 0.5).astype(jnp.float32)

    fwd = jax.jit(lambda p, xx, aa, tt, mm, bb:
                  gamerft_audio_forward(p, cfg, xx, aa, tt, mm, bb))
    video, audio_out = fwd(params, x, audio, t, mouse, btn)
    jax.block_until_ready((video, audio_out))

    assert video.shape == (b, n, c, h, h), video.shape
    assert audio_out.shape == (b, n, cfg["audio_channels"]), audio_out.shape
    assert bool(jnp.all(jnp.isfinite(video))) and bool(jnp.all(jnp.isfinite(audio_out)))
    print("KERNEL_OK")
</pallas_src>

<mosaic_0001>
module attributes {stable_mosaic.version = 11 : i64} {
  func.func @_linear_kernel(%arg0: i32, %arg1: i32, %arg2: i32, %arg3: memref<4x2xbf16, #tpu.memory_space<vmem>>, %arg4: memref<2x128xbf16, #tpu.memory_space<vmem>>, %arg5: memref<4x128xbf16, #tpu.memory_space<vmem>>, %arg6: memref<4x128xf32, #tpu.memory_space<vmem>>) attributes {dimension_semantics = [#tpu.dimension_semantics<parallel>, #tpu.dimension_semantics<parallel>, #tpu.dimension_semantics<arbitrary>], iteration_bounds = array<i64: 1, 1, 1>, scalar_prefetch = 0 : i64, scratch_operands = 1 : i64, tpu.core_type = #tpu.core_type<tc>, window_params = [{transform_indices = @transform_0, window_bounds = array<i64: 4, 2>}, {transform_indices = @transform_1, window_bounds = array<i64: 2, 128>}, {transform_indices = @transform_2, window_bounds = array<i64: 4, 128>}]} {
    %c0_i32 = arith.constant 0 : i32
    %0 = arith.cmpi eq, %arg2, %c0_i32 : i32
    %1 = arith.extui %0 : i1 to i32
    %c0_i32_0 = arith.constant 0 : i32
    %2 = arith.cmpi ne, %1, %c0_i32_0 : i32
    scf.if %2 {
      %cst_10 = arith.constant 0.000000e+00 : f32
      %12 = vector.broadcast %cst_10 : f32 to vector<4x128xf32>
      %c0_11 = arith.constant 0 : index
      %c0_12 = arith.constant 0 : index
      %13 = vector.load %arg6[%c0_11, %c0_12] : memref<4x128xf32, #tpu.memory_space<vmem>>, vector<4x128xf32>
      tpu.vector_store %arg6[%c0_11, %c0_12], %12 {strides = array<i32>} : memref<4x128xf32, #tpu.memory_space<vmem>>, vector<4x128xf32>,
    } else {
    }
    %c0 = arith.constant 0 : index
    %c0_1 = arith.constant 0 : index
    %3 = vector.load %arg6[%c0, %c0_1] : memref<4x128xf32, #tpu.memory_space<vmem>>, vector<4x128xf32>
    %c0_2 = arith.constant 0 : index
    %c0_3 = arith.constant 0 : index
    %4 = vector.load %arg3[%c0_2, %c0_3] : memref<4x2xbf16, #tpu.memory_space<vmem>>, vector<4x2xbf16>
    %c0_4 = arith.constant 0 : index
    %c0_5 = arith.constant 0 : index
    %5 = vector.load %arg4[%c0_4, %c0_5] : memref<2x128xbf16, #tpu.memory_space<vmem>>, vector<2x128xbf16>
    %cst = arith.constant dense<0.000000e+00> : vector<4x128xf32>
    %6 = tpu.matmul %4, %5, %cst {dimension_numbers = #tpu.dot_dimension_numbers<[1], [0], [0], [1], [0, 0, 1, 1], [], []>} : vector<4x2xbf16>, vector<2x128xbf16>, vector<4x128xf32> -> vector<4x128xf32>
    %7 = arith.addf %3, %6 : vector<4x128xf32>
    %c0_6 = arith.constant 0 : index
    %c0_7 = arith.constant 0 : index
    %8 = vector.load %arg6[%c0_6, %c0_7] : memref<4x128xf32, #tpu.memory_space<vmem>>, vector<4x128xf32>
    tpu.vector_store %arg6[%c0_6, %c0_7], %7 {strides = array<i32>} : memref<4x128xf32, #tpu.memory_space<vmem>>, vector<4x128xf32>,
    %c0_i32_8 = arith.constant 0 : i32
    %9 = arith.cmpi eq, %arg2, %c0_i32_8 : i32
    %10 = arith.extui %9 : i1 to i32
    %c0_i32_9 = arith.constant 0 : i32
    %11 = arith.cmpi ne, %10, %c0_i32_9 : i32
    scf.if %11 {
      %c0_10 = arith.constant 0 : index
      %c0_11 = arith.constant 0 : index
      %12 = vector.load %arg6[%c0_10, %c0_11] : memref<4x128xf32, #tpu.memory_space<vmem>>, vector<4x128xf32>
      %13 = arith.truncf %12 : vector<4x128xf32> to vector<4x128xbf16>
      %c0_12 = arith.constant 0 : index
      %c0_13 = arith.constant 0 : index
      %14 = vector.load %arg5[%c0_12, %c0_13] : memref<4x128xbf16, #tpu.memory_space<vmem>>, vector<4x128xbf16>
      tpu.vector_store %arg5[%c0_12, %c0_13], %13 {strides = array<i32>} : memref<4x128xbf16, #tpu.memory_space<vmem>>, vector<4x128xbf16>,
    } else {
    }
    return
  }
  func.func @transform_0(%arg0: i32, %arg1: i32, %arg2: i32) -> (i32, i32) {
    %c0_i32 = arith.constant 0 : i32
    return %arg0, %arg2 : i32, i32
  }
  func.func @transform_1(%arg0: i32, %arg1: i32, %arg2: i32) -> (i32, i32) {
    %c0_i32 = arith.constant 0 : i32
    return %arg2, %arg1 : i32, i32
  }
  func.func @transform_2(%arg0: i32, %arg1: i32, %arg2: i32) -> (i32, i32) {
    %c0_i32 = arith.constant 0 : i32
    return %arg0, %arg1 : i32, i32
  }
}

module attributes {stable_mosaic.version = 11 : i64} {
  func.func @_linear_kernel(%arg0: i32, %arg1: i32, %arg2: i32, %arg3: memref<64x4xbf16, #tpu.memory_space<vmem>>, %arg4: memref<4x128xbf16, #tpu.memory_space<vmem>>, %arg5: memref<64x128xbf16, #tpu.memory_space<vmem>>, %arg6: memref<64x128xf32, #tpu.memory_space<vmem>>) attributes {dimension_semantics = [#tpu.dimension_semantics<parallel>, #tpu.dimension_semantics<parallel>, #tpu.dimension_semantics<arbitrary>], iteration_bounds = array<i64: 1, 1, 1>, scalar_prefetch = 0 : i64, scratch_operands = 1 : i64, tpu.core_type = #tpu.core_type<tc>, window_params = [{transform_indices = @transform_0, window_bounds = array<i64: 64, 4>}, {transform_indices = @transform_1, window_bounds = array<i64: 4, 128>}, {transform_indices = @transform_2, window_bounds = array<i64: 64, 128>}]} {
    %c0_i32 = arith.constant 0 : i32
    %0 = arith.cmpi eq, %arg2, %c0_i32 : i32
    %1 = arith.extui %0 : i1 to i32
    %c0_i32_0 = arith.constant 0 : i32
    %2 = arith.cmpi ne, %1, %c0_i32_0 : i32
    scf.if %2 {
      %cst_10 = arith.constant 0.000000e+00 : f32
      %12 = vector.broadcast %cst_10 : f32 to vector<64x128xf32>
      %c0_11 = arith.constant 0 : index
      %c0_12 = arith.constant 0 : index
      %13 = vector.load %arg6[%c0_11, %c0_12] : memref<64x128xf32, #tpu.memory_space<vmem>>, vector<64x128xf32>
      tpu.vector_store %arg6[%c0_11, %c0_12], %12 {strides = array<i32>} : memref<64x128xf32, #tpu.memory_space<vmem>>, vector<64x128xf32>,
    } else {
    }
    %c0 = arith.constant 0 : index
    %c0_1 = arith.constant 0 : index
    %3 = vector.load %arg6[%c0, %c0_1] : memref<64x128xf32, #tpu.memory_space<vmem>>, vector<64x128xf32>
    %c0_2 = arith.constant 0 : index
    %c0_3 = arith.constant 0 : index
    %4 = vector.load %arg3[%c0_2, %c0_3] : memref<64x4xbf16, #tpu.memory_space<vmem>>, vector<64x4xbf16>
    %c0_4 = arith.constant 0 : index
    %c0_5 = arith.constant 0 : index
    %5 = vector.load %arg4[%c0_4, %c0_5] : memref<4x128xbf16, #tpu.memory_space<vmem>>, vector<4x128xbf16>
    %cst = arith.constant dense<0.000000e+00> : vector<64x128xf32>
    %6 = tpu.matmul %4, %5, %cst {dimension_numbers = #tpu.dot_dimension_numbers<[1], [0], [0], [1], [0, 0, 1, 1], [], []>} : vector<64x4xbf16>, vector<4x128xbf16>, vector<64x128xf32> -> vector<64x128xf32>
    %7 = arith.addf %3, %6 : vector<64x128xf32>
    %c0_6 = arith.constant 0 : index
    %c0_7 = arith.constant 0 : index
    %8 = vector.load %arg6[%c0_6, %c0_7] : memref<64x128xf32, #tpu.memory_space<vmem>>, vector<64x128xf32>
    tpu.vector_store %arg6[%c0_6, %c0_7], %7 {strides = array<i32>} : memref<64x128xf32, #tpu.memory_space<vmem>>, vector<64x128xf32>,
    %c0_i32_8 = arith.constant 0 : i32
    %9 = arith.cmpi eq, %arg2, %c0_i32_8 : i32
    %10 = arith.extui %9 : i1 to i32
    %c0_i32_9 = arith.constant 0 : i32
    %11 = arith.cmpi ne, %10, %c0_i32_9 : i32
    scf.if %11 {
      %c0_10 = arith.constant 0 : index
      %c0_11 = arith.constant 0 : index
      %12 = vector.load %arg6[%c0_10, %c0_11] : memref<64x128xf32, #tpu.memory_space<vmem>>, vector<64x128xf32>
      %13 = arith.truncf %12 : vector<64x128xf32> to vector<64x128xbf16>
      %c0_12 = arith.constant 0 : index
      %c0_13 = arith.constant 0 : index
      %14 = vector.load %arg5[%c0_12, %c0_13] : memref<64x128xbf16, #tpu.memory_space<vmem>>, vector<64x128xbf16>
      tpu.vector_store %arg5[%c0_12, %c0_13], %13 {strides = array<i32>} : memref<64x128xbf16, #tpu.memory_space<vmem>>, vector<64x128xbf16>,
    } else {
    }
    return
  }
  func.func @transform_0(%arg0: i32, %arg1: i32, %arg2: i32) -> (i32, i32) {
    %c0_i32 = arith.constant 0 : i32
    return %arg0, %arg2 : i32, i32
  }
  func.func @transform_1(%arg0: i32, %arg1: i32, %arg2: i32) -> (i32, i32) {
    %c0_i32 = arith.constant 0 : i32
    return %arg2, %arg1 : i32, i32
  }
  func.func @transform_2(%arg0: i32, %arg1: i32, %arg2: i32) -> (i32, i32) {
    %c0_i32 = arith.constant 0 : i32
    return %arg0, %arg1 : i32, i32
  }
}

module attributes {stable_mosaic.version = 11 : i64} {
  func.func @_linear_kernel(%arg0: i32, %arg1: i32, %arg2: i32, %arg3: memref<4x32xbf16, #tpu.memory_space<vmem>>, %arg4: memref<32x128xbf16, #tpu.memory_space<vmem>>, %arg5: memref<1x128xf32, #tpu.memory_space<vmem>>, %arg6: memref<4x128xf32, #tpu.memory_space<vmem>>, %arg7: memref<4x128xf32, #tpu.memory_space<vmem>>) attributes {dimension_semantics = [#tpu.dimension_semantics<parallel>, #tpu.dimension_semantics<parallel>, #tpu.dimension_semantics<arbitrary>], iteration_bounds = array<i64: 1, 1, 1>, scalar_prefetch = 0 : i64, scratch_operands = 1 : i64, tpu.core_type = #tpu.core_type<tc>, window_params = [{transform_indices = @transform_0, window_bounds = array<i64: 4, 32>}, {transform_indices = @transform_1, window_bounds = array<i64: 32, 128>}, {transform_indices = @transform_2, window_bounds = array<i64: 1, 128>}, {transform_indices = @transform_3, window_bounds = array<i64: 4, 128>}]} {
    %c0_i32 = arith.constant 0 : i32
    %0 = arith.cmpi eq, %arg2, %c0_i32 : i32
    %1 = arith.extui %0 : i1 to i32
    %c0_i32_0 = arith.constant 0 : i32
    %2 = arith.cmpi ne, %1, %c0_i32_0 : i32
    scf.if %2 {
      %cst_10 = arith.constant 0.000000e+00 : f32
      %12 = vector.broadcast %cst_10 : f32 to vector<4x128xf32>
      %c0_11 = arith.constant 0 : index
      %c0_12 = arith.constant 0 : index
      %13 = vector.load %arg7[%c0_11, %c0_12] : memref<4x128xf32, #tpu.memory_space<vmem>>, vector<4x128xf32>
      tpu.vector_store %arg7[%c0_11, %c0_12], %12 {strides = array<i32>} : memref<4x128xf32, #tpu.memory_space<vmem>>, vector<4x128xf32>,
    } else {
    }
    %c0 = arith.constant 0 : index
    %c0_1 = arith.constant 0 : index
    %3 = vector.load %arg7[%c0, %c0_1] : memref<4x128xf32, #tpu.memory_space<vmem>>, vector<4x128xf32>
    %c0_2 = arith.constant 0 : index
    %c0_3 = arith.constant 0 : index
    %4 = vector.load %arg3[%c0_2, %c0_3] : memref<4x32xbf16, #tpu.memory_space<vmem>>, vector<4x32xbf16>
    %c0_4 = arith.constant 0 : index
    %c0_5 = arith.constant 0 : index
    %5 = vector.load %arg4[%c0_4, %c0_5] : memref<32x128xbf16, #tpu.memory_space<vmem>>, vector<32x128xbf16>
    %cst = arith.constant dense<0.000000e+00> : vector<4x128xf32>
    %6 = tpu.matmul %4, %5, %cst {dimension_numbers = #tpu.dot_dimension_numbers<[1], [0], [0], [1], [0, 0, 1, 1], [], []>} : vector<4x32xbf16>, vector<32x128xbf16>, vector<4x128xf32> -> vector<4x128xf32>
    %7 = arith.addf %3, %6 : vector<4x128xf32>
    %c0_6 = arith.constant 0 : index
    %c0_7 = arith.constant 0 : index
    %8 = vector.load %arg7[%c0_6, %c0_7] : memref<4x128xf32, #tpu.memory_space<vmem>>, vector<4x128xf32>
    tpu.vector_store %arg7[%c0_6, %c0_7], %7 {strides = array<i32>} : memref<4x128xf32, #tpu.memory_space<vmem>>, vector<4x128xf32>,
    %c0_i32_8 = arith.constant 0 : i32
    %9 = arith.cmpi eq, %arg2, %c0_i32_8 : i32
    %10 = arith.extui %9 : i1 to i32
    %c0_i32_9 = arith.constant 0 : i32
    %11 = arith.cmpi ne, %10, %c0_i32_9 : i32
    scf.if %11 {
      %c0_10 = arith.constant 0 : index
      %c0_11 = arith.constant 0 : index
      %12 = vector.load %arg7[%c0_10, %c0_11] : memref<4x128xf32, #tpu.memory_space<vmem>>, vector<4x128xf32>
      %c0_12 = arith.constant 0 : index
      %c0_13 = arith.constant 0 : index
      %13 = vector.load %arg5[%c0_12, %c0_13] : memref<1x128xf32, #tpu.memory_space<vmem>>, vector<1x128xf32>
      %14 = vector.broadcast %13 : vector<1x128xf32> to vector<4x128xf32>
      %15 = arith.addf %12, %14 : vector<4x128xf32>
      %16 = arith.negf %15 : vector<4x128xf32>
      %17 = math.exp %16 : vector<4x128xf32>
      %cst_14 = arith.constant 1.000000e+00 : f32
      %18 = vector.broadcast %cst_14 : f32 to vector<4x128xf32>
      %19 = arith.addf %18, %17 : vector<4x128xf32>
      %20 = arith.divf %18, %19 : vector<4x128xf32>
      %21 = arith.mulf %15, %20 : vector<4x128xf32>
      %c0_15 = arith.constant 0 : index
      %c0_16 = arith.constant 0 : index
      %22 = vector.load %arg6[%c0_15, %c0_16] : memref<4x128xf32, #tpu.memory_space<vmem>>, vector<4x128xf32>
      tpu.vector_store %arg6[%c0_15, %c0_16], %21 {strides = array<i32>} : memref<4x128xf32, #tpu.memory_space<vmem>>, vector<4x128xf32>,
    } else {
    }
    return
  }
  func.func @transform_0(%arg0: i32, %arg1: i32, %arg2: i32) -> (i32, i32) {
    %c0_i32 = arith.constant 0 : i32
    return %arg0, %arg2 : i32, i32
  }
  func.func @transform_1(%arg0: i32, %arg1: i32, %arg2: i32) -> (i32, i32) {
    %c0_i32 = arith.constant 0 : i32
    return %arg2, %arg1 : i32, i32
  }
  func.func @transform_2(%arg0: i32, %arg1: i32, %arg2: i32) -> (i32, i32) {
    %c0_i32 = arith.constant 0 : i32
    %c0_i32_0 = arith.constant 0 : i32
    return %c0_i32, %arg1 : i32, i32
  }
  func.func @transform_3(%arg0: i32, %arg1: i32, %arg2: i32) -> (i32, i32) {
    %c0_i32 = arith.constant 0 : i32
    return %arg0, %arg1 : i32, i32
  }
}

module attributes {stable_mosaic.version = 11 : i64} {
  func.func @_linear_kernel(%arg0: i32, %arg1: i32, %arg2: i32, %arg3: memref<4x32xbf16, #tpu.memory_space<vmem>>, %arg4: memref<32x128xbf16, #tpu.memory_space<vmem>>, %arg5: memref<1x128xf32, #tpu.memory_space<vmem>>, %arg6: memref<4x128xf32, #tpu.memory_space<vmem>>, %arg7: memref<4x128xf32, #tpu.memory_space<vmem>>) attributes {dimension_semantics = [#tpu.dimension_semantics<parallel>, #tpu.dimension_semantics<parallel>, #tpu.dimension_semantics<arbitrary>], iteration_bounds = array<i64: 1, 1, 1>, scalar_prefetch = 0 : i64, scratch_operands = 1 : i64, tpu.core_type = #tpu.core_type<tc>, window_params = [{transform_indices = @transform_0, window_bounds = array<i64: 4, 32>}, {transform_indices = @transform_1, window_bounds = array<i64: 32, 128>}, {transform_indices = @transform_2, window_bounds = array<i64: 1, 128>}, {transform_indices = @transform_3, window_bounds = array<i64: 4, 128>}]} {
    %c0_i32 = arith.constant 0 : i32
    %0 = arith.cmpi eq, %arg2, %c0_i32 : i32
    %1 = arith.extui %0 : i1 to i32
    %c0_i32_0 = arith.constant 0 : i32
    %2 = arith.cmpi ne, %1, %c0_i32_0 : i32
    scf.if %2 {
      %cst_10 = arith.constant 0.000000e+00 : f32
      %12 = vector.broadcast %cst_10 : f32 to vector<4x128xf32>
      %c0_11 = arith.constant 0 : index
      %c0_12 = arith.constant 0 : index
      %13 = vector.load %arg7[%c0_11, %c0_12] : memref<4x128xf32, #tpu.memory_space<vmem>>, vector<4x128xf32>
      tpu.vector_store %arg7[%c0_11, %c0_12], %12 {strides = array<i32>} : memref<4x128xf32, #tpu.memory_space<vmem>>, vector<4x128xf32>,
    } else {
    }
    %c0 = arith.constant 0 : index
    %c0_1 = arith.constant 0 : index
    %3 = vector.load %arg7[%c0, %c0_1] : memref<4x128xf32, #tpu.memory_space<vmem>>, vector<4x128xf32>
    %c0_2 = arith.constant 0 : index
    %c0_3 = arith.constant 0 : index
    %4 = vector.load %arg3[%c0_2, %c0_3] : memref<4x32xbf16, #tpu.memory_space<vmem>>, vector<4x32xbf16>
    %c0_4 = arith.constant 0 : index
    %c0_5 = arith.constant 0 : index
    %5 = vector.load %arg4[%c0_4, %c0_5] : memref<32x128xbf16, #tpu.memory_space<vmem>>, vector<32x128xbf16>
    %cst = arith.constant dense<0.000000e+00> : vector<4x128xf32>
    %6 = tpu.matmul %4, %5, %cst {dimension_numbers = #tpu.dot_dimension_numbers<[1], [0], [0], [1], [0, 0, 1, 1], [], []>} : vector<4x32xbf16>, vector<32x128xbf16>, vector<4x128xf32> -> vector<4x128xf32>
    %7 = arith.addf %3, %6 : vector<4x128xf32>
    %c0_6 = arith.constant 0 : index
    %c0_7 = arith.constant 0 : index
    %8 = vector.load %arg7[%c0_6, %c0_7] : memref<4x128xf32, #tpu.memory_space<vmem>>, vector<4x128xf32>
    tpu.vector_store %arg7[%c0_6, %c0_7], %7 {strides = array<i32>} : memref<4x128xf32, #tpu.memory_space<vmem>>, vector<4x128xf32>,
    %c0_i32_8 = arith.constant 0 : i32
    %9 = arith.cmpi eq, %arg2, %c0_i32_8 : i32
    %10 = arith.extui %9 : i1 to i32
    %c0_i32_9 = arith.constant 0 : i32
    %11 = arith.cmpi ne, %10, %c0_i32_9 : i32
    scf.if %11 {
      %c0_10 = arith.constant 0 : index
      %c0_11 = arith.constant 0 : index
      %12 = vector.load %arg7[%c0_10, %c0_11] : memref<4x128xf32, #tpu.memory_space<vmem>>, vector<4x128xf32>
      %c0_12 = arith.constant 0 : index
      %c0_13 = arith.constant 0 : index
      %13 = vector.load %arg5[%c0_12, %c0_13] : memref<1x128xf32, #tpu.memory_space<vmem>>, vector<1x128xf32>
      %14 = vector.broadcast %13 : vector<1x128xf32> to vector<4x128xf32>
      %15 = arith.addf %12, %14 : vector<4x128xf32>
      %c0_14 = arith.constant 0 : index
      %c0_15 = arith.constant 0 : index
      %16 = vector.load %arg6[%c0_14, %c0_15] : memref<4x128xf32, #tpu.memory_space<vmem>>, vector<4x128xf32>
      tpu.vector_store %arg6[%c0_14, %c0_15], %15 {strides = array<i32>} : memref<4x128xf32, #tpu.memory_space<vmem>>, vector<4x128xf32>,
    } else {
    }
    return
  }
  func.func @transform_0(%arg0: i32, %arg1: i32, %arg2: i32) -> (i32, i32) {
    %c0_i32 = arith.constant 0 : i32
    return %arg0, %arg2 : i32, i32
  }
  func.func @transform_1(%arg0: i32, %arg1: i32, %arg2: i32) -> (i32, i32) {
    %c0_i32 = arith.constant 0 : i32
    return %arg2, %arg1 : i32, i32
  }
  func.func @transform_2(%arg0: i32, %arg1: i32, %arg2: i32) -> (i32, i32) {
    %c0_i32 = arith.constant 0 : i32
    %c0_i32_0 = arith.constant 0 : i32
    return %c0_i32, %arg1 : i32, i32
  }
  func.func @transform_3(%arg0: i32, %arg1: i32, %arg2: i32) -> (i32, i32) {
    %c0_i32 = arith.constant 0 : i32
    return %arg0, %arg1 : i32, i32
  }
}

module attributes {stable_mosaic.version = 11 : i64} {
  func.func @_linear_kernel(%arg0: i32, %arg1: i32, %arg2: i32, %arg3: memref<4x2xbf16, #tpu.memory_space<vmem>>, %arg4: memref<2x128xbf16, #tpu.memory_space<vmem>>, %arg5: memref<1x128xf32, #tpu.memory_space<vmem>>, %arg6: memref<4x128xf32, #tpu.memory_space<vmem>>, %arg7: memref<4x128xf32, #tpu.memory_space<vmem>>) attributes {dimension_semantics = [#tpu.dimension_semantics<parallel>, #tpu.dimension_semantics<parallel>, #tpu.dimension_semantics<arbitrary>], iteration_bounds = array<i64: 1, 1, 1>, scalar_prefetch = 0 : i64, scratch_operands = 1 : i64, tpu.core_type = #tpu.core_type<tc>, window_params = [{transform_indices = @transform_0, window_bounds = array<i64: 4, 2>}, {transform_indices = @transform_1, window_bounds = array<i64: 2, 128>}, {transform_indices = @transform_2, window_bounds = array<i64: 1, 128>}, {transform_indices = @transform_3, window_bounds = array<i64: 4, 128>}]} {
    %c0_i32 = arith.constant 0 : i32
    %0 = arith.cmpi eq, %arg2, %c0_i32 : i32
    %1 = arith.extui %0 : i1 to i32
    %c0_i32_0 = arith.constant 0 : i32
    %2 = arith.cmpi ne, %1, %c0_i32_0 : i32
    scf.if %2 {
      %cst_10 = arith.constant 0.000000e+00 : f32
      %12 = vector.broadcast %cst_10 : f32 to vector<4x128xf32>
      %c0_11 = arith.constant 0 : index
      %c0_12 = arith.constant 0 : index
      %13 = vector.load %arg7[%c0_11, %c0_12] : memref<4x128xf32, #tpu.memory_space<vmem>>, vector<4x128xf32>
      tpu.vector_store %arg7[%c0_11, %c0_12], %12 {strides = array<i32>} : memref<4x128xf32, #tpu.memory_space<vmem>>, vector<4x128xf32>,
    } else {
    }
    %c0 = arith.constant 0 : index
    %c0_1 = arith.constant 0 : index
    %3 = vector.load %arg7[%c0, %c0_1] : memref<4x128xf32, #tpu.memory_space<vmem>>, vector<4x128xf32>
    %c0_2 = arith.constant 0 : index
    %c0_3 = arith.constant 0 : index
    %4 = vector.load %arg3[%c0_2, %c0_3] : memref<4x2xbf16, #tpu.memory_space<vmem>>, vector<4x2xbf16>
    %c0_4 = arith.constant 0 : index
    %c0_5 = arith.constant 0 : index
    %5 = vector.load %arg4[%c0_4, %c0_5] : memref<2x128xbf16, #tpu.memory_space<vmem>>, vector<2x128xbf16>
    %cst = arith.constant dense<0.000000e+00> : vector<4x128xf32>
    %6 = tpu.matmul %4, %5, %cst {dimension_numbers = #tpu.dot_dimension_numbers<[1], [0], [0], [1], [0, 0, 1, 1], [], []>} : vector<4x2xbf16>, vector<2x128xbf16>, vector<4x128xf32> -> vector<4x128xf32>
    %7 = arith.addf %3, %6 : vector<4x128xf32>
    %c0_6 = arith.constant 0 : index
    %c0_7 = arith.constant 0 : index
    %8 = vector.load %arg7[%c0_6, %c0_7] : memref<4x128xf32, #tpu.memory_space<vmem>>, vector<4x128xf32>
    tpu.vector_store %arg7[%c0_6, %c0_7], %7 {strides = array<i32>} : memref<4x128xf32, #tpu.memory_space<vmem>>, vector<4x128xf32>,
    %c0_i32_8 = arith.constant 0 : i32
    %9 = arith.cmpi eq, %arg2, %c0_i32_8 : i32
    %10 = arith.extui %9 : i1 to i32
    %c0_i32_9 = arith.constant 0 : i32
    %11 = arith.cmpi ne, %10, %c0_i32_9 : i32
    scf.if %11 {
      %c0_10 = arith.constant 0 : index
      %c0_11 = arith.constant 0 : index
      %12 = vector.load %arg7[%c0_10, %c0_11] : memref<4x128xf32, #tpu.memory_space<vmem>>, vector<4x128xf32>
      %c0_12 = arith.constant 0 : index
      %c0_13 = arith.constant 0 : index
      %13 = vector.load %arg5[%c0_12, %c0_13] : memref<1x128xf32, #tpu.memory_space<vmem>>, vector<1x128xf32>
      %14 = vector.broadcast %13 : vector<1x128xf32> to vector<4x128xf32>
      %15 = arith.addf %12, %14 : vector<4x128xf32>
      %16 = arith.negf %15 : vector<4x128xf32>
      %17 = math.exp %16 : vector<4x128xf32>
      %cst_14 = arith.constant 1.000000e+00 : f32
      %18 = vector.broadcast %cst_14 : f32 to vector<4x128xf32>
      %19 = arith.addf %18, %17 : vector<4x128xf32>
      %20 = arith.divf %18, %19 : vector<4x128xf32>
      %21 = arith.mulf %15, %20 : vector<4x128xf32>
      %c0_15 = arith.constant 0 : index
      %c0_16 = arith.constant 0 : index
      %22 = vector.load %arg6[%c0_15, %c0_16] : memref<4x128xf32, #tpu.memory_space<vmem>>, vector<4x128xf32>
      tpu.vector_store %arg6[%c0_15, %c0_16], %21 {strides = array<i32>} : memref<4x128xf32, #tpu.memory_space<vmem>>, vector<4x128xf32>,
    } else {
    }
    return
  }
  func.func @transform_0(%arg0: i32, %arg1: i32, %arg2: i32) -> (i32, i32) {
    %c0_i32 = arith.constant 0 : i32
    return %arg0, %arg2 : i32, i32
  }
  func.func @transform_1(%arg0: i32, %arg1: i32, %arg2: i32) -> (i32, i32) {
    %c0_i32 = arith.constant 0 : i32
    return %arg2, %arg1 : i32, i32
  }
  func.func @transform_2(%arg0: i32, %arg1: i32, %arg2: i32) -> (i32, i32) {
    %c0_i32 = arith.constant 0 : i32
    %c0_i32_0 = arith.constant 0 : i32
    return %c0_i32, %arg1 : i32, i32
  }
  func.func @transform_3(%arg0: i32, %arg1: i32, %arg2: i32) -> (i32, i32) {
    %c0_i32 = arith.constant 0 : i32
    return %arg0, %arg1 : i32, i32
  }
}

module attributes {stable_mosaic.version = 11 : i64} {
  func.func @_linear_kernel(%arg0: i32, %arg1: i32, %arg2: i32, %arg3: memref<4x8xbf16, #tpu.memory_space<vmem>>, %arg4: memref<8x128xbf16, #tpu.memory_space<vmem>>, %arg5: memref<1x128xf32, #tpu.memory_space<vmem>>, %arg6: memref<4x128xf32, #tpu.memory_space<vmem>>, %arg7: memref<4x128xf32, #tpu.memory_space<vmem>>) attributes {dimension_semantics = [#tpu.dimension_semantics<parallel>, #tpu.dimension_semantics<parallel>, #tpu.dimension_semantics<arbitrary>], iteration_bounds = array<i64: 1, 1, 1>, scalar_prefetch = 0 : i64, scratch_operands = 1 : i64, tpu.core_type = #tpu.core_type<tc>, window_params = [{transform_indices = @transform_0, window_bounds = array<i64: 4, 8>}, {transform_indices = @transform_1, window_bounds = array<i64: 8, 128>}, {transform_indices = @transform_2, window_bounds = array<i64: 1, 128>}, {transform_indices = @transform_3, window_bounds = array<i64: 4, 128>}]} {
    %c0_i32 = arith.constant 0 : i32
    %0 = arith.cmpi eq, %arg2, %c0_i32 : i32
    %1 = arith.extui %0 : i1 to i32
    %c0_i32_0 = arith.constant 0 : i32
    %2 = arith.cmpi ne, %1, %c0_i32_0 : i32
    scf.if %2 {
      %cst_10 = arith.constant 0.000000e+00 : f32
      %12 = vector.broadcast %cst_10 : f32 to vector<4x128xf32>
      %c0_11 = arith.constant 0 : index
      %c0_12 = arith.constant 0 : index
      %13 = vector.load %arg7[%c0_11, %c0_12] : memref<4x128xf32, #tpu.memory_space<vmem>>, vector<4x128xf32>
      tpu.vector_store %arg7[%c0_11, %c0_12], %12 {strides = array<i32>} : memref<4x128xf32, #tpu.memory_space<vmem>>, vector<4x128xf32>,
    } else {
    }
    %c0 = arith.constant 0 : index
    %c0_1 = arith.constant 0 : index
    %3 = vector.load %arg7[%c0, %c0_1] : memref<4x128xf32, #tpu.memory_space<vmem>>, vector<4x128xf32>
    %c0_2 = arith.constant 0 : index
    %c0_3 = arith.constant 0 : index
    %4 = vector.load %arg3[%c0_2, %c0_3] : memref<4x8xbf16, #tpu.memory_space<vmem>>, vector<4x8xbf16>
    %c0_4 = arith.constant 0 : index
    %c0_5 = arith.constant 0 : index
    %5 = vector.load %arg4[%c0_4, %c0_5] : memref<8x128xbf16, #tpu.memory_space<vmem>>, vector<8x128xbf16>
    %cst = arith.constant dense<0.000000e+00> : vector<4x128xf32>
    %6 = tpu.matmul %4, %5, %cst {dimension_numbers = #tpu.dot_dimension_numbers<[1], [0], [0], [1], [0, 0, 1, 1], [], []>} : vector<4x8xbf16>, vector<8x128xbf16>, vector<4x128xf32> -> vector<4x128xf32>
    %7 = arith.addf %3, %6 : vector<4x128xf32>
    %c0_6 = arith.constant 0 : index
    %c0_7 = arith.constant 0 : index
    %8 = vector.load %arg7[%c0_6, %c0_7] : memref<4x128xf32, #tpu.memory_space<vmem>>, vector<4x128xf32>
    tpu.vector_store %arg7[%c0_6, %c0_7], %7 {strides = array<i32>} : memref<4x128xf32, #tpu.memory_space<vmem>>, vector<4x128xf32>,
    %c0_i32_8 = arith.constant 0 : i32
    %9 = arith.cmpi eq, %arg2, %c0_i32_8 : i32
    %10 = arith.extui %9 : i1 to i32
    %c0_i32_9 = arith.constant 0 : i32
    %11 = arith.cmpi ne, %10, %c0_i32_9 : i32
    scf.if %11 {
      %c0_10 = arith.constant 0 : index
      %c0_11 = arith.constant 0 : index
      %12 = vector.load %arg7[%c0_10, %c0_11] : memref<4x128xf32, #tpu.memory_space<vmem>>, vector<4x128xf32>
      %c0_12 = arith.constant 0 : index
      %c0_13 = arith.constant 0 : index
      %13 = vector.load %arg5[%c0_12, %c0_13] : memref<1x128xf32, #tpu.memory_space<vmem>>, vector<1x128xf32>
      %14 = vector.broadcast %13 : vector<1x128xf32> to vector<4x128xf32>
      %15 = arith.addf %12, %14 : vector<4x128xf32>
      %16 = arith.negf %15 : vector<4x128xf32>
      %17 = math.exp %16 : vector<4x128xf32>
      %cst_14 = arith.constant 1.000000e+00 : f32
      %18 = vector.broadcast %cst_14 : f32 to vector<4x128xf32>
      %19 = arith.addf %18, %17 : vector<4x128xf32>
      %20 = arith.divf %18, %19 : vector<4x128xf32>
      %21 = arith.mulf %15, %20 : vector<4x128xf32>
      %c0_15 = arith.constant 0 : index
      %c0_16 = arith.constant 0 : index
      %22 = vector.load %arg6[%c0_15, %c0_16] : memref<4x128xf32, #tpu.memory_space<vmem>>, vector<4x128xf32>
      tpu.vector_store %arg6[%c0_15, %c0_16], %21 {strides = array<i32>} : memref<4x128xf32, #tpu.memory_space<vmem>>, vector<4x128xf32>,
    } else {
    }
    return
  }
  func.func @transform_0(%arg0: i32, %arg1: i32, %arg2: i32) -> (i32, i32) {
    %c0_i32 = arith.constant 0 : i32
    return %arg0, %arg2 : i32, i32
  }
  func.func @transform_1(%arg0: i32, %arg1: i32, %arg2: i32) -> (i32, i32) {
    %c0_i32 = arith.constant 0 : i32
    return %arg2, %arg1 : i32, i32
  }
  func.func @transform_2(%arg0: i32, %arg1: i32, %arg2: i32) -> (i32, i32) {
    %c0_i32 = arith.constant 0 : i32
    %c0_i32_0 = arith.constant 0 : i32
    return %c0_i32, %arg1 : i32, i32
  }
  func.func @transform_3(%arg0: i32, %arg1: i32, %arg2: i32) -> (i32, i32) {
    %c0_i32 = arith.constant 0 : i32
    return %arg0, %arg1 : i32, i32
  }
}

module attributes {stable_mosaic.version = 11 : i64} {
  func.func @_linear_kernel(%arg0: i32, %arg1: i32, %arg2: i32, %arg3: memref<4x32xbf16, #tpu.memory_space<vmem>>, %arg4: memref<32x256xbf16, #tpu.memory_space<vmem>>, %arg5: memref<1x256xf32, #tpu.memory_space<vmem>>, %arg6: memref<4x256xf32, #tpu.memory_space<vmem>>, %arg7: memref<4x256xf32, #tpu.memory_space<vmem>>) attributes {dimension_semantics = [#tpu.dimension_semantics<parallel>, #tpu.dimension_semantics<parallel>, #tpu.dimension_semantics<arbitrary>], iteration_bounds = array<i64: 1, 1, 1>, scalar_prefetch = 0 : i64, scratch_operands = 1 : i64, tpu.core_type = #tpu.core_type<tc>, window_params = [{transform_indices = @transform_0, window_bounds = array<i64: 4, 32>}, {transform_indices = @transform_1, window_bounds = array<i64: 32, 256>}, {transform_indices = @transform_2, window_bounds = array<i64: 1, 256>}, {transform_indices = @transform_3, window_bounds = array<i64: 4, 256>}]} {
    %c0_i32 = arith.constant 0 : i32
    %0 = arith.cmpi eq, %arg2, %c0_i32 : i32
    %1 = arith.extui %0 : i1 to i32
    %c0_i32_0 = arith.constant 0 : i32
    %2 = arith.cmpi ne, %1, %c0_i32_0 : i32
    scf.if %2 {
      %cst_10 = arith.constant 0.000000e+00 : f32
      %12 = vector.broadcast %cst_10 : f32 to vector<4x256xf32>
      %c0_11 = arith.constant 0 : index
      %c0_12 = arith.constant 0 : index
      %13 = vector.load %arg7[%c0_11, %c0_12] : memref<4x256xf32, #tpu.memory_space<vmem>>, vector<4x256xf32>
      tpu.vector_store %arg7[%c0_11, %c0_12], %12 {strides = array<i32>} : memref<4x256xf32, #tpu.memory_space<vmem>>, vector<4x256xf32>,
    } else {
    }
    %c0 = arith.constant 0 : index
    %c0_1 = arith.constant 0 : index
    %3 = vector.load %arg7[%c0, %c0_1] : memref<4x256xf32, #tpu.memory_space<vmem>>, vector<4x256xf32>
    %c0_2 = arith.constant 0 : index
    %c0_3 = arith.constant 0 : index
    %4 = vector.load %arg3[%c0_2, %c0_3] : memref<4x32xbf16, #tpu.memory_space<vmem>>, vector<4x32xbf16>
    %c0_4 = arith.constant 0 : index
    %c0_5 = arith.constant 0 : index
    %5 = vector.load %arg4[%c0_4, %c0_5] : memref<32x256xbf16, #tpu.memory_space<vmem>>, vector<32x256xbf16>
    %cst = arith.constant dense<0.000000e+00> : vector<4x256xf32>
    %6 = tpu.matmul %4, %5, %cst {dimension_numbers = #tpu.dot_dimension_numbers<[1], [0], [0], [1], [0, 0, 1, 1], [], []>} : vector<4x32xbf16>, vector<32x256xbf16>, vector<4x256xf32> -> vector<4x256xf32>
    %7 = arith.addf %3, %6 : vector<4x256xf32>
    %c0_6 = arith.constant 0 : index
    %c0_7 = arith.constant 0 : index
    %8 = vector.load %arg7[%c0_6, %c0_7] : memref<4x256xf32, #tpu.memory_space<vmem>>, vector<4x256xf32>
    tpu.vector_store %arg7[%c0_6, %c0_7], %7 {strides = array<i32>} : memref<4x256xf32, #tpu.memory_space<vmem>>, vector<4x256xf32>,
    %c0_i32_8 = arith.constant 0 : i32
    %9 = arith.cmpi eq, %arg2, %c0_i32_8 : i32
    %10 = arith.extui %9 : i1 to i32
    %c0_i32_9 = arith.constant 0 : i32
    %11 = arith.cmpi ne, %10, %c0_i32_9 : i32
    scf.if %11 {
      %c0_10 = arith.constant 0 : index
      %c0_11 = arith.constant 0 : index
      %12 = vector.load %arg7[%c0_10, %c0_11] : memref<4x256xf32, #tpu.memory_space<vmem>>, vector<4x256xf32>
      %c0_12 = arith.constant 0 : index
      %c0_13 = arith.constant 0 : index
      %13 = vector.load %arg5[%c0_12, %c0_13] : memref<1x256xf32, #tpu.memory_space<vmem>>, vector<1x256xf32>
      %14 = vector.broadcast %13 : vector<1x256xf32> to vector<4x256xf32>
      %15 = arith.addf %12, %14 : vector<4x256xf32>
      %c0_14 = arith.constant 0 : index
      %c0_15 = arith.constant 0 : index
      %16 = vector.load %arg6[%c0_14, %c0_15] : memref<4x256xf32, #tpu.memory_space<vmem>>, vector<4x256xf32>
      tpu.vector_store %arg6[%c0_14, %c0_15], %15 {strides = array<i32>} : memref<4x256xf32, #tpu.memory_space<vmem>>, vector<4x256xf32>,
    } else {
    }
    return
  }
  func.func @transform_0(%arg0: i32, %arg1: i32, %arg2: i32) -> (i32, i32) {
    %c0_i32 = arith.constant 0 : i32
    return %arg0, %arg2 : i32, i32
  }
  func.func @transform_1(%arg0: i32, %arg1: i32, %arg2: i32) -> (i32, i32) {
    %c0_i32 = arith.constant 0 : i32
    return %arg2, %arg1 : i32, i32
  }
  func.func @transform_2(%arg0: i32, %arg1: i32, %arg2: i32) -> (i32, i32) {
    %c0_i32 = arith.constant 0 : i32
    %c0_i32_0 = arith.constant 0 : i32
    return %c0_i32, %arg1 : i32, i32
  }
  func.func @transform_3(%arg0: i32, %arg1: i32, %arg2: i32) -> (i32, i32) {
    %c0_i32 = arith.constant 0 : i32
    return %arg0, %arg1 : i32, i32
  }
}

module attributes {stable_mosaic.version = 11 : i64} {
  func.func @_adaln_kernel(%arg0: i32, %arg1: memref<1x17x32xbf16, #tpu.memory_space<vmem>>, %arg2: memref<1x1x32xf32, #tpu.memory_space<vmem>>, %arg3: memref<1x1x32xf32, #tpu.memory_space<vmem>>, %arg4: memref<1x17x32xbf16, #tpu.memory_space<vmem>>) attributes {dimension_semantics = [#tpu.dimension_semantics<parallel>], iteration_bounds = array<i64: 4>, scalar_prefetch = 0 : i64, scratch_operands = 0 : i64, tpu.core_type = #tpu.core_type<tc>, window_params = [{transform_indices = @transform_0, window_bounds = array<i64: 1, 17, 32>}, {transform_indices = @transform_1, window_bounds = array<i64: 1, 1, 32>}, {transform_indices = @transform_2, window_bounds = array<i64: 1, 1, 32>}, {transform_indices = @transform_3, window_bounds = array<i64: 1, 17, 32>}]} {
    %c0 = arith.constant 0 : index
    %c0_0 = arith.constant 0 : index
    %c0_1 = arith.constant 0 : index
    %0 = vector.load %arg1[%c0, %c0_0, %c0_1] : memref<1x17x32xbf16, #tpu.memory_space<vmem>>, vector<1x17x32xbf16>
    %1 = vector.shape_cast %0 : vector<1x17x32xbf16> to vector<17x32xbf16>
    %2 = arith.extf %1 : vector<17x32xbf16> to vector<17x32xf32>
    %cst = arith.constant dense<0.000000e+00> : vector<17xf32>
    %3 = vector.multi_reduction <add>, %2, %cst [1] : vector<17x32xf32> to vector<17xf32>
    %4 = vector.shape_cast %3 : vector<17xf32> to vector<17x1xf32>
    %cst_2 = arith.constant 3.200000e+01 : f32
    %5 = vector.broadcast %cst_2 : f32 to vector<17x1xf32>
    %6 = arith.divf %4, %5 : vector<17x1xf32>
    %7 = vector.broadcast %6 : vector<17x1xf32> to vector<17x32xf32>
    %8 = arith.subf %2, %7 : vector<17x32xf32>
    %9 = arith.mulf %8, %8 : vector<17x32xf32>
    %cst_3 = arith.constant dense<0.000000e+00> : vector<17xf32>
    %10 = vector.multi_reduction <add>, %9, %cst_3 [1] : vector<17x32xf32> to vector<17xf32>
    %11 = vector.shape_cast %10 : vector<17xf32> to vector<17x1xf32>
    %cst_4 = arith.constant 3.200000e+01 : f32
    %12 = vector.broadcast %cst_4 : f32 to vector<17x1xf32>
    %13 = arith.divf %11, %12 : vector<17x1xf32>
    %14 = vector.broadcast %6 : vector<17x1xf32> to vector<17x32xf32>
    %15 = arith.subf %2, %14 : vector<17x32xf32>
    %cst_5 = arith.constant 9.99999974E-6 : f32
    %16 = vector.broadcast %cst_5 : f32 to vector<17x1xf32>
    %17 = arith.addf %13, %16 : vector<17x1xf32>
    %18 = math.rsqrt %17 : vector<17x1xf32>
    %19 = vector.broadcast %18 : vector<17x1xf32> to vector<17x32xf32>
    %20 = arith.mulf %15, %19 : vector<17x32xf32>
    %c0_6 = arith.constant 0 : index
    %c0_7 = arith.constant 0 : index
    %c0_8 = arith.constant 0 : index
    %21 = vector.load %arg2[%c0_6, %c0_7, %c0_8] : memref<1x1x32xf32, #tpu.memory_space<vmem>>, vector<1x1x32xf32>
    %22 = vector.shape_cast %21 : vector<1x1x32xf32> to vector<1x32xf32>
    %c0_9 = arith.constant 0 : index
    %c0_10 = arith.constant 0 : index
    %c0_11 = arith.constant 0 : index
    %23 = vector.load %arg3[%c0_9, %c0_10, %c0_11] : memref<1x1x32xf32, #tpu.memory_space<vmem>>, vector<1x1x32xf32>
    %24 = vector.shape_cast %23 : vector<1x1x32xf32> to vector<1x32xf32>
    %cst_12 = arith.constant 1.000000e+00 : f32
    %25 = vector.broadcast %cst_12 : f32 to vector<1x32xf32>
    %26 = arith.addf %25, %24 : vector<1x32xf32>
    %27 = vector.broadcast %26 : vector<1x32xf32> to vector<17x32xf32>
    %28 = arith.mulf %20, %27 : vector<17x32xf32>
    %29 = vector.broadcast %22 : vector<1x32xf32> to vector<17x32xf32>
    %30 = arith.addf %28, %29 : vector<17x32xf32>
    %31 = arith.truncf %30 : vector<17x32xf32> to vector<17x32xbf16>
    %c0_13 = arith.constant 0 : index
    %c0_14 = arith.constant 0 : index
    %c0_15 = arith.constant 0 : index
    %32 = vector.load %arg4[%c0_13, %c0_14, %c0_15] : memref<1x17x32xbf16, #tpu.memory_space<vmem>>, vector<1x17x32xbf16>
    %33 = vector.shape_cast %32 : vector<1x17x32xbf16> to vector<17x32xbf16>
    %34 = vector.shape_cast %31 : vector<17x32xbf16> to vector<1x17x32xbf16>
    tpu.vector_store %arg4[%c0_13, %c0_14, %c0_15], %34 {strides = array<i32>} : memref<1x17x32xbf16, #tpu.memory_space<vmem>>, vector<1x17x32xbf16>,
    return
  }
  func.func @transform_0(%arg0: i32) -> (i32, i32, i32) {
    %c0_i32 = arith.constant 0 : i32
    %c0_i32_0 = arith.constant 0 : i32
    %c0_i32_1 = arith.constant 0 : i32
    return %arg0, %c0_i32, %c0_i32_0 : i32, i32, i32
  }
  func.func @transform_1(%arg0: i32) -> (i32, i32, i32) {
    %c0_i32 = arith.constant 0 : i32
    %c0_i32_0 = arith.constant 0 : i32
    %c0_i32_1 = arith.constant 0 : i32
    return %arg0, %c0_i32, %c0_i32_0 : i32, i32, i32
  }
  func.func @transform_2(%arg0: i32) -> (i32, i32, i32) {
    %c0_i32 = arith.constant 0 : i32
    %c0_i32_0 = arith.constant 0 : i32
    %c0_i32_1 = arith.constant 0 : i32
    return %arg0, %c0_i32, %c0_i32_0 : i32, i32, i32
  }
  func.func @transform_3(%arg0: i32) -> (i32, i32, i32) {
    %c0_i32 = arith.constant 0 : i32
    %c0_i32_0 = arith.constant 0 : i32
    %c0_i32_1 = arith.constant 0 : i32
    return %arg0, %c0_i32, %c0_i32_0 : i32, i32, i32
  }
}

module attributes {stable_mosaic.version = 11 : i64} {
  func.func @_linear_kernel(%arg0: i32, %arg1: i32, %arg2: i32, %arg3: memref<68x32xbf16, #tpu.memory_space<vmem>>, %arg4: memref<32x128xbf16, #tpu.memory_space<vmem>>, %arg5: memref<1x128xf32, #tpu.memory_space<vmem>>, %arg6: memref<68x128xbf16, #tpu.memory_space<vmem>>, %arg7: memref<68x128xf32, #tpu.memory_space<vmem>>) attributes {dimension_semantics = [#tpu.dimension_semantics<parallel>, #tpu.dimension_semantics<parallel>, #tpu.dimension_semantics<arbitrary>], iteration_bounds = array<i64: 1, 1, 1>, scalar_prefetch = 0 : i64, scratch_operands = 1 : i64, tpu.core_type = #tpu.core_type<tc>, window_params = [{transform_indices = @transform_0, window_bounds = array<i64: 68, 32>}, {transform_indices = @transform_1, window_bounds = array<i64: 32, 128>}, {transform_indices = @transform_2, window_bounds = array<i64: 1, 128>}, {transform_indices = @transform_3, window_bounds = array<i64: 68, 128>}]} {
    %c0_i32 = arith.constant 0 : i32
    %0 = arith.cmpi eq, %arg2, %c0_i32 : i32
    %1 = arith.extui %0 : i1 to i32
    %c0_i32_0 = arith.constant 0 : i32
    %2 = arith.cmpi ne, %1, %c0_i32_0 : i32
    scf.if %2 {
      %cst_10 = arith.constant 0.000000e+00 : f32
      %12 = vector.broadcast %cst_10 : f32 to vector<68x128xf32>
      %c0_11 = arith.constant 0 : index
      %c0_12 = arith.constant 0 : index
      %13 = vector.load %arg7[%c0_11, %c0_12] : memref<68x128xf32, #tpu.memory_space<vmem>>, vector<68x128xf32>
      tpu.vector_store %arg7[%c0_11, %c0_12], %12 {strides = array<i32>} : memref<68x128xf32, #tpu.memory_space<vmem>>, vector<68x128xf32>,
    } else {
    }
    %c0 = arith.constant 0 : index
    %c0_1 = arith.constant 0 : index
    %3 = vector.load %arg7[%c0, %c0_1] : memref<68x128xf32, #tpu.memory_space<vmem>>, vector<68x128xf32>
    %c0_2 = arith.constant 0 : index
    %c0_3 = arith.constant 0 : index
    %4 = vector.load %arg3[%c0_2, %c0_3] : memref<68x32xbf16, #tpu.memory_space<vmem>>, vector<68x32xbf16>
    %c0_4 = arith.constant 0 : index
    %c0_5 = arith.constant 0 : index
    %5 = vector.load %arg4[%c0_4, %c0_5] : memref<32x128xbf16, #tpu.memory_space<vmem>>, vector<32x128xbf16>
    %cst = arith.constant dense<0.000000e+00> : vector<68x128xf32>
    %6 = tpu.matmul %4, %5, %cst {dimension_numbers = #tpu.dot_dimension_numbers<[1], [0], [0], [1], [0, 0, 1, 1], [], []>} : vector<68x32xbf16>, vector<32x128xbf16>, vector<68x128xf32> -> vector<68x128xf32>
    %7 = arith.addf %3, %6 : vector<68x128xf32>
    %c0_6 = arith.constant 0 : index
    %c0_7 = arith.constant 0 : index
    %8 = vector.load %arg7[%c0_6, %c0_7] : memref<68x128xf32, #tpu.memory_space<vmem>>, vector<68x128xf32>
    tpu.vector_store %arg7[%c0_6, %c0_7], %7 {strides = array<i32>} : memref<68x128xf32, #tpu.memory_space<vmem>>, vector<68x128xf32>,
    %c0_i32_8 = arith.constant 0 : i32
    %9 = arith.cmpi eq, %arg2, %c0_i32_8 : i32
    %10 = arith.extui %9 : i1 to i32
    %c0_i32_9 = arith.constant 0 : i32
    %11 = arith.cmpi ne, %10, %c0_i32_9 : i32
    scf.if %11 {
      %c0_10 = arith.constant 0 : index
      %c0_11 = arith.constant 0 : index
      %12 = vector.load %arg7[%c0_10, %c0_11] : memref<68x128xf32, #tpu.memory_space<vmem>>, vector<68x128xf32>
      %c0_12 = arith.constant 0 : index
      %c0_13 = arith.constant 0 : index
      %13 = vector.load %arg5[%c0_12, %c0_13] : memref<1x128xf32, #tpu.memory_space<vmem>>, vector<1x128xf32>
      %14 = vector.broadcast %13 : vector<1x128xf32> to vector<68x128xf32>
      %15 = arith.addf %12, %14 : vector<68x128xf32>
      %16 = arith.truncf %15 : vector<68x128xf32> to vector<68x128xbf16>
      %c0_14 = arith.constant 0 : index
      %c0_15 = arith.constant 0 : index
      %17 = vector.load %arg6[%c0_14, %c0_15] : memref<68x128xbf16, #tpu.memory_space<vmem>>, vector<68x128xbf16>
      tpu.vector_store %arg6[%c0_14, %c0_15], %16 {strides = array<i32>} : memref<68x128xbf16, #tpu.memory_space<vmem>>, vector<68x128xbf16>,
    } else {
    }
    return
  }
  func.func @transform_0(%arg0: i32, %arg1: i32, %arg2: i32) -> (i32, i32) {
    %c0_i32 = arith.constant 0 : i32
    return %arg0, %arg2 : i32, i32
  }
  func.func @transform_1(%arg0: i32, %arg1: i32, %arg2: i32) -> (i32, i32) {
    %c0_i32 = arith.constant 0 : i32
    return %arg2, %arg1 : i32, i32
  }
  func.func @transform_2(%arg0: i32, %arg1: i32, %arg2: i32) -> (i32, i32) {
    %c0_i32 = arith.constant 0 : i32
    %c0_i32_0 = arith.constant 0 : i32
    return %c0_i32, %arg1 : i32, i32
  }
  func.func @transform_3(%arg0: i32, %arg1: i32, %arg2: i32) -> (i32, i32) {
    %c0_i32 = arith.constant 0 : i32
    return %arg0, %arg1 : i32, i32
  }
}

module attributes {stable_mosaic.version = 11 : i64} {
  func.func @_flash_attn_kernel(%arg0: i32, %arg1: i32, %arg2: i32, %arg3: memref<1x40x96xbf16, #tpu.memory_space<vmem>>, %arg4: memref<1x40x96xbf16, #tpu.memory_space<vmem>>, %arg5: memref<1x40x32xbf16, #tpu.memory_space<vmem>>, %arg6: memref<40x4xf32, #tpu.memory_space<vmem>>, %arg7: memref<40x4xf32, #tpu.memory_space<vmem>>, %arg8: memref<40x32xf32, #tpu.memory_space<vmem>>) attributes {dimension_semantics = [#tpu.dimension_semantics<parallel>, #tpu.dimension_semantics<parallel>, #tpu.dimension_semantics<arbitrary>], iteration_bounds = array<i64: 2, 1, 1>, scalar_prefetch = 0 : i64, scratch_operands = 3 : i64, tpu.core_type = #tpu.core_type<tc>, window_params = [{transform_indices = @transform_0, window_bounds = array<i64: 1, 40, 96>}, {transform_indices = @transform_1, window_bounds = array<i64: 1, 40, 96>}, {transform_indices = @transform_2, window_bounds = array<i64: 1, 40, 32>}]} {
    %c0_i32 = arith.constant 0 : i32
    %0 = arith.cmpi eq, %arg2, %c0_i32 : i32
    %1 = arith.extui %0 : i1 to i32
    %c0_i32_0 = arith.constant 0 : i32
    %2 = arith.cmpi ne, %1, %c0_i32_0 : i32
    scf.if %2 {
      %cst_71 = arith.constant -1.000000e+30 : f32
      %146 = vector.broadcast %cst_71 : f32 to vector<40x4xf32>
      %c0_72 = arith.constant 0 : index
      %c0_73 = arith.constant 0 : index
      %147 = vector.load %arg6[%c0_72, %c0_73] : memref<40x4xf32, #tpu.memory_space<vmem>>, vector<40x4xf32>
      tpu.vector_store %arg6[%c0_72, %c0_73], %146 {strides = array<i32>} : memref<40x4xf32, #tpu.memory_space<vmem>>, vector<40x4xf32>,
      %cst_74 = arith.constant 0.000000e+00 : f32
      %148 = vector.broadcast %cst_74 : f32 to vector<40x4xf32>
      %c0_75 = arith.constant 0 : index
      %c0_76 = arith.constant 0 : index
      %149 = vector.load %arg7[%c0_75, %c0_76] : memref<40x4xf32, #tpu.memory_space<vmem>>, vector<40x4xf32>
      tpu.vector_store %arg7[%c0_75, %c0_76], %148 {strides = array<i32>} : memref<40x4xf32, #tpu.memory_space<vmem>>, vector<40x4xf32>,
      %cst_77 = arith.constant 0.000000e+00 : f32
      %150 = vector.broadcast %cst_77 : f32 to vector<40x32xf32>
      %c0_78 = arith.constant 0 : index
      %c0_79 = arith.constant 0 : index
      %151 = vector.load %arg8[%c0_78, %c0_79] : memref<40x32xf32, #tpu.memory_space<vmem>>, vector<40x32xf32>
      tpu.vector_store %arg8[%c0_78, %c0_79], %150 {strides = array<i32>} : memref<40x32xf32, #tpu.memory_space<vmem>>, vector<40x32xf32>,
    } else {
    }
    %c0 = arith.constant 0 : index
    %c0_1 = arith.constant 0 : index
    %c0_2 = arith.constant 0 : index
    %3 = vector.load %arg3[%c0, %c0_1, %c0_2] : memref<1x40x96xbf16, #tpu.memory_space<vmem>>, vector<1x40x96xbf16>
    %4 = vector.shape_cast %3 : vector<1x40x96xbf16> to vector<40x96xbf16>
    %c0_3 = arith.constant 0 : index
    %c0_4 = arith.constant 0 : index
    %c0_5 = arith.constant 0 : index
    %5 = vector.load %arg4[%c0_3, %c0_4, %c0_5] : memref<1x40x96xbf16, #tpu.memory_space<vmem>>, vector<1x40x96xbf16>
    %6 = vector.shape_cast %5 : vector<1x40x96xbf16> to vector<40x96xbf16>
    %7 = vector.extract_strided_slice %4 {offsets = [0, 0], sizes = [40, 32], strides = [1, 1]} : vector<40x96xbf16> to vector<40x32xbf16>
    %8 = vector.extract_strided_slice %6 {offsets = [0, 32], sizes = [40, 32], strides = [1, 1]} : vector<40x96xbf16> to vector<40x32xbf16>
    %9 = vector.extract_strided_slice %6 {offsets = [0, 64], sizes = [40, 32], strides = [1, 1]} : vector<40x96xbf16> to vector<40x32xbf16>
    %c40_i32 = arith.constant 40 : i32
    %10 = arith.muli %arg2, %c40_i32 : i32
    %11 = tpu.iota {dimensions = array<i32: 1>} : vector<1x40xi32>
    %12 = vector.broadcast %10 : i32 to vector<1x40xi32>
    %13 = arith.addi %12, %11 : vector<1x40xi32>
    %c34_i32 = arith.constant 34 : i32
    %14 = vector.broadcast %c34_i32 : i32 to vector<1x40xi32>
    %15 = arith.cmpi slt, %13, %14 : vector<1x40xi32>
    %cst = arith.constant 0.000000e+00 : f32
    %cst_6 = arith.constant -1.000000e+30 : f32
    %16 = vector.broadcast %cst : f32 to vector<1x40xf32>
    %17 = vector.broadcast %cst_6 : f32 to vector<1x40xf32>
    %18 = arith.select %15, %16, %17 : vector<1x40xi1>, vector<1x40xf32>
    %19 = vector.extract_strided_slice %7 {offsets = [0, 0], sizes = [40, 8], strides = [1, 1]} : vector<40x32xbf16> to vector<40x8xbf16>
    %20 = vector.extract_strided_slice %8 {offsets = [0, 0], sizes = [40, 8], strides = [1, 1]} : vector<40x32xbf16> to vector<40x8xbf16>
    %cst_7 = arith.constant dense<0.000000e+00> : vector<40x40xf32>
    %21 = tpu.matmul %19, %20, %cst_7 {dimension_numbers = #tpu.dot_dimension_numbers<[1], [1], [0], [0], [0, 0, 1, 0], [], []>} : vector<40x8xbf16>, vector<40x8xbf16>, vector<40x40xf32> -> vector<40x40xf32>
    %cst_8 = arith.constant 0.353553385 : f32
    %22 = vector.broadcast %cst_8 : f32 to vector<40x40xf32>
    %23 = arith.mulf %21, %22 : vector<40x40xf32>
    %24 = vector.broadcast %18 : vector<1x40xf32> to vector<40x40xf32>
    %25 = arith.addf %23, %24 : vector<40x40xf32>
    %c0_9 = arith.constant 0 : index
    %c0_10 = arith.constant 0 : index
    %26 = vector.load %arg6[%c0_9, %c0_10] : memref<40x4xf32, #tpu.memory_space<vmem>>, vector<40x1xf32>
    %cst_11 = arith.constant dense<0xFF800000> : vector<40xf32>
    %27 = vector.multi_reduction <maximumf>, %25, %cst_11 [1] : vector<40x40xf32> to vector<40xf32>
    %28 = vector.shape_cast %27 : vector<40xf32> to vector<40x1xf32>
    %29 = arith.maximumf %26, %28 : vector<40x1xf32>
    %30 = arith.subf %26, %29 : vector<40x1xf32>
    %31 = math.exp %30 : vector<40x1xf32>
    %32 = vector.broadcast %29 : vector<40x1xf32> to vector<40x40xf32>
    %33 = arith.subf %25, %32 : vector<40x40xf32>
    %34 = math.exp %33 : vector<40x40xf32>
    %c0_12 = arith.constant 0 : index
    %c0_13 = arith.constant 0 : index
    %35 = vector.load %arg7[%c0_12, %c0_13] : memref<40x4xf32, #tpu.memory_space<vmem>>, vector<40x1xf32>
    %36 = arith.mulf %31, %35 : vector<40x1xf32>
    %cst_14 = arith.constant dense<0.000000e+00> : vector<40xf32>
    %37 = vector.multi_reduction <add>, %34, %cst_14 [1] : vector<40x40xf32> to vector<40xf32>
    %38 = vector.shape_cast %37 : vector<40xf32> to vector<40x1xf32>
    %39 = arith.addf %36, %38 : vector<40x1xf32>
    %c0_15 = arith.constant 0 : index
    %c0_16 = arith.constant 0 : index
    %40 = vector.load %arg7[%c0_15, %c0_16] : memref<40x4xf32, #tpu.memory_space<vmem>>, vector<40x1xf32>
    tpu.vector_store %arg7[%c0_15, %c0_16], %39 {strides = array<i32>} : memref<40x4xf32, #tpu.memory_space<vmem>>, vector<40x1xf32>,
    %c0_17 = arith.constant 0 : index
    %c0_18 = arith.constant 0 : index
    %41 = vector.load %arg8[%c0_17, %c0_18] : memref<40x32xf32, #tpu.memory_space<vmem>>, vector<40x8xf32>
    %42 = vector.broadcast %31 : vector<40x1xf32> to vector<40x8xf32>
    %43 = arith.mulf %42, %41 : vector<40x8xf32>
    %44 = arith.truncf %34 : vector<40x40xf32> to vector<40x40xbf16>
    %45 = vector.extract_strided_slice %9 {offsets = [0, 0], sizes = [40, 8], strides = [1, 1]} : vector<40x32xbf16> to vector<40x8xbf16>
    %cst_19 = arith.constant dense<0.000000e+00> : vector<40x8xf32>
    %46 = tpu.matmul %44, %45, %cst_19 {dimension_numbers = #tpu.dot_dimension_numbers<[1], [0], [0], [1], [0, 0, 1, 1], [], []>} : vector<40x40xbf16>, vector<40x8xbf16>, vector<40x8xf32> -> vector<40x8xf32>
    %47 = arith.addf %43, %46 : vector<40x8xf32>
    %c0_20 = arith.constant 0 : index
    %c0_21 = arith.constant 0 : index
    %48 = vector.load %arg8[%c0_20, %c0_21] : memref<40x32xf32, #tpu.memory_space<vmem>>, vector<40x8xf32>
    tpu.vector_store %arg8[%c0_20, %c0_21], %47 {strides = array<i32>} : memref<40x32xf32, #tpu.memory_space<vmem>>, vector<40x8xf32>,
    %c0_22 = arith.constant 0 : index
    %c0_23 = arith.constant 0 : index
    %49 = vector.load %arg6[%c0_22, %c0_23] : memref<40x4xf32, #tpu.memory_space<vmem>>, vector<40x1xf32>
    tpu.vector_store %arg6[%c0_22, %c0_23], %29 {strides = array<i32>} : memref<40x4xf32, #tpu.memory_space<vmem>>, vector<40x1xf32>,
    %50 = vector.extract_strided_slice %7 {offsets = [0, 8], sizes = [40, 8], strides = [1, 1]} : vector<40x32xbf16> to vector<40x8xbf16>
    %51 = vector.extract_strided_slice %8 {offsets = [0, 8], sizes = [40, 8], strides = [1, 1]} : vector<40x32xbf16> to vector<40x8xbf16>
    %cst_24 = arith.constant dense<0.000000e+00> : vector<40x40xf32>
    %52 = tpu.matmul %50, %51, %cst_24 {dimension_numbers = #tpu.dot_dimension_numbers<[1], [1], [0], [0], [0, 0, 1, 0], [], []>} : vector<40x8xbf16>, vector<40x8xbf16>, vector<40x40xf32> -> vector<40x40xf32>
    %cst_25 = arith.constant 0.353553385 : f32
    %53 = vector.broadcast %cst_25 : f32 to vector<40x40xf32>
    %54 = arith.mulf %52, %53 : vector<40x40xf32>
    %55 = vector.broadcast %18 : vector<1x40xf32> to vector<40x40xf32>
    %56 = arith.addf %54, %55 : vector<40x40xf32>
    %c0_26 = arith.constant 0 : index
    %c1 = arith.constant 1 : index
    %57 = vector.load %arg6[%c0_26, %c1] : memref<40x4xf32, #tpu.memory_space<vmem>>, vector<40x1xf32>
    %cst_27 = arith.constant dense<0xFF800000> : vector<40xf32>
    %58 = vector.multi_reduction <maximumf>, %56, %cst_27 [1] : vector<40x40xf32> to vector<40xf32>
    %59 = vector.shape_cast %58 : vector<40xf32> to vector<40x1xf32>
    %60 = arith.maximumf %57, %59 : vector<40x1xf32>
    %61 = arith.subf %57, %60 : vector<40x1xf32>
    %62 = math.exp %61 : vector<40x1xf32>
    %63 = vector.broadcast %60 : vector<40x1xf32> to vector<40x40xf32>
    %64 = arith.subf %56, %63 : vector<40x40xf32>
    %65 = math.exp %64 : vector<40x40xf32>
    %c0_28 = arith.constant 0 : index
    %c1_29 = arith.constant 1 : index
    %66 = vector.load %arg7[%c0_28, %c1_29] : memref<40x4xf32, #tpu.memory_space<vmem>>, vector<40x1xf32>
    %67 = arith.mulf %62, %66 : vector<40x1xf32>
    %cst_30 = arith.constant dense<0.000000e+00> : vector<40xf32>
    %68 = vector.multi_reduction <add>, %65, %cst_30 [1] : vector<40x40xf32> to vector<40xf32>
    %69 = vector.shape_cast %68 : vector<40xf32> to vector<40x1xf32>
    %70 = arith.addf %67, %69 : vector<40x1xf32>
    %c0_31 = arith.constant 0 : index
    %c1_32 = arith.constant 1 : index
    %71 = vector.load %arg7[%c0_31, %c1_32] : memref<40x4xf32, #tpu.memory_space<vmem>>, vector<40x1xf32>
    tpu.vector_store %arg7[%c0_31, %c1_32], %70 {strides = array<i32>} : memref<40x4xf32, #tpu.memory_space<vmem>>, vector<40x1xf32>,
    %c0_33 = arith.constant 0 : index
    %c8 = arith.constant 8 : index
    %72 = vector.load %arg8[%c0_33, %c8] : memref<40x32xf32, #tpu.memory_space<vmem>>, vector<40x8xf32>
    %73 = vector.broadcast %62 : vector<40x1xf32> to vector<40x8xf32>
    %74 = arith.mulf %73, %72 : vector<40x8xf32>
    %75 = arith.truncf %65 : vector<40x40xf32> to vector<40x40xbf16>
    %76 = vector.extract_strided_slice %9 {offsets = [0, 8], sizes = [40, 8], strides = [1, 1]} : vector<40x32xbf16> to vector<40x8xbf16>
    %cst_34 = arith.constant dense<0.000000e+00> : vector<40x8xf32>
    %77 = tpu.matmul %75, %76, %cst_34 {dimension_numbers = #tpu.dot_dimension_numbers<[1], [0], [0], [1], [0, 0, 1, 1], [], []>} : vector<40x40xbf16>, vector<40x8xbf16>, vector<40x8xf32> -> vector<40x8xf32>
    %78 = arith.addf %74, %77 : vector<40x8xf32>
    %c0_35 = arith.constant 0 : index
    %c8_36 = arith.constant 8 : index
    %79 = vector.load %arg8[%c0_35, %c8_36] : memref<40x32xf32, #tpu.memory_space<vmem>>, vector<40x8xf32>
    tpu.vector_store %arg8[%c0_35, %c8_36], %78 {strides = array<i32>} : memref<40x32xf32, #tpu.memory_space<vmem>>, vector<40x8xf32>,
    %c0_37 = arith.constant 0 : index
    %c1_38 = arith.constant 1 : index
    %80 = vector.load %arg6[%c0_37, %c1_38] : memref<40x4xf32, #tpu.memory_space<vmem>>, vector<40x1xf32>
    tpu.vector_store %arg6[%c0_37, %c1_38], %60 {strides = array<i32>} : memref<40x4xf32, #tpu.memory_space<vmem>>, vector<40x1xf32>,
    %81 = vector.extract_strided_slice %7 {offsets = [0, 16], sizes = [40, 8], strides = [1, 1]} : vector<40x32xbf16> to vector<40x8xbf16>
    %82 = vector.extract_strided_slice %8 {offsets = [0, 16], sizes = [40, 8], strides = [1, 1]} : vector<40x32xbf16> to vector<40x8xbf16>
    %cst_39 = arith.constant dense<0.000000e+00> : vector<40x40xf32>
    %83 = tpu.matmul %81, %82, %cst_39 {dimension_numbers = #tpu.dot_dimension_numbers<[1], [1], [0], [0], [0, 0, 1, 0], [], []>} : vector<40x8xbf16>, vector<40x8xbf16>, vector<40x40xf32> -> vector<40x40xf32>
    %cst_40 = arith.constant 0.353553385 : f32
    %84 = vector.broadcast %cst_40 : f32 to vector<40x40xf32>
    %85 = arith.mulf %83, %84 : vector<40x40xf32>
    %86 = vector.broadcast %18 : vector<1x40xf32> to vector<40x40xf32>
    %87 = arith.addf %85, %86 : vector<40x40xf32>
    %c0_41 = arith.constant 0 : index
    %c2 = arith.constant 2 : index
    %88 = vector.load %arg6[%c0_41, %c2] : memref<40x4xf32, #tpu.memory_space<vmem>>, vector<40x1xf32>
    %cst_42 = arith.constant dense<0xFF800000> : vector<40xf32>
    %89 = vector.multi_reduction <maximumf>, %87, %cst_42 [1] : vector<40x40xf32> to vector<40xf32>
    %90 = vector.shape_cast %89 : vector<40xf32> to vector<40x1xf32>
    %91 = arith.maximumf %88, %90 : vector<40x1xf32>
    %92 = arith.subf %88, %91 : vector<40x1xf32>
    %93 = math.exp %92 : vector<40x1xf32>
    %94 = vector.broadcast %91 : vector<40x1xf32> to vector<40x40xf32>
    %95 = arith.subf %87, %94 : vector<40x40xf32>
    %96 = math.exp %95 : vector<40x40xf32>
    %c0_43 = arith.constant 0 : index
    %c2_44 = arith.constant 2 : index
    %97 = vector.load %arg7[%c0_43, %c2_44] : memref<40x4xf32, #tpu.memory_space<vmem>>, vector<40x1xf32>
    %98 = arith.mulf %93, %97 : vector<40x1xf32>
    %cst_45 = arith.constant dense<0.000000e+00> : vector<40xf32>
    %99 = vector.multi_reduction <add>, %96, %cst_45 [1] : vector<40x40xf32> to vector<40xf32>
    %100 = vector.shape_cast %99 : vector<40xf32> to vector<40x1xf32>
    %101 = arith.addf %98, %100 : vector<40x1xf32>
    %c0_46 = arith.constant 0 : index
    %c2_47 = arith.constant 2 : index
    %102 = vector.load %arg7[%c0_46, %c2_47] : memref<40x4xf32, #tpu.memory_space<vmem>>, vector<40x1xf32>
    tpu.vector_store %arg7[%c0_46, %c2_47], %101 {strides = array<i32>} : memref<40x4xf32, #tpu.memory_space<vmem>>, vector<40x1xf32>,
    %c0_48 = arith.constant 0 : index
    %c16 = arith.constant 16 : index
    %103 = vector.load %arg8[%c0_48, %c16] : memref<40x32xf32, #tpu.memory_space<vmem>>, vector<40x8xf32>
    %104 = vector.broadcast %93 : vector<40x1xf32> to vector<40x8xf32>
    %105 = arith.mulf %104, %103 : vector<40x8xf32>
    %106 = arith.truncf %96 : vector<40x40xf32> to vector<40x40xbf16>
    %107 = vector.extract_strided_slice %9 {offsets = [0, 16], sizes = [40, 8], strides = [1, 1]} : vector<40x32xbf16> to vector<40x8xbf16>
    %cst_49 = arith.constant dense<0.000000e+00> : vector<40x8xf32>
    %108 = tpu.matmul %106, %107, %cst_49 {dimension_numbers = #tpu.dot_dimension_numbers<[1], [0], [0], [1], [0, 0, 1, 1], [], []>} : vector<40x40xbf16>, vector<40x8xbf16>, vector<40x8xf32> -> vector<40x8xf32>
    %109 = arith.addf %105, %108 : vector<40x8xf32>
    %c0_50 = arith.constant 0 : index
    %c16_51 = arith.constant 16 : index
    %110 = vector.load %arg8[%c0_50, %c16_51] : memref<40x32xf32, #tpu.memory_space<vmem>>, vector<40x8xf32>
    tpu.vector_store %arg8[%c0_50, %c16_51], %109 {strides = array<i32>} : memref<40x32xf32, #tpu.memory_space<vmem>>, vector<40x8xf32>,
    %c0_52 = arith.constant 0 : index
    %c2_53 = arith.constant 2 : index
    %111 = vector.load %arg6[%c0_52, %c2_53] : memref<40x4xf32, #tpu.memory_space<vmem>>, vector<40x1xf32>
    tpu.vector_store %arg6[%c0_52, %c2_53], %91 {strides = array<i32>} : memref<40x4xf32, #tpu.memory_space<vmem>>, vector<40x1xf32>,
    %112 = vector.extract_strided_slice %7 {offsets = [0, 24], sizes = [40, 8], strides = [1, 1]} : vector<40x32xbf16> to vector<40x8xbf16>
    %113 = vector.extract_strided_slice %8 {offsets = [0, 24], sizes = [40, 8], strides = [1, 1]} : vector<40x32xbf16> to vector<40x8xbf16>
    %cst_54 = arith.constant dense<0.000000e+00> : vector<40x40xf32>
    %114 = tpu.matmul %112, %113, %cst_54 {dimension_numbers = #tpu.dot_dimension_numbers<[1], [1], [0], [0], [0, 0, 1, 0], [], []>} : vector<40x8xbf16>, vector<40x8xbf16>, vector<40x40xf32> -> vector<40x40xf32>
    %cst_55 = arith.constant 0.353553385 : f32
    %115 = vector.broadcast %cst_55 : f32 to vector<40x40xf32>
    %116 = arith.mulf %114, %115 : vector<40x40xf32>
    %117 = vector.broadcast %18 : vector<1x40xf32> to vector<40x40xf32>
    %118 = arith.addf %116, %117 : vector<40x40xf32>
    %c0_56 = arith.constant 0 : index
    %c3 = arith.constant 3 : index
    %119 = vector.load %arg6[%c0_56, %c3] : memref<40x4xf32, #tpu.memory_space<vmem>>, vector<40x1xf32>
    %cst_57 = arith.constant dense<0xFF800000> : vector<40xf32>
    %120 = vector.multi_reduction <maximumf>, %118, %cst_57 [1] : vector<40x40xf32> to vector<40xf32>
    %121 = vector.shape_cast %120 : vector<40xf32> to vector<40x1xf32>
    %122 = arith.maximumf %119, %121 : vector<40x1xf32>
    %123 = arith.subf %119, %122 : vector<40x1xf32>
    %124 = math.exp %123 : vector<40x1xf32>
    %125 = vector.broadcast %122 : vector<40x1xf32> to vector<40x40xf32>
    %126 = arith.subf %118, %125 : vector<40x40xf32>
    %127 = math.exp %126 : vector<40x40xf32>
    %c0_58 = arith.constant 0 : index
    %c3_59 = arith.constant 3 : index
    %128 = vector.load %arg7[%c0_58, %c3_59] : memref<40x4xf32, #tpu.memory_space<vmem>>, vector<40x1xf32>
    %129 = arith.mulf %124, %128 : vector<40x1xf32>
    %cst_60 = arith.constant dense<0.000000e+00> : vector<40xf32>
    %130 = vector.multi_reduction <add>, %127, %cst_60 [1] : vector<40x40xf32> to vector<40xf32>
    %131 = vector.shape_cast %130 : vector<40xf32> to vector<40x1xf32>
    %132 = arith.addf %129, %131 : vector<40x1xf32>
    %c0_61 = arith.constant 0 : index
    %c3_62 = arith.constant 3 : index
    %133 = vector.load %arg7[%c0_61, %c3_62] : memref<40x4xf32, #tpu.memory_space<vmem>>, vector<40x1xf32>
    tpu.vector_store %arg7[%c0_61, %c3_62], %132 {strides = array<i32>} : memref<40x4xf32, #tpu.memory_space<vmem>>, vector<40x1xf32>,
    %c0_63 = arith.constant 0 : index
    %c24 = arith.constant 24 : index
    %134 = vector.load %arg8[%c0_63, %c24] : memref<40x32xf32, #tpu.memory_space<vmem>>, vector<40x8xf32>
    %135 = vector.broadcast %124 : vector<40x1xf32> to vector<40x8xf32>
    %136 = arith.mulf %135, %134 : vector<40x8xf32>
    %137 = arith.truncf %127 : vector<40x40xf32> to vector<40x40xbf16>
    %138 = vector.extract_strided_slice %9 {offsets = [0, 24], sizes = [40, 8], strides = [1, 1]} : vector<40x32xbf16> to vector<40x8xbf16>
    %cst_64 = arith.constant dense<0.000000e+00> : vector<40x8xf32>
    %139 = tpu.matmul %137, %138, %cst_64 {dimension_numbers = #tpu.dot_dimension_numbers<[1], [0], [0], [1], [0, 0, 1, 1], [], []>} : vector<40x40xbf16>, vector<40x8xbf16>, vector<40x8xf32> -> vector<40x8xf32>
    %140 = arith.addf %136, %139 : vector<40x8xf32>
    %c0_65 = arith.constant 0 : index
    %c24_66 = arith.constant 24 : index
    %141 = vector.load %arg8[%c0_65, %c24_66] : memref<40x32xf32, #tpu.memory_space<vmem>>, vector<40x8xf32>
    tpu.vector_store %arg8[%c0_65, %c24_66], %140 {strides = array<i32>} : memref<40x32xf32, #tpu.memory_space<vmem>>, vector<40x8xf32>,
    %c0_67 = arith.constant 0 : index
    %c3_68 = arith.constant 3 : index
    %142 = vector.load %arg6[%c0_67, %c3_68] : memref<40x4xf32, #tpu.memory_space<vmem>>, vector<40x1xf32>
    tpu.vector_store %arg6[%c0_67, %c3_68], %122 {strides = array<i32>} : memref<40x4xf32, #tpu.memory_space<vmem>>, vector<40x1xf32>,
    %c0_i32_69 = arith.constant 0 : i32
    %143 = arith.cmpi eq, %arg2, %c0_i32_69 : i32
    %144 = arith.extui %143 : i1 to i32
    %c0_i32_70 = arith.constant 0 : i32
    %145 = arith.cmpi ne, %144, %c0_i32_70 : i32
    scf.if %145 {
      %c0_71 = arith.constant 0 : index
      %c0_72 = arith.constant 0 : index
      %146 = vector.load %arg8[%c0_71, %c0_72] : memref<40x32xf32, #tpu.memory_space<vmem>>, vector<40x8xf32>
      %c0_73 = arith.constant 0 : index
      %c0_74 = arith.constant 0 : index
      %147 = vector.load %arg7[%c0_73, %c0_74] : memref<40x4xf32, #tpu.memory_space<vmem>>, vector<40x1xf32>
      %148 = tpu.reciprocal %147 {approx = true} : vector<40x1xf32> -> vector<40x1xf32>
      %149 = vector.broadcast %148 : vector<40x1xf32> to vector<40x8xf32>
      %150 = arith.mulf %146, %149 : vector<40x8xf32>
      %c0_75 = arith.constant 0 : index
      %c0_76 = arith.constant 0 : index
      %151 = vector.load %arg8[%c0_75, %c0_76] : memref<40x32xf32, #tpu.memory_space<vmem>>, vector<40x8xf32>
      tpu.vector_store %arg8[%c0_75, %c0_76], %150 {strides = array<i32>} : memref<40x32xf32, #tpu.memory_space<vmem>>, vector<40x8xf32>,
      %c0_77 = arith.constant 0 : index
      %c8_78 = arith.constant 8 : index
      %152 = vector.load %arg8[%c0_77, %c8_78] : memref<40x32xf32, #tpu.memory_space<vmem>>, vector<40x8xf32>
      %c0_79 = arith.constant 0 : index
      %c1_80 = arith.constant 1 : index
      %153 = vector.load %arg7[%c0_79, %c1_80] : memref<40x4xf32, #tpu.memory_space<vmem>>, vector<40x1xf32>
      %154 = tpu.reciprocal %153 {approx = true} : vector<40x1xf32> -> vector<40x1xf32>
      %155 = vector.broadcast %154 : vector<40x1xf32> to vector<40x8xf32>
      %156 = arith.mulf %152, %155 : vector<40x8xf32>
      %c0_81 = arith.constant 0 : index
      %c8_82 = arith.constant 8 : index
      %157 = vector.load %arg8[%c0_81, %c8_82] : memref<40x32xf32, #tpu.memory_space<vmem>>, vector<40x8xf32>
      tpu.vector_store %arg8[%c0_81, %c8_82], %156 {strides = array<i32>} : memref<40x32xf32, #tpu.memory_space<vmem>>, vector<40x8xf32>,
      %c0_83 = arith.constant 0 : index
      %c16_84 = arith.constant 16 : index
      %158 = vector.load %arg8[%c0_83, %c16_84] : memref<40x32xf32, #tpu.memory_space<vmem>>, vector<40x8xf32>
      %c0_85 = arith.constant 0 : index
      %c2_86 = arith.constant 2 : index
      %159 = vector.load %arg7[%c0_85, %c2_86] : memref<40x4xf32, #tpu.memory_space<vmem>>, vector<40x1xf32>
      %160 = tpu.reciprocal %159 {approx = true} : vector<40x1xf32> -> vector<40x1xf32>
      %161 = vector.broadcast %160 : vector<40x1xf32> to vector<40x8xf32>
      %162 = arith.mulf %158, %161 : vector<40x8xf32>
      %c0_87 = arith.constant 0 : index
      %c16_88 = arith.constant 16 : index
      %163 = vector.load %arg8[%c0_87, %c16_88] : memref<40x32xf32, #tpu.memory_space<vmem>>, vector<40x8xf32>
      tpu.vector_store %arg8[%c0_87, %c16_88], %162 {strides = array<i32>} : memref<40x32xf32, #tpu.memory_space<vmem>>, vector<40x8xf32>,
      %c0_89 = arith.constant 0 : index
      %c24_90 = arith.constant 24 : index
      %164 = vector.load %arg8[%c0_89, %c24_90] : memref<40x32xf32, #tpu.memory_space<vmem>>, vector<40x8xf32>
      %c0_91 = arith.constant 0 : index
      %c3_92 = arith.constant 3 : index
      %165 = vector.load %arg7[%c0_91, %c3_92] : memref<40x4xf32, #tpu.memory_space<vmem>>, vector<40x1xf32>
      %166 = tpu.reciprocal %165 {approx = true} : vector<40x1xf32> -> vector<40x1xf32>
      %167 = vector.broadcast %166 : vector<40x1xf32> to vector<40x8xf32>
      %168 = arith.mulf %164, %167 : vector<40x8xf32>
      %c0_93 = arith.constant 0 : index
      %c24_94 = arith.constant 24 : index
      %169 = vector.load %arg8[%c0_93, %c24_94] : memref<40x32xf32, #tpu.memory_space<vmem>>, vector<40x8xf32>
      tpu.vector_store %arg8[%c0_93, %c24_94], %168 {strides = array<i32>} : memref<40x32xf32, #tpu.memory_space<vmem>>, vector<40x8xf32>,
      %c0_95 = arith.constant 0 : index
      %c0_96 = arith.constant 0 : index
      %170 = vector.load %arg8[%c0_95, %c0_96] : memref<40x32xf32, #tpu.memory_space<vmem>>, vector<40x32xf32>
      %171 = arith.truncf %170 : vector<40x32xf32> to vector<40x32xbf16>
      %c0_97 = arith.constant 0 : index
      %c0_98 = arith.constant 0 : index
      %c0_99 = arith.constant 0 : index
      %172 = vector.load %arg5[%c0_97, %c0_98, %c0_99] : memref<1x40x32xbf16, #tpu.memory_space<vmem>>, vector<1x40x32xbf16>
      %173 = vector.shape_cast %172 : vector<1x40x32xbf16> to vector<40x32xbf16>
      %174 = vector.shape_cast %171 : vector<40x32xbf16> to vector<1x40x32xbf16>
      tpu.vector_store %arg5[%c0_97, %c0_98, %c0_99], %174 {strides = array<i32>} : memref<1x40x32xbf16, #tpu.memory_space<vmem>>, vector<1x40x32xbf16>,
    } else {
    }
    return
  }
  func.func @transform_0(%arg0: i32, %arg1: i32, %arg2: i32) -> (i32, i32, i32) {
    %c0_i32 = arith.constant 0 : i32
    %c0_i32_0 = arith.constant 0 : i32
    return %arg0, %arg1, %c0_i32 : i32, i32, i32
  }
  func.func @transform_1(%arg0: i32, %arg1: i32, %arg2: i32) -> (i32, i32, i32) {
    %c0_i32 = arith.constant 0 : i32
    %c0_i32_0 = arith.constant 0 : i32
    return %arg0, %arg2, %c0_i32 : i32, i32, i32
  }
  func.func @transform_2(%arg0: i32, %arg1: i32, %arg2: i32) -> (i32, i32, i32) {
    %c0_i32 = arith.constant 0 : i32
    %c0_i32_0 = arith.constant 0 : i32
    return %arg0, %arg1, %c0_i32 : i32, i32, i32
  }
}

module attributes {stable_mosaic.version = 11 : i64} {
  func.func @_linear_kernel(%arg0: i32, %arg1: i32, %arg2: i32, %arg3: memref<68x32xbf16, #tpu.memory_space<vmem>>, %arg4: memref<32x128xbf16, #tpu.memory_space<vmem>>, %arg5: memref<1x128xf32, #tpu.memory_space<vmem>>, %arg6: memref<68x128xbf16, #tpu.memory_space<vmem>>, %arg7: memref<68x128xf32, #tpu.memory_space<vmem>>) attributes {dimension_semantics = [#tpu.dimension_semantics<parallel>, #tpu.dimension_semantics<parallel>, #tpu.dimension_semantics<arbitrary>], iteration_bounds = array<i64: 1, 1, 1>, scalar_prefetch = 0 : i64, scratch_operands = 1 : i64, tpu.core_type = #tpu.core_type<tc>, window_params = [{transform_indices = @transform_0, window_bounds = array<i64: 68, 32>}, {transform_indices = @transform_1, window_bounds = array<i64: 32, 128>}, {transform_indices = @transform_2, window_bounds = array<i64: 1, 128>}, {transform_indices = @transform_3, window_bounds = array<i64: 68, 128>}]} {
    %c0_i32 = arith.constant 0 : i32
    %0 = arith.cmpi eq, %arg2, %c0_i32 : i32
    %1 = arith.extui %0 : i1 to i32
    %c0_i32_0 = arith.constant 0 : i32
    %2 = arith.cmpi ne, %1, %c0_i32_0 : i32
    scf.if %2 {
      %cst_10 = arith.constant 0.000000e+00 : f32
      %12 = vector.broadcast %cst_10 : f32 to vector<68x128xf32>
      %c0_11 = arith.constant 0 : index
      %c0_12 = arith.constant 0 : index
      %13 = vector.load %arg7[%c0_11, %c0_12] : memref<68x128xf32, #tpu.memory_space<vmem>>, vector<68x128xf32>
      tpu.vector_store %arg7[%c0_11, %c0_12], %12 {strides = array<i32>} : memref<68x128xf32, #tpu.memory_space<vmem>>, vector<68x128xf32>,
    } else {
    }
    %c0 = arith.constant 0 : index
    %c0_1 = arith.constant 0 : index
    %3 = vector.load %arg7[%c0, %c0_1] : memref<68x128xf32, #tpu.memory_space<vmem>>, vector<68x128xf32>
    %c0_2 = arith.constant 0 : index
    %c0_3 = arith.constant 0 : index
    %4 = vector.load %arg3[%c0_2, %c0_3] : memref<68x32xbf16, #tpu.memory_space<vmem>>, vector<68x32xbf16>
    %c0_4 = arith.constant 0 : index
    %c0_5 = arith.constant 0 : index
    %5 = vector.load %arg4[%c0_4, %c0_5] : memref<32x128xbf16, #tpu.memory_space<vmem>>, vector<32x128xbf16>
    %cst = arith.constant dense<0.000000e+00> : vector<68x128xf32>
    %6 = tpu.matmul %4, %5, %cst {dimension_numbers = #tpu.dot_dimension_numbers<[1], [0], [0], [1], [0, 0, 1, 1], [], []>} : vector<68x32xbf16>, vector<32x128xbf16>, vector<68x128xf32> -> vector<68x128xf32>
    %7 = arith.addf %3, %6 : vector<68x128xf32>
    %c0_6 = arith.constant 0 : index
    %c0_7 = arith.constant 0 : index
    %8 = vector.load %arg7[%c0_6, %c0_7] : memref<68x128xf32, #tpu.memory_space<vmem>>, vector<68x128xf32>
    tpu.vector_store %arg7[%c0_6, %c0_7], %7 {strides = array<i32>} : memref<68x128xf32, #tpu.memory_space<vmem>>, vector<68x128xf32>,
    %c0_i32_8 = arith.constant 0 : i32
    %9 = arith.cmpi eq, %arg2, %c0_i32_8 : i32
    %10 = arith.extui %9 : i1 to i32
    %c0_i32_9 = arith.constant 0 : i32
    %11 = arith.cmpi ne, %10, %c0_i32_9 : i32
    scf.if %11 {
      %c0_10 = arith.constant 0 : index
      %c0_11 = arith.constant 0 : index
      %12 = vector.load %arg7[%c0_10, %c0_11] : memref<68x128xf32, #tpu.memory_space<vmem>>, vector<68x128xf32>
      %c0_12 = arith.constant 0 : index
      %c0_13 = arith.constant 0 : index
      %13 = vector.load %arg5[%c0_12, %c0_13] : memref<1x128xf32, #tpu.memory_space<vmem>>, vector<1x128xf32>
      %14 = vector.broadcast %13 : vector<1x128xf32> to vector<68x128xf32>
      %15 = arith.addf %12, %14 : vector<68x128xf32>
      %cst_14 = arith.constant 5.000000e-01 : f32
      %16 = vector.broadcast %cst_14 : f32 to vector<68x128xf32>
      %17 = arith.mulf %16, %15 : vector<68x128xf32>
      %cst_15 = arith.constant 0.707106769 : f32
      %18 = vector.broadcast %cst_15 : f32 to vector<68x128xf32>
      %19 = arith.mulf %15, %18 : vector<68x128xf32>
      %cst_16 = arith.constant 0.000000e+00 : f32
      %20 = vector.broadcast %cst_16 : f32 to vector<68x128xf32>
      %21 = arith.cmpf oge, %19, %20 : vector<68x128xf32>
      %cst_17 = arith.constant 1.000000e+00 : f32
      %cst_18 = arith.constant -1.000000e+00 : f32
      %22 = vector.broadcast %cst_17 : f32 to vector<68x128xf32>
      %23 = vector.broadcast %cst_18 : f32 to vector<68x128xf32>
      %24 = arith.select %21, %22, %23 : vector<68x128xi1>, vector<68x128xf32>
      %25 = math.absf %19 : vector<68x128xf32>
      %cst_19 = arith.constant 0.327591091 : f32
      %26 = vector.broadcast %cst_19 : f32 to vector<68x128xf32>
      %27 = arith.mulf %26, %25 : vector<68x128xf32>
      %cst_20 = arith.constant 1.000000e+00 : f32
      %28 = vector.broadcast %cst_20 : f32 to vector<68x128xf32>
      %29 = arith.addf %28, %27 : vector<68x128xf32>
      %cst_21 = arith.constant 1.000000e+00 : f32
      %30 = vector.broadcast %cst_21 : f32 to vector<68x128xf32>
      %31 = arith.divf %30, %29 : vector<68x128xf32>
      %cst_22 = arith.constant 1.06140542 : f32
      %32 = vector.broadcast %cst_22 : f32 to vector<68x128xf32>
      %33 = arith.mulf %32, %31 : vector<68x128xf32>
      %cst_23 = arith.constant -1.45315206 : f32
      %34 = vector.broadcast %cst_23 : f32 to vector<68x128xf32>
      %35 = arith.addf %33, %34 : vector<68x128xf32>
      %36 = arith.mulf %35, %31 : vector<68x128xf32>
      %cst_24 = arith.constant 1.42141378 : f32
      %37 = vector.broadcast %cst_24 : f32 to vector<68x128xf32>
      %38 = arith.addf %36, %37 : vector<68x128xf32>
      %39 = arith.mulf %38, %31 : vector<68x128xf32>
      %cst_25 = arith.constant -0.284496725 : f32
      %40 = vector.broadcast %cst_25 : f32 to vector<68x128xf32>
      %41 = arith.addf %39, %40 : vector<68x128xf32>
      %42 = arith.mulf %41, %31 : vector<68x128xf32>
      %cst_26 = arith.constant 0.254829586 : f32
      %43 = vector.broadcast %cst_26 : f32 to vector<68x128xf32>
      %44 = arith.addf %42, %43 : vector<68x128xf32>
      %45 = arith.mulf %44, %31 : vector<68x128xf32>
      %cst_27 = arith.constant 0.000000e+00 : f32
      %46 = vector.broadcast %cst_27 : f32 to vector<68x128xf32>
      %47 = arith.subf %46, %25 : vector<68x128xf32>
      %48 = arith.mulf %47, %25 : vector<68x128xf32>
      %49 = math.exp %48 : vector<68x128xf32>
      %50 = arith.mulf %45, %49 : vector<68x128xf32>
      %cst_28 = arith.constant 1.000000e+00 : f32
      %51 = vector.broadcast %cst_28 : f32 to vector<68x128xf32>
      %52 = arith.subf %51, %50 : vector<68x128xf32>
      %53 = arith.mulf %24, %52 : vector<68x128xf32>
      %cst_29 = arith.constant 1.000000e+00 : f32
      %54 = vector.broadcast %cst_29 : f32 to vector<68x128xf32>
      %55 = arith.addf %54, %53 : vector<68x128xf32>
      %56 = arith.mulf %17, %55 : vector<68x128xf32>
      %57 = arith.truncf %56 : vector<68x128xf32> to vector<68x128xbf16>
      %c0_30 = arith.constant 0 : index
      %c0_31 = arith.constant 0 : index
      %58 = vector.load %arg6[%c0_30, %c0_31] : memref<68x128xbf16, #tpu.memory_space<vmem>>, vector<68x128xbf16>
      tpu.vector_store %arg6[%c0_30, %c0_31], %57 {strides = array<i32>} : memref<68x128xbf16, #tpu.memory_space<vmem>>, vector<68x128xbf16>,
    } else {
    }
    return
  }
  func.func @transform_0(%arg0: i32, %arg1: i32, %arg2: i32) -> (i32, i32) {
    %c0_i32 = arith.constant 0 : i32
    return %arg0, %arg2 : i32, i32
  }
  func.func @transform_1(%arg0: i32, %arg1: i32, %arg2: i32) -> (i32, i32) {
    %c0_i32 = arith.constant 0 : i32
    return %arg2, %arg1 : i32, i32
  }
  func.func @transform_2(%arg0: i32, %arg1: i32, %arg2: i32) -> (i32, i32) {
    %c0_i32 = arith.constant 0 : i32
    %c0_i32_0 = arith.constant 0 : i32
    return %c0_i32, %arg1 : i32, i32
  }
  func.func @transform_3(%arg0: i32, %arg1: i32, %arg2: i32) -> (i32, i32) {
    %c0_i32 = arith.constant 0 : i32
    return %arg0, %arg1 : i32, i32
  }
}

module attributes {stable_mosaic.version = 11 : i64} {
  func.func @_gate_res_adaln_kernel(%arg0: i32, %arg1: memref<1x17x32xbf16, #tpu.memory_space<vmem>>, %arg2: memref<1x17x32xbf16, #tpu.memory_space<vmem>>, %arg3: memref<1x1x32xf32, #tpu.memory_space<vmem>>, %arg4: memref<1x1x32xf32, #tpu.memory_space<vmem>>, %arg5: memref<1x1x32xf32, #tpu.memory_space<vmem>>, %arg6: memref<1x17x32xbf16, #tpu.memory_space<vmem>>, %arg7: memref<1x17x32xbf16, #tpu.memory_space<vmem>>) attributes {dimension_semantics = [#tpu.dimension_semantics<parallel>], iteration_bounds = array<i64: 4>, scalar_prefetch = 0 : i64, scratch_operands = 0 : i64, tpu.core_type = #tpu.core_type<tc>, window_params = [{transform_indices = @transform_0, window_bounds = array<i64: 1, 17, 32>}, {transform_indices = @transform_1, window_bounds = array<i64: 1, 17, 32>}, {transform_indices = @transform_2, window_bounds = array<i64: 1, 1, 32>}, {transform_indices = @transform_3, window_bounds = array<i64: 1, 1, 32>}, {transform_indices = @transform_4, window_bounds = array<i64: 1, 1, 32>}, {transform_indices = @transform_5, window_bounds = array<i64: 1, 17, 32>}, {transform_indices = @transform_6, window_bounds = array<i64: 1, 17, 32>}]} {
    %c0 = arith.constant 0 : index
    %c0_0 = arith.constant 0 : index
    %c0_1 = arith.constant 0 : index
    %0 = vector.load %arg1[%c0, %c0_0, %c0_1] : memref<1x17x32xbf16, #tpu.memory_space<vmem>>, vector<1x17x32xbf16>
    %1 = vector.shape_cast %0 : vector<1x17x32xbf16> to vector<17x32xbf16>
    %2 = arith.extf %1 : vector<17x32xbf16> to vector<17x32xf32>
    %c0_2 = arith.constant 0 : index
    %c0_3 = arith.constant 0 : index
    %c0_4 = arith.constant 0 : index
    %3 = vector.load %arg2[%c0_2, %c0_3, %c0_4] : memref<1x17x32xbf16, #tpu.memory_space<vmem>>, vector<1x17x32xbf16>
    %4 = vector.shape_cast %3 : vector<1x17x32xbf16> to vector<17x32xbf16>
    %5 = arith.extf %4 : vector<17x32xbf16> to vector<17x32xf32>
    %c0_5 = arith.constant 0 : index
    %c0_6 = arith.constant 0 : index
    %c0_7 = arith.constant 0 : index
    %6 = vector.load %arg3[%c0_5, %c0_6, %c0_7] : memref<1x1x32xf32, #tpu.memory_space<vmem>>, vector<1x1x32xf32>
    %7 = vector.shape_cast %6 : vector<1x1x32xf32> to vector<1x32xf32>
    %8 = vector.broadcast %7 : vector<1x32xf32> to vector<17x32xf32>
    %9 = arith.mulf %8, %5 : vector<17x32xf32>
    %10 = arith.addf %2, %9 : vector<17x32xf32>
    %11 = arith.truncf %10 : vector<17x32xf32> to vector<17x32xbf16>
    %c0_8 = arith.constant 0 : index
    %c0_9 = arith.constant 0 : index
    %c0_10 = arith.constant 0 : index
    %12 = vector.load %arg6[%c0_8, %c0_9, %c0_10] : memref<1x17x32xbf16, #tpu.memory_space<vmem>>, vector<1x17x32xbf16>
    %13 = vector.shape_cast %12 : vector<1x17x32xbf16> to vector<17x32xbf16>
    %14 = vector.shape_cast %11 : vector<17x32xbf16> to vector<1x17x32xbf16>
    tpu.vector_store %arg6[%c0_8, %c0_9, %c0_10], %14 {strides = array<i32>} : memref<1x17x32xbf16, #tpu.memory_space<vmem>>, vector<1x17x32xbf16>,
    %cst = arith.constant dense<0.000000e+00> : vector<17xf32>
    %15 = vector.multi_reduction <add>, %10, %cst [1] : vector<17x32xf32> to vector<17xf32>
    %16 = vector.shape_cast %15 : vector<17xf32> to vector<17x1xf32>
    %cst_11 = arith.constant 3.200000e+01 : f32
    %17 = vector.broadcast %cst_11 : f32 to vector<17x1xf32>
    %18 = arith.divf %16, %17 : vector<17x1xf32>
    %19 = vector.broadcast %18 : vector<17x1xf32> to vector<17x32xf32>
    %20 = arith.subf %10, %19 : vector<17x32xf32>
    %21 = arith.mulf %20, %20 : vector<17x32xf32>
    %cst_12 = arith.constant dense<0.000000e+00> : vector<17xf32>
    %22 = vector.multi_reduction <add>, %21, %cst_12 [1] : vector<17x32xf32> to vector<17xf32>
    %23 = vector.shape_cast %22 : vector<17xf32> to vector<17x1xf32>
    %cst_13 = arith.constant 3.200000e+01 : f32
    %24 = vector.broadcast %cst_13 : f32 to vector<17x1xf32>
    %25 = arith.divf %23, %24 : vector<17x1xf32>
    %26 = vector.broadcast %18 : vector<17x1xf32> to vector<17x32xf32>
    %27 = arith.subf %10, %26 : vector<17x32xf32>
    %cst_14 = arith.constant 9.99999974E-6 : f32
    %28 = vector.broadcast %cst_14 : f32 to vector<17x1xf32>
    %29 = arith.addf %25, %28 : vector<17x1xf32>
    %30 = math.rsqrt %29 : vector<17x1xf32>
    %31 = vector.broadcast %30 : vector<17x1xf32> to vector<17x32xf32>
    %32 = arith.mulf %27, %31 : vector<17x32xf32>
    %c0_15 = arith.constant 0 : index
    %c0_16 = arith.constant 0 : index
    %c0_17 = arith.constant 0 : index
    %33 = vector.load %arg4[%c0_15, %c0_16, %c0_17] : memref<1x1x32xf32, #tpu.memory_space<vmem>>, vector<1x1x32xf32>
    %34 = vector.shape_cast %33 : vector<1x1x32xf32> to vector<1x32xf32>
    %c0_18 = arith.constant 0 : index
    %c0_19 = arith.constant 0 : index
    %c0_20 = arith.constant 0 : index
    %35 = vector.load %arg5[%c0_18, %c0_19, %c0_20] : memref<1x1x32xf32, #tpu.memory_space<vmem>>, vector<1x1x32xf32>
    %36 = vector.shape_cast %35 : vector<1x1x32xf32> to vector<1x32xf32>
    %cst_21 = arith.constant 1.000000e+00 : f32
    %37 = vector.broadcast %cst_21 : f32 to vector<1x32xf32>
    %38 = arith.addf %37, %36 : vector<1x32xf32>
    %39 = vector.broadcast %38 : vector<1x32xf32> to vector<17x32xf32>
    %40 = arith.mulf %32, %39 : vector<17x32xf32>
    %41 = vector.broadcast %34 : vector<1x32xf32> to vector<17x32xf32>
    %42 = arith.addf %40, %41 : vector<17x32xf32>
    %43 = arith.truncf %42 : vector<17x32xf32> to vector<17x32xbf16>
    %c0_22 = arith.constant 0 : index
    %c0_23 = arith.constant 0 : index
    %c0_24 = arith.constant 0 : index
    %44 = vector.load %arg7[%c0_22, %c0_23, %c0_24] : memref<1x17x32xbf16, #tpu.memory_space<vmem>>, vector<1x17x32xbf16>
    %45 = vector.shape_cast %44 : vector<1x17x32xbf16> to vector<17x32xbf16>
    %46 = vector.shape_cast %43 : vector<17x32xbf16> to vector<1x17x32xbf16>
    tpu.vector_store %arg7[%c0_22, %c0_23, %c0_24], %46 {strides = array<i32>} : memref<1x17x32xbf16, #tpu.memory_space<vmem>>, vector<1x17x32xbf16>,
    return
  }
  func.func @transform_0(%arg0: i32) -> (i32, i32, i32) {
    %c0_i32 = arith.constant 0 : i32
    %c0_i32_0 = arith.constant 0 : i32
    %c0_i32_1 = arith.constant 0 : i32
    return %arg0, %c0_i32, %c0_i32_0 : i32, i32, i32
  }
  func.func @transform_1(%arg0: i32) -> (i32, i32, i32) {
    %c0_i32 = arith.constant 0 : i32
    %c0_i32_0 = arith.constant 0 : i32
    %c0_i32_1 = arith.constant 0 : i32
    return %arg0, %c0_i32, %c0_i32_0 : i32, i32, i32
  }
  func.func @transform_2(%arg0: i32) -> (i32, i32, i32) {
    %c0_i32 = arith.constant 0 : i32
    %c0_i32_0 = arith.constant 0 : i32
    %c0_i32_1 = arith.constant 0 : i32
    return %arg0, %c0_i32, %c0_i32_0 : i32, i32, i32
  }
  func.func @transform_3(%arg0: i32) -> (i32, i32, i32) {
    %c0_i32 = arith.constant 0 : i32
    %c0_i32_0 = arith.constant 0 : i32
    %c0_i32_1 = arith.constant 0 : i32
    return %arg0, %c0_i32, %c0_i32_0 : i32, i32, i32
  }
  func.func @transform_4(%arg0: i32) -> (i32, i32, i32) {
    %c0_i32 = arith.constant 0 : i32
    %c0_i32_0 = arith.constant 0 : i32
    %c0_i32_1 = arith.constant 0 : i32
    return %arg0, %c0_i32, %c0_i32_0 : i32, i32, i32
  }
  func.func @transform_5(%arg0: i32) -> (i32, i32, i32) {
    %c0_i32 = arith.constant 0 : i32
    %c0_i32_0 = arith.constant 0 : i32
    %c0_i32_1 = arith.constant 0 : i32
    return %arg0, %c0_i32, %c0_i32_0 : i32, i32, i32
  }
  func.func @transform_6(%arg0: i32) -> (i32, i32, i32) {
    %c0_i32 = arith.constant 0 : i32
    %c0_i32_0 = arith.constant 0 : i32
    %c0_i32_1 = arith.constant 0 : i32
    return %arg0, %c0_i32, %c0_i32_0 : i32, i32, i32
  }
}

module attributes {stable_mosaic.version = 11 : i64} {
  func.func @_linear_kernel(%arg0: i32, %arg1: i32, %arg2: i32, %arg3: memref<68x128xbf16, #tpu.memory_space<vmem>>, %arg4: memref<128x128xbf16, #tpu.memory_space<vmem>>, %arg5: memref<1x128xf32, #tpu.memory_space<vmem>>, %arg6: memref<68x128xbf16, #tpu.memory_space<vmem>>, %arg7: memref<68x128xf32, #tpu.memory_space<vmem>>) attributes {dimension_semantics = [#tpu.dimension_semantics<parallel>, #tpu.dimension_semantics<parallel>, #tpu.dimension_semantics<arbitrary>], iteration_bounds = array<i64: 1, 1, 1>, scalar_prefetch = 0 : i64, scratch_operands = 1 : i64, tpu.core_type = #tpu.core_type<tc>, window_params = [{transform_indices = @transform_0, window_bounds = array<i64: 68, 128>}, {transform_indices = @transform_1, window_bounds = array<i64: 128, 128>}, {transform_indices = @transform_2, window_bounds = array<i64: 1, 128>}, {transform_indices = @transform_3, window_bounds = array<i64: 68, 128>}]} {
    %c0_i32 = arith.constant 0 : i32
    %0 = arith.cmpi eq, %arg2, %c0_i32 : i32
    %1 = arith.extui %0 : i1 to i32
    %c0_i32_0 = arith.constant 0 : i32
    %2 = arith.cmpi ne, %1, %c0_i32_0 : i32
    scf.if %2 {
      %cst_10 = arith.constant 0.000000e+00 : f32
      %12 = vector.broadcast %cst_10 : f32 to vector<68x128xf32>
      %c0_11 = arith.constant 0 : index
      %c0_12 = arith.constant 0 : index
      %13 = vector.load %arg7[%c0_11, %c0_12] : memref<68x128xf32, #tpu.memory_space<vmem>>, vector<68x128xf32>
      tpu.vector_store %arg7[%c0_11, %c0_12], %12 {strides = array<i32>} : memref<68x128xf32, #tpu.memory_space<vmem>>, vector<68x128xf32>,
    } else {
    }
    %c0 = arith.constant 0 : index
    %c0_1 = arith.constant 0 : index
    %3 = vector.load %arg7[%c0, %c0_1] : memref<68x128xf32, #tpu.memory_space<vmem>>, vector<68x128xf32>
    %c0_2 = arith.constant 0 : index
    %c0_3 = arith.constant 0 : index
    %4 = vector.load %arg3[%c0_2, %c0_3] : memref<68x128xbf16, #tpu.memory_space<vmem>>, vector<68x128xbf16>
    %c0_4 = arith.constant 0 : index
    %c0_5 = arith.constant 0 : index
    %5 = vector.load %arg4[%c0_4, %c0_5] : memref<128x128xbf16, #tpu.memory_space<vmem>>, vector<128x128xbf16>
    %cst = arith.constant dense<0.000000e+00> : vector<68x128xf32>
    %6 = tpu.matmul %4, %5, %cst {dimension_numbers = #tpu.dot_dimension_numbers<[1], [0], [0], [1], [0, 0, 1, 1], [], []>} : vector<68x128xbf16>, vector<128x128xbf16>, vector<68x128xf32> -> vector<68x128xf32>
    %7 = arith.addf %3, %6 : vector<68x128xf32>
    %c0_6 = arith.constant 0 : index
    %c0_7 = arith.constant 0 : index
    %8 = vector.load %arg7[%c0_6, %c0_7] : memref<68x128xf32, #tpu.memory_space<vmem>>, vector<68x128xf32>
    tpu.vector_store %arg7[%c0_6, %c0_7], %7 {strides = array<i32>} : memref<68x128xf32, #tpu.memory_space<vmem>>, vector<68x128xf32>,
    %c0_i32_8 = arith.constant 0 : i32
    %9 = arith.cmpi eq, %arg2, %c0_i32_8 : i32
    %10 = arith.extui %9 : i1 to i32
    %c0_i32_9 = arith.constant 0 : i32
    %11 = arith.cmpi ne, %10, %c0_i32_9 : i32
    scf.if %11 {
      %c0_10 = arith.constant 0 : index
      %c0_11 = arith.constant 0 : index
      %12 = vector.load %arg7[%c0_10, %c0_11] : memref<68x128xf32, #tpu.memory_space<vmem>>, vector<68x128xf32>
      %c0_12 = arith.constant 0 : index
      %c0_13 = arith.constant 0 : index
      %13 = vector.load %arg5[%c0_12, %c0_13] : memref<1x128xf32, #tpu.memory_space<vmem>>, vector<1x128xf32>
      %14 = vector.broadcast %13 : vector<1x128xf32> to vector<68x128xf32>
      %15 = arith.addf %12, %14 : vector<68x128xf32>
      %16 = arith.truncf %15 : vector<68x128xf32> to vector<68x128xbf16>
      %c0_14 = arith.constant 0 : index
      %c0_15 = arith.constant 0 : index
      %17 = vector.load %arg6[%c0_14, %c0_15] : memref<68x128xbf16, #tpu.memory_space<vmem>>, vector<68x128xbf16>
      tpu.vector_store %arg6[%c0_14, %c0_15], %16 {strides = array<i32>} : memref<68x128xbf16, #tpu.memory_space<vmem>>, vector<68x128xbf16>,
    } else {
    }
    return
  }
  func.func @transform_0(%arg0: i32, %arg1: i32, %arg2: i32) -> (i32, i32) {
    %c0_i32 = arith.constant 0 : i32
    return %arg0, %arg2 : i32, i32
  }
  func.func @transform_1(%arg0: i32, %arg1: i32, %arg2: i32) -> (i32, i32) {
    %c0_i32 = arith.constant 0 : i32
    return %arg2, %arg1 : i32, i32
  }
  func.func @transform_2(%arg0: i32, %arg1: i32, %arg2: i32) -> (i32, i32) {
    %c0_i32 = arith.constant 0 : i32
    %c0_i32_0 = arith.constant 0 : i32
    return %c0_i32, %arg1 : i32, i32
  }
  func.func @transform_3(%arg0: i32, %arg1: i32, %arg2: i32) -> (i32, i32) {
    %c0_i32 = arith.constant 0 : i32
    return %arg0, %arg1 : i32, i32
  }
}

module attributes {stable_mosaic.version = 11 : i64} {
  func.func @_gate_res_kernel(%arg0: i32, %arg1: memref<1x17x32xbf16, #tpu.memory_space<vmem>>, %arg2: memref<1x17x32xbf16, #tpu.memory_space<vmem>>, %arg3: memref<1x1x32xf32, #tpu.memory_space<vmem>>, %arg4: memref<1x17x32xbf16, #tpu.memory_space<vmem>>) attributes {dimension_semantics = [#tpu.dimension_semantics<parallel>], iteration_bounds = array<i64: 4>, scalar_prefetch = 0 : i64, scratch_operands = 0 : i64, tpu.core_type = #tpu.core_type<tc>, window_params = [{transform_indices = @transform_0, window_bounds = array<i64: 1, 17, 32>}, {transform_indices = @transform_1, window_bounds = array<i64: 1, 17, 32>}, {transform_indices = @transform_2, window_bounds = array<i64: 1, 1, 32>}, {transform_indices = @transform_3, window_bounds = array<i64: 1, 17, 32>}]} {
    %c0 = arith.constant 0 : index
    %c0_0 = arith.constant 0 : index
    %c0_1 = arith.constant 0 : index
    %0 = vector.load %arg1[%c0, %c0_0, %c0_1] : memref<1x17x32xbf16, #tpu.memory_space<vmem>>, vector<1x17x32xbf16>
    %1 = vector.shape_cast %0 : vector<1x17x32xbf16> to vector<17x32xbf16>
    %2 = arith.extf %1 : vector<17x32xbf16> to vector<17x32xf32>
    %c0_2 = arith.constant 0 : index
    %c0_3 = arith.constant 0 : index
    %c0_4 = arith.constant 0 : index
    %3 = vector.load %arg2[%c0_2, %c0_3, %c0_4] : memref<1x17x32xbf16, #tpu.memory_space<vmem>>, vector<1x17x32xbf16>
    %4 = vector.shape_cast %3 : vector<1x17x32xbf16> to vector<17x32xbf16>
    %5 = arith.extf %4 : vector<17x32xbf16> to vector<17x32xf32>
    %c0_5 = arith.constant 0 : index
    %c0_6 = arith.constant 0 : index
    %c0_7 = arith.constant 0 : index
    %6 = vector.load %arg3[%c0_5, %c0_6, %c0_7] : memref<1x1x32xf32, #tpu.memory_space<vmem>>, vector<1x1x32xf32>
    %7 = vector.shape_cast %6 : vector<1x1x32xf32> to vector<1x32xf32>
    %8 = vector.broadcast %7 : vector<1x32xf32> to vector<17x32xf32>
    %9 = arith.mulf %8, %5 : vector<17x32xf32>
    %10 = arith.addf %2, %9 : vector<17x32xf32>
    %11 = arith.truncf %10 : vector<17x32xf32> to vector<17x32xbf16>
    %c0_8 = arith.constant 0 : index
    %c0_9 = arith.constant 0 : index
    %c0_10 = arith.constant 0 : index
    %12 = vector.load %arg4[%c0_8, %c0_9, %c0_10] : memref<1x17x32xbf16, #tpu.memory_space<vmem>>, vector<1x17x32xbf16>
    %13 = vector.shape_cast %12 : vector<1x17x32xbf16> to vector<17x32xbf16>
    %14 = vector.shape_cast %11 : vector<17x32xbf16> to vector<1x17x32xbf16>
    tpu.vector_store %arg4[%c0_8, %c0_9, %c0_10], %14 {strides = array<i32>} : memref<1x17x32xbf16, #tpu.memory_space<vmem>>, vector<1x17x32xbf16>,
    return
  }
  func.func @transform_0(%arg0: i32) -> (i32, i32, i32) {
    %c0_i32 = arith.constant 0 : i32
    %c0_i32_0 = arith.constant 0 : i32
    %c0_i32_1 = arith.constant 0 : i32
    return %arg0, %c0_i32, %c0_i32_0 : i32, i32, i32
  }
  func.func @transform_1(%arg0: i32) -> (i32, i32, i32) {
    %c0_i32 = arith.constant 0 : i32
    %c0_i32_0 = arith.constant 0 : i32
    %c0_i32_1 = arith.constant 0 : i32
    return %arg0, %c0_i32, %c0_i32_0 : i32, i32, i32
  }
  func.func @transform_2(%arg0: i32) -> (i32, i32, i32) {
    %c0_i32 = arith.constant 0 : i32
    %c0_i32_0 = arith.constant 0 : i32
    %c0_i32_1 = arith.constant 0 : i32
    return %arg0, %c0_i32, %c0_i32_0 : i32, i32, i32
  }
  func.func @transform_3(%arg0: i32) -> (i32, i32, i32) {
    %c0_i32 = arith.constant 0 : i32
    %c0_i32_0 = arith.constant 0 : i32
    %c0_i32_1 = arith.constant 0 : i32
    return %arg0, %c0_i32, %c0_i32_0 : i32, i32, i32
  }
}

module attributes {stable_mosaic.version = 11 : i64} {
  func.func @_adaln_kernel(%arg0: i32, %arg1: memref<1x16x32xbf16, #tpu.memory_space<vmem>>, %arg2: memref<1x1x32xf32, #tpu.memory_space<vmem>>, %arg3: memref<1x1x32xf32, #tpu.memory_space<vmem>>, %arg4: memref<1x16x32xbf16, #tpu.memory_space<vmem>>) attributes {dimension_semantics = [#tpu.dimension_semantics<parallel>], iteration_bounds = array<i64: 4>, scalar_prefetch = 0 : i64, scratch_operands = 0 : i64, tpu.core_type = #tpu.core_type<tc>, window_params = [{transform_indices = @transform_0, window_bounds = array<i64: 1, 16, 32>}, {transform_indices = @transform_1, window_bounds = array<i64: 1, 1, 32>}, {transform_indices = @transform_2, window_bounds = array<i64: 1, 1, 32>}, {transform_indices = @transform_3, window_bounds = array<i64: 1, 16, 32>}]} {
    %c0 = arith.constant 0 : index
    %c0_0 = arith.constant 0 : index
    %c0_1 = arith.constant 0 : index
    %0 = vector.load %arg1[%c0, %c0_0, %c0_1] : memref<1x16x32xbf16, #tpu.memory_space<vmem>>, vector<1x16x32xbf16>
    %1 = vector.shape_cast %0 : vector<1x16x32xbf16> to vector<16x32xbf16>
    %2 = arith.extf %1 : vector<16x32xbf16> to vector<16x32xf32>
    %cst = arith.constant dense<0.000000e+00> : vector<16xf32>
    %3 = vector.multi_reduction <add>, %2, %cst [1] : vector<16x32xf32> to vector<16xf32>
    %4 = vector.shape_cast %3 : vector<16xf32> to vector<16x1xf32>
    %cst_2 = arith.constant 3.200000e+01 : f32
    %5 = vector.broadcast %cst_2 : f32 to vector<16x1xf32>
    %6 = arith.divf %4, %5 : vector<16x1xf32>
    %7 = vector.broadcast %6 : vector<16x1xf32> to vector<16x32xf32>
    %8 = arith.subf %2, %7 : vector<16x32xf32>
    %9 = arith.mulf %8, %8 : vector<16x32xf32>
    %cst_3 = arith.constant dense<0.000000e+00> : vector<16xf32>
    %10 = vector.multi_reduction <add>, %9, %cst_3 [1] : vector<16x32xf32> to vector<16xf32>
    %11 = vector.shape_cast %10 : vector<16xf32> to vector<16x1xf32>
    %cst_4 = arith.constant 3.200000e+01 : f32
    %12 = vector.broadcast %cst_4 : f32 to vector<16x1xf32>
    %13 = arith.divf %11, %12 : vector<16x1xf32>
    %14 = vector.broadcast %6 : vector<16x1xf32> to vector<16x32xf32>
    %15 = arith.subf %2, %14 : vector<16x32xf32>
    %cst_5 = arith.constant 9.99999974E-6 : f32
    %16 = vector.broadcast %cst_5 : f32 to vector<16x1xf32>
    %17 = arith.addf %13, %16 : vector<16x1xf32>
    %18 = math.rsqrt %17 : vector<16x1xf32>
    %19 = vector.broadcast %18 : vector<16x1xf32> to vector<16x32xf32>
    %20 = arith.mulf %15, %19 : vector<16x32xf32>
    %c0_6 = arith.constant 0 : index
    %c0_7 = arith.constant 0 : index
    %c0_8 = arith.constant 0 : index
    %21 = vector.load %arg2[%c0_6, %c0_7, %c0_8] : memref<1x1x32xf32, #tpu.memory_space<vmem>>, vector<1x1x32xf32>
    %22 = vector.shape_cast %21 : vector<1x1x32xf32> to vector<1x32xf32>
    %c0_9 = arith.constant 0 : index
    %c0_10 = arith.constant 0 : index
    %c0_11 = arith.constant 0 : index
    %23 = vector.load %arg3[%c0_9, %c0_10, %c0_11] : memref<1x1x32xf32, #tpu.memory_space<vmem>>, vector<1x1x32xf32>
    %24 = vector.shape_cast %23 : vector<1x1x32xf32> to vector<1x32xf32>
    %cst_12 = arith.constant 1.000000e+00 : f32
    %25 = vector.broadcast %cst_12 : f32 to vector<1x32xf32>
    %26 = arith.addf %25, %24 : vector<1x32xf32>
    %27 = vector.broadcast %26 : vector<1x32xf32> to vector<16x32xf32>
    %28 = arith.mulf %20, %27 : vector<16x32xf32>
    %29 = vector.broadcast %22 : vector<1x32xf32> to vector<16x32xf32>
    %30 = arith.addf %28, %29 : vector<16x32xf32>
    %31 = arith.truncf %30 : vector<16x32xf32> to vector<16x32xbf16>
    %c0_13 = arith.constant 0 : index
    %c0_14 = arith.constant 0 : index
    %c0_15 = arith.constant 0 : index
    %32 = vector.load %arg4[%c0_13, %c0_14, %c0_15] : memref<1x16x32xbf16, #tpu.memory_space<vmem>>, vector<1x16x32xbf16>
    %33 = vector.shape_cast %32 : vector<1x16x32xbf16> to vector<16x32xbf16>
    %34 = vector.shape_cast %31 : vector<16x32xbf16> to vector<1x16x32xbf16>
    tpu.vector_store %arg4[%c0_13, %c0_14, %c0_15], %34 {strides = array<i32>} : memref<1x16x32xbf16, #tpu.memory_space<vmem>>, vector<1x16x32xbf16>,
    return
  }
  func.func @transform_0(%arg0: i32) -> (i32, i32, i32) {
    %c0_i32 = arith.constant 0 : i32
    %c0_i32_0 = arith.constant 0 : i32
    %c0_i32_1 = arith.constant 0 : i32
    return %arg0, %c0_i32, %c0_i32_0 : i32, i32, i32
  }
  func.func @transform_1(%arg0: i32) -> (i32, i32, i32) {
    %c0_i32 = arith.constant 0 : i32
    %c0_i32_0 = arith.constant 0 : i32
    %c0_i32_1 = arith.constant 0 : i32
    return %arg0, %c0_i32, %c0_i32_0 : i32, i32, i32
  }
  func.func @transform_2(%arg0: i32) -> (i32, i32, i32) {
    %c0_i32 = arith.constant 0 : i32
    %c0_i32_0 = arith.constant 0 : i32
    %c0_i32_1 = arith.constant 0 : i32
    return %arg0, %c0_i32, %c0_i32_0 : i32, i32, i32
  }
  func.func @transform_3(%arg0: i32) -> (i32, i32, i32) {
    %c0_i32 = arith.constant 0 : i32
    %c0_i32_0 = arith.constant 0 : i32
    %c0_i32_1 = arith.constant 0 : i32
    return %arg0, %c0_i32, %c0_i32_0 : i32, i32, i32
  }
}

module attributes {stable_mosaic.version = 11 : i64} {
  func.func @_linear_kernel(%arg0: i32, %arg1: i32, %arg2: i32, %arg3: memref<64x32xbf16, #tpu.memory_space<vmem>>, %arg4: memref<32x128xbf16, #tpu.memory_space<vmem>>, %arg5: memref<1x128xf32, #tpu.memory_space<vmem>>, %arg6: memref<64x128xf32, #tpu.memory_space<vmem>>, %arg7: memref<64x128xf32, #tpu.memory_space<vmem>>) attributes {dimension_semantics = [#tpu.dimension_semantics<parallel>, #tpu.dimension_semantics<parallel>, #tpu.dimension_semantics<arbitrary>], iteration_bounds = array<i64: 1, 1, 1>, scalar_prefetch = 0 : i64, scratch_operands = 1 : i64, tpu.core_type = #tpu.core_type<tc>, window_params = [{transform_indices = @transform_0, window_bounds = array<i64: 64, 32>}, {transform_indices = @transform_1, window_bounds = array<i64: 32, 128>}, {transform_indices = @transform_2, window_bounds = array<i64: 1, 128>}, {transform_indices = @transform_3, window_bounds = array<i64: 64, 128>}]} {
    %c0_i32 = arith.constant 0 : i32
    %0 = arith.cmpi eq, %arg2, %c0_i32 : i32
    %1 = arith.extui %0 : i1 to i32
    %c0_i32_0 = arith.constant 0 : i32
    %2 = arith.cmpi ne, %1, %c0_i32_0 : i32
    scf.if %2 {
      %cst_10 = arith.constant 0.000000e+00 : f32
      %12 = vector.broadcast %cst_10 : f32 to vector<64x128xf32>
      %c0_11 = arith.constant 0 : index
      %c0_12 = arith.constant 0 : index
      %13 = vector.load %arg7[%c0_11, %c0_12] : memref<64x128xf32, #tpu.memory_space<vmem>>, vector<64x128xf32>
      tpu.vector_store %arg7[%c0_11, %c0_12], %12 {strides = array<i32>} : memref<64x128xf32, #tpu.memory_space<vmem>>, vector<64x128xf32>,
    } else {
    }
    %c0 = arith.constant 0 : index
    %c0_1 = arith.constant 0 : index
    %3 = vector.load %arg7[%c0, %c0_1] : memref<64x128xf32, #tpu.memory_space<vmem>>, vector<64x128xf32>
    %c0_2 = arith.constant 0 : index
    %c0_3 = arith.constant 0 : index
    %4 = vector.load %arg3[%c0_2, %c0_3] : memref<64x32xbf16, #tpu.memory_space<vmem>>, vector<64x32xbf16>
    %c0_4 = arith.constant 0 : index
    %c0_5 = arith.constant 0 : index
    %5 = vector.load %arg4[%c0_4, %c0_5] : memref<32x128xbf16, #tpu.memory_space<vmem>>, vector<32x128xbf16>
    %cst = arith.constant dense<0.000000e+00> : vector<64x128xf32>
    %6 = tpu.matmul %4, %5, %cst {dimension_numbers = #tpu.dot_dimension_numbers<[1], [0], [0], [1], [0, 0, 1, 1], [], []>} : vector<64x32xbf16>, vector<32x128xbf16>, vector<64x128xf32> -> vector<64x128xf32>
    %7 = arith.addf %3, %6 : vector<64x128xf32>
    %c0_6 = arith.constant 0 : index
    %c0_7 = arith.constant 0 : index
    %8 = vector.load %arg7[%c0_6, %c0_7] : memref<64x128xf32, #tpu.memory_space<vmem>>, vector<64x128xf32>
    tpu.vector_store %arg7[%c0_6, %c0_7], %7 {strides = array<i32>} : memref<64x128xf32, #tpu.memory_space<vmem>>, vector<64x128xf32>,
    %c0_i32_8 = arith.constant 0 : i32
    %9 = arith.cmpi eq, %arg2, %c0_i32_8 : i32
    %10 = arith.extui %9 : i1 to i32
    %c0_i32_9 = arith.constant 0 : i32
    %11 = arith.cmpi ne, %10, %c0_i32_9 : i32
    scf.if %11 {
      %c0_10 = arith.constant 0 : index
      %c0_11 = arith.constant 0 : index
      %12 = vector.load %arg7[%c0_10, %c0_11] : memref<64x128xf32, #tpu.memory_space<vmem>>, vector<64x128xf32>
      %c0_12 = arith.constant 0 : index
      %c0_13 = arith.constant 0 : index
      %13 = vector.load %arg5[%c0_12, %c0_13] : memref<1x128xf32, #tpu.memory_space<vmem>>, vector<1x128xf32>
      %14 = vector.broadcast %13 : vector<1x128xf32> to vector<64x128xf32>
      %15 = arith.addf %12, %14 : vector<64x128xf32>
      %c0_14 = arith.constant 0 : index
      %c0_15 = arith.constant 0 : index
      %16 = vector.load %arg6[%c0_14, %c0_15] : memref<64x128xf32, #tpu.memory_space<vmem>>, vector<64x128xf32>
      tpu.vector_store %arg6[%c0_14, %c0_15], %15 {strides = array<i32>} : memref<64x128xf32, #tpu.memory_space<vmem>>, vector<64x128xf32>,
    } else {
    }
    return
  }
  func.func @transform_0(%arg0: i32, %arg1: i32, %arg2: i32) -> (i32, i32) {
    %c0_i32 = arith.constant 0 : i32
    return %arg0, %arg2 : i32, i32
  }
  func.func @transform_1(%arg0: i32, %arg1: i32, %arg2: i32) -> (i32, i32) {
    %c0_i32 = arith.constant 0 : i32
    return %arg2, %arg1 : i32, i32
  }
  func.func @transform_2(%arg0: i32, %arg1: i32, %arg2: i32) -> (i32, i32) {
    %c0_i32 = arith.constant 0 : i32
    %c0_i32_0 = arith.constant 0 : i32
    return %c0_i32, %arg1 : i32, i32
  }
  func.func @transform_3(%arg0: i32, %arg1: i32, %arg2: i32) -> (i32, i32) {
    %c0_i32 = arith.constant 0 : i32
    return %arg0, %arg1 : i32, i32
  }
}

module attributes {stable_mosaic.version = 11 : i64} {
  func.func @_adaln_kernel(%arg0: i32, %arg1: memref<1x1x32xbf16, #tpu.memory_space<vmem>>, %arg2: memref<1x1x32xf32, #tpu.memory_space<vmem>>, %arg3: memref<1x1x32xf32, #tpu.memory_space<vmem>>, %arg4: memref<1x1x32xbf16, #tpu.memory_space<vmem>>) attributes {dimension_semantics = [#tpu.dimension_semantics<parallel>], iteration_bounds = array<i64: 4>, scalar_prefetch = 0 : i64, scratch_operands = 0 : i64, tpu.core_type = #tpu.core_type<tc>, window_params = [{transform_indices = @transform_0, window_bounds = array<i64: 1, 1, 32>}, {transform_indices = @transform_1, window_bounds = array<i64: 1, 1, 32>}, {transform_indices = @transform_2, window_bounds = array<i64: 1, 1, 32>}, {transform_indices = @transform_3, window_bounds = array<i64: 1, 1, 32>}]} {
    %c0 = arith.constant 0 : index
    %c0_0 = arith.constant 0 : index
    %c0_1 = arith.constant 0 : index
    %0 = vector.load %arg1[%c0, %c0_0, %c0_1] : memref<1x1x32xbf16, #tpu.memory_space<vmem>>, vector<1x1x32xbf16>
    %1 = vector.shape_cast %0 : vector<1x1x32xbf16> to vector<1x32xbf16>
    %2 = arith.extf %1 : vector<1x32xbf16> to vector<1x32xf32>
    %cst = arith.constant dense<0.000000e+00> : vector<1xf32>
    %3 = vector.multi_reduction <add>, %2, %cst [1] : vector<1x32xf32> to vector<1xf32>
    %4 = vector.shape_cast %3 : vector<1xf32> to vector<1x1xf32>
    %cst_2 = arith.constant 3.200000e+01 : f32
    %5 = vector.broadcast %cst_2 : f32 to vector<1x1xf32>
    %6 = arith.divf %4, %5 : vector<1x1xf32>
    %7 = vector.broadcast %6 : vector<1x1xf32> to vector<1x32xf32>
    %8 = arith.subf %2, %7 : vector<1x32xf32>
    %9 = arith.mulf %8, %8 : vector<1x32xf32>
    %cst_3 = arith.constant dense<0.000000e+00> : vector<1xf32>
    %10 = vector.multi_reduction <add>, %9, %cst_3 [1] : vector<1x32xf32> to vector<1xf32>
    %11 = vector.shape_cast %10 : vector<1xf32> to vector<1x1xf32>
    %cst_4 = arith.constant 3.200000e+01 : f32
    %12 = vector.broadcast %cst_4 : f32 to vector<1x1xf32>
    %13 = arith.divf %11, %12 : vector<1x1xf32>
    %14 = vector.broadcast %6 : vector<1x1xf32> to vector<1x32xf32>
    %15 = arith.subf %2, %14 : vector<1x32xf32>
    %cst_5 = arith.constant 9.99999974E-6 : f32
    %16 = vector.broadcast %cst_5 : f32 to vector<1x1xf32>
    %17 = arith.addf %13, %16 : vector<1x1xf32>
    %18 = math.rsqrt %17 : vector<1x1xf32>
    %19 = vector.broadcast %18 : vector<1x1xf32> to vector<1x32xf32>
    %20 = arith.mulf %15, %19 : vector<1x32xf32>
    %c0_6 = arith.constant 0 : index
    %c0_7 = arith.constant 0 : index
    %c0_8 = arith.constant 0 : index
    %21 = vector.load %arg2[%c0_6, %c0_7, %c0_8] : memref<1x1x32xf32, #tpu.memory_space<vmem>>, vector<1x1x32xf32>
    %22 = vector.shape_cast %21 : vector<1x1x32xf32> to vector<1x32xf32>
    %c0_9 = arith.constant 0 : index
    %c0_10 = arith.constant 0 : index
    %c0_11 = arith.constant 0 : index
    %23 = vector.load %arg3[%c0_9, %c0_10, %c0_11] : memref<1x1x32xf32, #tpu.memory_space<vmem>>, vector<1x1x32xf32>
    %24 = vector.shape_cast %23 : vector<1x1x32xf32> to vector<1x32xf32>
    %cst_12 = arith.constant 1.000000e+00 : f32
    %25 = vector.broadcast %cst_12 : f32 to vector<1x32xf32>
    %26 = arith.addf %25, %24 : vector<1x32xf32>
    %27 = arith.mulf %20, %26 : vector<1x32xf32>
    %28 = arith.addf %27, %22 : vector<1x32xf32>
    %29 = arith.truncf %28 : vector<1x32xf32> to vector<1x32xbf16>
    %c0_13 = arith.constant 0 : index
    %c0_14 = arith.constant 0 : index
    %c0_15 = arith.constant 0 : index
    %30 = vector.load %arg4[%c0_13, %c0_14, %c0_15] : memref<1x1x32xbf16, #tpu.memory_space<vmem>>, vector<1x1x32xbf16>
    %31 = vector.shape_cast %30 : vector<1x1x32xbf16> to vector<1x32xbf16>
    %32 = vector.shape_cast %29 : vector<1x32xbf16> to vector<1x1x32xbf16>
    tpu.vector_store %arg4[%c0_13, %c0_14, %c0_15], %32 {strides = array<i32>} : memref<1x1x32xbf16, #tpu.memory_space<vmem>>, vector<1x1x32xbf16>,
    return
  }
  func.func @transform_0(%arg0: i32) -> (i32, i32, i32) {
    %c0_i32 = arith.constant 0 : i32
    %c0_i32_0 = arith.constant 0 : i32
    %c0_i32_1 = arith.constant 0 : i32
    return %arg0, %c0_i32, %c0_i32_0 : i32, i32, i32
  }
  func.func @transform_1(%arg0: i32) -> (i32, i32, i32) {
    %c0_i32 = arith.constant 0 : i32
    %c0_i32_0 = arith.constant 0 : i32
    %c0_i32_1 = arith.constant 0 : i32
    return %arg0, %c0_i32, %c0_i32_0 : i32, i32, i32
  }
  func.func @transform_2(%arg0: i32) -> (i32, i32, i32) {
    %c0_i32 = arith.constant 0 : i32
    %c0_i32_0 = arith.constant 0 : i32
    %c0_i32_1 = arith.constant 0 : i32
    return %arg0, %c0_i32, %c0_i32_0 : i32, i32, i32
  }
  func.func @transform_3(%arg0: i32) -> (i32, i32, i32) {
    %c0_i32 = arith.constant 0 : i32
    %c0_i32_0 = arith.constant 0 : i32
    %c0_i32_1 = arith.constant 0 : i32
    return %arg0, %c0_i32, %c0_i32_0 : i32, i32, i32
  }
}

module attributes {stable_mosaic.version = 11 : i64} {
  func.func @_linear_kernel(%arg0: i32, %arg1: i32, %arg2: i32, %arg3: memref<4x32xbf16, #tpu.memory_space<vmem>>, %arg4: memref<32x128xbf16, #tpu.memory_space<vmem>>, %arg5: memref<1x128xf32, #tpu.memory_space<vmem>>, %arg6: memref<4x128xf32, #tpu.memory_space<vmem>>, %arg7: memref<4x128xf32, #tpu.memory_space<vmem>>) attributes {dimension_semantics = [#tpu.dimension_semantics<parallel>, #tpu.dimension_semantics<parallel>, #tpu.dimension_semantics<arbitrary>], iteration_bounds = array<i64: 1, 1, 1>, scalar_prefetch = 0 : i64, scratch_operands = 1 : i64, tpu.core_type = #tpu.core_type<tc>, window_params = [{transform_indices = @transform_0, window_bounds = array<i64: 4, 32>}, {transform_indices = @transform_1, window_bounds = array<i64: 32, 128>}, {transform_indices = @transform_2, window_bounds = array<i64: 1, 128>}, {transform_indices = @transform_3, window_bounds = array<i64: 4, 128>}]} {
    %c0_i32 = arith.constant 0 : i32
    %0 = arith.cmpi eq, %arg2, %c0_i32 : i32
    %1 = arith.extui %0 : i1 to i32
    %c0_i32_0 = arith.constant 0 : i32
    %2 = arith.cmpi ne, %1, %c0_i32_0 : i32
    scf.if %2 {
      %cst_10 = arith.constant 0.000000e+00 : f32
      %12 = vector.broadcast %cst_10 : f32 to vector<4x128xf32>
      %c0_11 = arith.constant 0 : index
      %c0_12 = arith.constant 0 : index
      %13 = vector.load %arg7[%c0_11, %c0_12] : memref<4x128xf32, #tpu.memory_space<vmem>>, vector<4x128xf32>
      tpu.vector_store %arg7[%c0_11, %c0_12], %12 {strides = array<i32>} : memref<4x128xf32, #tpu.memory_space<vmem>>, vector<4x128xf32>,
    } else {
    }
    %c0 = arith.constant 0 : index
    %c0_1 = arith.constant 0 : index
    %3 = vector.load %arg7[%c0, %c0_1] : memref<4x128xf32, #tpu.memory_space<vmem>>, vector<4x128xf32>
    %c0_2 = arith.constant 0 : index
    %c0_3 = arith.constant 0 : index
    %4 = vector.load %arg3[%c0_2, %c0_3] : memref<4x32xbf16, #tpu.memory_space<vmem>>, vector<4x32xbf16>
    %c0_4 = arith.constant 0 : index
    %c0_5 = arith.constant 0 : index
    %5 = vector.load %arg4[%c0_4, %c0_5] : memref<32x128xbf16, #tpu.memory_space<vmem>>, vector<32x128xbf16>
    %cst = arith.constant dense<0.000000e+00> : vector<4x128xf32>
    %6 = tpu.matmul %4, %5, %cst {dimension_numbers = #tpu.dot_dimension_numbers<[1], [0], [0], [1], [0, 0, 1, 1], [], []>} : vector<4x32xbf16>, vector<32x128xbf16>, vector<4x128xf32> -> vector<4x128xf32>
    %7 = arith.addf %3, %6 : vector<4x128xf32>
    %c0_6 = arith.constant 0 : index
    %c0_7 = arith.constant 0 : index
    %8 = vector.load %arg7[%c0_6, %c0_7] : memref<4x128xf32, #tpu.memory_space<vmem>>, vector<4x128xf32>
    tpu.vector_store %arg7[%c0_6, %c0_7], %7 {strides = array<i32>} : memref<4x128xf32, #tpu.memory_space<vmem>>, vector<4x128xf32>,
    %c0_i32_8 = arith.constant 0 : i32
    %9 = arith.cmpi eq, %arg2, %c0_i32_8 : i32
    %10 = arith.extui %9 : i1 to i32
    %c0_i32_9 = arith.constant 0 : i32
    %11 = arith.cmpi ne, %10, %c0_i32_9 : i32
    scf.if %11 {
      %c0_10 = arith.constant 0 : index
      %c0_11 = arith.constant 0 : index
      %12 = vector.load %arg7[%c0_10, %c0_11] : memref<4x128xf32, #tpu.memory_space<vmem>>, vector<4x128xf32>
      %c0_12 = arith.constant 0 : index
      %c0_13 = arith.constant 0 : index
      %13 = vector.load %arg5[%c0_12, %c0_13] : memref<1x128xf32, #tpu.memory_space<vmem>>, vector<1x128xf32>
      %14 = vector.broadcast %13 : vector<1x128xf32> to vector<4x128xf32>
      %15 = arith.addf %12, %14 : vector<4x128xf32>
      %c0_14 = arith.constant 0 : index
      %c0_15 = arith.constant 0 : index
      %16 = vector.load %arg6[%c0_14, %c0_15] : memref<4x128xf32, #tpu.memory_space<vmem>>, vector<4x128xf32>
      tpu.vector_store %arg6[%c0_14, %c0_15], %15 {strides = array<i32>} : memref<4x128xf32, #tpu.memory_space<vmem>>, vector<4x128xf32>,
    } else {
    }
    return
  }
  func.func @transform_0(%arg0: i32, %arg1: i32, %arg2: i32) -> (i32, i32) {
    %c0_i32 = arith.constant 0 : i32
    return %arg0, %arg2 : i32, i32
  }
  func.func @transform_1(%arg0: i32, %arg1: i32, %arg2: i32) -> (i32, i32) {
    %c0_i32 = arith.constant 0 : i32
    return %arg2, %arg1 : i32, i32
  }
  func.func @transform_2(%arg0: i32, %arg1: i32, %arg2: i32) -> (i32, i32) {
    %c0_i32 = arith.constant 0 : i32
    %c0_i32_0 = arith.constant 0 : i32
    return %c0_i32, %arg1 : i32, i32
  }
  func.func @transform_3(%arg0: i32, %arg1: i32, %arg2: i32) -> (i32, i32) {
    %c0_i32 = arith.constant 0 : i32
    return %arg0, %arg1 : i32, i32
  }
}

</mosaic_0001>

<bundles_post_ra>
// kernel: _lambda_.38
= control target key start
LH: loop header
LB: loop body
LE: loop exit
PB: predicated region body
PF: predicated region fallthrough
CT: control target
= control target key end

     0   :  { %vm74_vm0 = vcmask 1041408   ;;  %vm61_vm1 = vcmask 31744   ;;  %s326_s1 = inlined_call_operand.vmem [shape: bf16[4,128], index: 1, kind: input, shape index: {}]   ;;  %s327_s0 = inlined_call_operand.vmem [shape: bf16[64,4], index: 0, kind: input, shape index: {}]   ;;  %s328_s2 = inlined_call_operand.vmem [shape: bf16[64,128], index: 2, kind: output, shape index: {}]  }
   0x1   :  { %v40_v0 = vld [vmem:[%s326_s1] sm:$0x3]  ;;  %v281_v3 = vld [vmem:[%s327_s0 + $0x10] sm:$0xff]   ;;  %v282_v4 = vld [vmem:[%s327_s0 + $0x8] sm:$0xff]  }
   0x2   :  { %278 = vmatprep.subr.msk.bf16.mxu0 %vm74_vm0, %v40_v0  ;;  %279 = vmatprep.subr.msk.bf16.mxu1 %vm74_vm0, %v40_v0  ;;  %v76_v1 = vsel %vm74_vm0, %v40_v0, 0  ;;  %v280_v2 = vld [vmem:[%s327_s0] sm:$0xff]   ;;  %v283_v5 = vld [vmem:[%s327_s0 + $0x18] sm:$0xff]  }
   0x3   :  { %267 = vmatpush3.bf16.msra.mxu0 %v76_v1  ;;  %277 = vmatpush3.bf16.msra.mxu1 %v76_v1 }
   0x4   :  { %268 = vmatprep.mubr.msk.bf16.mxu0 %vm61_vm1, %v280_v2  ;;  %272 = vmatprep.mubr.msk.bf16.mxu1 %vm61_vm1, %v281_v3 }
   0x6   :  { %269 = vmatmul.mubr.msk.bf16.vlgmr.msra.gmra.mrb[0].mxu0 %vm61_vm1, %v282_v4  ;;  %273 = vmatmul.mubr.msk.bf16.vlgmr.msra.gmra.mrb[0].mxu1 %vm61_vm1, %v283_v5 }
  0xd9   :  { %v270_v6 = vpop.f32.mrb[0].mxu0  ;;  %v274_v7 = vpop.f32.mrb[0].mxu1 }
  0xda   :  { %v112_v8 = vpop.f32.mrb[1].mxu0  ;;  %v128_v9 = vpop.f32.mrb[1].mxu1 }
  0xdb   :  { %v271_v10 = vpop.f32.mrb[2].mxu0  ;;  %v275_v12 = vpop.f32.mrb[2].mxu1 }
  0xdc   :  { %v246_v11 = vpack.c.bf16 %v271_v10, %v270_v6  ;;  %v115_v13 = vpop.f32.mrb[3].mxu0  ;;  %v256_v14 = vpack.c.bf16 %v275_v12, %v274_v7  ;;  %v131_v16 = vpop.f32.mrb[3].mxu1 }
  0xdd   :  { %v241_v15 = vpack.c.bf16 %v115_v13, %v112_v8  ;;  %v251_v17 = vpack.c.bf16 %v131_v16, %v128_v9 }
  0xde   :  { %258 = vst [vmem:[%s328_s2 + $0x8] sm:$0xff] %v246_v11   ;;  %260 = vst [vmem:[%s328_s2 + $0x18] sm:$0xff] %v256_v14  }
  0xdf   :  { %242 = vst [vmem:[%s328_s2] sm:$0xff] %v241_v15   ;;  %259 = vst [vmem:[%s328_s2 + $0x10] sm:$0xff] %v251_v17  }

// kernel: _lambda_.39
= control target key start
LH: loop header
LB: loop body
LE: loop exit
PB: predicated region body
PF: predicated region fallthrough
CT: control target
= control target key end

     0   :  { %vm24_vm0 = vcmask 1040384   ;;  %v91_v0 = vmov 0.0   ;;  %vm92_vm1 = vmmov 0   ;;  %vm20_vm2 = vcmask 15360   ;;  %s117_s1 = inlined_call_operand.vmem [shape: bf16[2,128], index: 1, kind: input, shape index: {}]   ;;  %s118_s0 = inlined_call_operand.vmem [shape: bf16[4,2], index: 0, kind: input, shape index: {}]   ;;  %s119_s2 = inlined_call_operand.vmem [shape: bf16[4,128], index: 2, kind: output, shape index: {}]  }
   0x1   :  { %16 = vst [vmem:[#allocation2] sm:$0xf] %v91_v0  ;;  %83 = vmatprep.subr.bf16.mxu0 %v91_v0  ;;  %v19_v1 = vld [vmem:[%s117_s1] sm:$0x1]  ;;  %85 = vmatprep.mubr.msk.bf16.mxu0 %vm92_vm1, %v91_v0 }
   0x2   :  { %v26_v2 = vsel %vm24_vm0, %v19_v1, 0  ;;  %v18_v3 = vld [vmem:[%s118_s0] sm:$0x3] }
   0x3   :  { %84 = vmatpush3.bf16.msra.mxu0 %v26_v2 }
   0x6   :  { %86 = vmatmul.mubr.msk.bf16.vlgmr.msra.gmra.mrb[0].mxu0 %vm20_vm2, %v18_v3 }
   0x8   :  { %v17_v4 = vld [vmem:[#allocation2] sm:$0xf] }
  0xd9   :  { %v62_v5 = vpop.f32.mrb[0].mxu0 }
  0xda   :  { %v68_v6 = vadd.f32 %v62_v5, %v17_v4  ;;  %v87_v7 = vpop.f32.mrb[1].mxu0 }
  0xdb   :  { %v65_v8 = vpop.f32.mrb[2].mxu0 }
  0xdc   :  { %69 = vst [vmem:[#allocation2] sm:$0xf] %v68_v6  ;;  %v88_v9 = vpop.f32.mrb[3].mxu0 }
  0xe3   :  { %v73_v10 = vld [vmem:[#allocation2] sm:$0xf] }
  0xe4   :  { %v74_v11 = vpack.c.bf16 %v73_v10, %v73_v10 }
  0xe6   :  { %75 = vst [vmem:[%s119_s2] sm:$0x3] %v74_v11 }

// kernel: _lambda_.36
= control target key start
LH: loop header
LB: loop body
LE: loop exit
PB: predicated region body
PF: predicated region fallthrough
CT: control target
= control target key end

     0   :  { %v132_v0 = vmov 0.0   ;;  %vm133_vm0 = vmmov 0   ;;  %vm38_vm1 = vcmask 261120   ;;  %s169_s1 = inlined_call_operand.vmem [shape: bf16[32,128], index: 1, kind: input, shape index: {}]   ;;  %s170_s0 = inlined_call_operand.vmem [shape: bf16[4,32], index: 0, kind: input, shape index: {}]   ;;  %s171_s2 = inlined_call_operand.vmem [shape: f32[1,128], index: 2, kind: input, shape index: {}]   ;;  %s172_s3 = inlined_call_operand.vmem [shape: f32[4,128], index: 3, kind: output, shape index: {}]  }
   0x1   :  { %116 = vmatprep.subr.bf16.mxu0 %v132_v0  ;;  %19 = vst [vmem:[#allocation2] sm:$0xf] %v132_v0  ;;  %v126_v1 = vld [vmem:[%s169_s1] sm:$0xff]   ;;  %120 = vmatprep.mubr.msk.bf16.mxu0 %vm133_vm0, %v132_v0  ;;  %v127_v2 = vld [vmem:[%s169_s1 + $0x8] sm:$0xff]  }
   0x2   :  { %117 = vmatpush3.bf16.msra.mxu0 %v126_v1  ;;  %v21_v3 = vld [vmem:[%s170_s0] sm:$0x3] }
   0x3   :  { %118 = vmatprep.subr.bf16.mxu0 %v132_v0  ;;  %v111_v10 = vld [vmem:[%s171_s2] ss:$0 sm:$0xff] }
   0x6   :  { %119 = vmatpush3.bf16.msra.mxu0 %v127_v2 }
   0x8   :  { %v20_v4 = vld [vmem:[#allocation2] sm:$0xf] }
   0x9   :  { %121 = vmatmul.mubr.msk.bf16.vlgmr.msra.gmra.mrb[0].mxu0 %vm38_vm1, %v21_v3 }
  0xdc   :  { %v76_v5 = vpop.f32.mrb[0].mxu0 }
  0xdd   :  { %v82_v6 = vadd.f32 %v76_v5, %v20_v4  ;;  %v122_v7 = vpop.f32.mrb[1].mxu0 }
  0xde   :  { %v79_v8 = vpop.f32.mrb[2].mxu0 }
  0xdf   :  { %83 = vst [vmem:[#allocation2] sm:$0xf] %v82_v6  ;;  %v123_v9 = vpop.f32.mrb[3].mxu0 }
  0xe6   :  { %v87_v11 = vld [vmem:[#allocation2] sm:$0xf] }
  0xe7   :  { %v95_v12 = vadd.f32 %v111_v10, %v87_v11 }
  0xe9   :  { %v112_v13 = vmul.f32 -1.442695, %v95_v12 }
  0xeb   :  { %128 = vpow2.f32 %v112_v13 }
  0xf5   :  { %v129_v14 = vpop.eup %128 }
  0xf6   :  { %v99_v15 = vadd.f32 1.0, %v129_v14 }
  0xf8   :  { %130 = vrcp.f32 %v99_v15 }
 0x102   :  { %v131_v16 = vpop.eup %130 }
 0x103   :  { %v102_v17 = vmul.f32 %v131_v16, %v95_v12 }
 0x105   :  { %103 = vst [vmem:[%s172_s3] sm:$0xf] %v102_v17 }

// kernel: _lambda_.37
= control target key start
LH: loop header
LB: loop body
LE: loop exit
PB: predicated region body
PF: predicated region fallthrough
CT: control target
= control target key end

     0   :  { %v120_v0 = vmov 0.0   ;;  %vm121_vm0 = vmmov 0   ;;  %vm38_vm1 = vcmask 261120   ;;  %s157_s1 = inlined_call_operand.vmem [shape: bf16[32,128], index: 1, kind: input, shape index: {}]   ;;  %s158_s0 = inlined_call_operand.vmem [shape: bf16[4,32], index: 0, kind: input, shape index: {}]   ;;  %s159_s2 = inlined_call_operand.vmem [shape: f32[1,128], index: 2, kind: input, shape index: {}]   ;;  %s160_s3 = inlined_call_operand.vmem [shape: f32[4,128], index: 3, kind: output, shape index: {}]  }
   0x1   :  { %108 = vmatprep.subr.bf16.mxu0 %v120_v0  ;;  %19 = vst [vmem:[#allocation2] sm:$0xf] %v120_v0  ;;  %v118_v1 = vld [vmem:[%s157_s1] sm:$0xff]   ;;  %112 = vmatprep.mubr.msk.bf16.mxu0 %vm121_vm0, %v120_v0  ;;  %v119_v2 = vld [vmem:[%s157_s1 + $0x8] sm:$0xff]  }
   0x2   :  { %109 = vmatpush3.bf16.msra.mxu0 %v118_v1  ;;  %v21_v3 = vld [vmem:[%s158_s0] sm:$0x3] }
   0x3   :  { %110 = vmatprep.subr.bf16.mxu0 %v120_v0  ;;  %v104_v10 = vld [vmem:[%s159_s2] ss:$0 sm:$0xff] }
   0x6   :  { %111 = vmatpush3.bf16.msra.mxu0 %v119_v2 }
   0x8   :  { %v20_v4 = vld [vmem:[#allocation2] sm:$0xf] }
   0x9   :  { %113 = vmatmul.mubr.msk.bf16.vlgmr.msra.gmra.mrb[0].mxu0 %vm38_vm1, %v21_v3 }
  0xdc   :  { %v76_v5 = vpop.f32.mrb[0].mxu0 }
  0xdd   :  { %v82_v6 = vadd.f32 %v76_v5, %v20_v4  ;;  %v114_v7 = vpop.f32.mrb[1].mxu0 }
  0xde   :  { %v79_v8 = vpop.f32.mrb[2].mxu0 }
  0xdf   :  { %83 = vst [vmem:[#allocation2] sm:$0xf] %v82_v6  ;;  %v115_v9 = vpop.f32.mrb[3].mxu0 }
  0xe6   :  { %v87_v11 = vld [vmem:[#allocation2] sm:$0xf] }
  0xe7   :  { %v95_v12 = vadd.f32 %v104_v10, %v87_v11 }
  0xe9   :  { %96 = vst [vmem:[%s160_s3] sm:$0xf] %v95_v12 }

// kernel: _lambda_.34
= control target key start
LH: loop header
LB: loop body
LE: loop exit
PB: predicated region body
PF: predicated region fallthrough
CT: control target
= control target key end

     0   :  { %vm27_vm0 = vcmask 1043456   ;;  %v114_v0 = vmov 0.0   ;;  %vm115_vm1 = vmmov 0   ;;  %vm23_vm2 = vcmask 64512   ;;  %s148_s1 = inlined_call_operand.vmem [shape: bf16[8,128], index: 1, kind: input, shape index: {}]   ;;  %s149_s0 = inlined_call_operand.vmem [shape: bf16[4,8], index: 0, kind: input, shape index: {}]   ;;  %s150_s2 = inlined_call_operand.vmem [shape: f32[1,128], index: 2, kind: input, shape index: {}]   ;;  %s151_s3 = inlined_call_operand.vmem [shape: f32[4,128], index: 3, kind: output, shape index: {}]  }
   0x1   :  { %19 = vst [vmem:[#allocation2] sm:$0xf] %v114_v0  ;;  %102 = vmatprep.subr.bf16.mxu0 %v114_v0  ;;  %v22_v1 = vld [vmem:[%s148_s1] sm:$0xf]  ;;  %104 = vmatprep.mubr.msk.bf16.mxu0 %vm115_vm1, %v114_v0 }
   0x2   :  { %v29_v2 = vsel %vm27_vm0, %v22_v1, 0  ;;  %v21_v3 = vld [vmem:[%s149_s0] sm:$0x3] }
   0x3   :  { %103 = vmatpush3.bf16.msra.mxu0 %v29_v2  ;;  %v98_v10 = vld [vmem:[%s150_s2] ss:$0 sm:$0xff] }
   0x6   :  { %105 = vmatmul.mubr.msk.bf16.vlgmr.msra.gmra.mrb[0].mxu0 %vm23_vm2, %v21_v3 }
   0x8   :  { %v20_v4 = vld [vmem:[#allocation2] sm:$0xf] }
  0xd9   :  { %v65_v5 = vpop.f32.mrb[0].mxu0 }
  0xda   :  { %v71_v6 = vadd.f32 %v65_v5, %v20_v4  ;;  %v106_v7 = vpop.f32.mrb[1].mxu0 }
  0xdb   :  { %v68_v8 = vpop.f32.mrb[2].mxu0 }
  0xdc   :  { %72 = vst [vmem:[#allocation2] sm:$0xf] %v71_v6  ;;  %v107_v9 = vpop.f32.mrb[3].mxu0 }
  0xe3   :  { %v76_v11 = vld [vmem:[#allocation2] sm:$0xf] }
  0xe4   :  { %v84_v12 = vadd.f32 %v98_v10, %v76_v11 }
  0xe6   :  { %v99_v13 = vmul.f32 -1.442695, %v84_v12 }
  0xe8   :  { %110 = vpow2.f32 %v99_v13 }
  0xf2   :  { %v111_v14 = vpop.eup %110 }
  0xf3   :  { %v88_v15 = vadd.f32 1.0, %v111_v14 }
  0xf5   :  { %112 = vrcp.f32 %v88_v15 }
  0xff   :  { %v113_v16 = vpop.eup %112 }
 0x100   :  { %v91_v17 = vmul.f32 %v113_v16, %v84_v12 }
 0x102   :  { %92 = vst [vmem:[%s151_s3] sm:$0xf] %v91_v17 }

// kernel: _lambda_.32
= control target key start
LH: loop header
LB: loop body
LE: loop exit
PB: predicated region body
PF: predicated region fallthrough
CT: control target
= control target key end

     0   :  { %vm27_vm0 = vcmask 1040384   ;;  %v114_v0 = vmov 0.0   ;;  %vm115_vm1 = vmmov 0   ;;  %vm23_vm2 = vcmask 15360   ;;  %s148_s1 = inlined_call_operand.vmem [shape: bf16[2,128], index: 1, kind: input, shape index: {}]   ;;  %s149_s0 = inlined_call_operand.vmem [shape: bf16[4,2], index: 0, kind: input, shape index: {}]   ;;  %s150_s2 = inlined_call_operand.vmem [shape: f32[1,128], index: 2, kind: input, shape index: {}]   ;;  %s151_s3 = inlined_call_operand.vmem [shape: f32[4,128], index: 3, kind: output, shape index: {}]  }
   0x1   :  { %19 = vst [vmem:[#allocation2] sm:$0xf] %v114_v0  ;;  %102 = vmatprep.subr.bf16.mxu0 %v114_v0  ;;  %v22_v1 = vld [vmem:[%s148_s1] sm:$0x1]  ;;  %104 = vmatprep.mubr.msk.bf16.mxu0 %vm115_vm1, %v114_v0 }
   0x2   :  { %v29_v2 = vsel %vm27_vm0, %v22_v1, 0  ;;  %v21_v3 = vld [vmem:[%s149_s0] sm:$0x3] }
   0x3   :  { %103 = vmatpush3.bf16.msra.mxu0 %v29_v2  ;;  %v98_v10 = vld [vmem:[%s150_s2] ss:$0 sm:$0xff] }
   0x6   :  { %105 = vmatmul.mubr.msk.bf16.vlgmr.msra.gmra.mrb[0].mxu0 %vm23_vm2, %v21_v3 }
   0x8   :  { %v20_v4 = vld [vmem:[#allocation2] sm:$0xf] }
  0xd9   :  { %v65_v5 = vpop.f32.mrb[0].mxu0 }
  0xda   :  { %v71_v6 = vadd.f32 %v65_v5, %v20_v4  ;;  %v106_v7 = vpop.f32.mrb[1].mxu0 }
  0xdb   :  { %v68_v8 = vpop.f32.mrb[2].mxu0 }
  0xdc   :  { %72 = vst [vmem:[#allocation2] sm:$0xf] %v71_v6  ;;  %v107_v9 = vpop.f32.mrb[3].mxu0 }
  0xe3   :  { %v76_v11 = vld [vmem:[#allocation2] sm:$0xf] }
  0xe4   :  { %v84_v12 = vadd.f32 %v98_v10, %v76_v11 }
  0xe6   :  { %v99_v13 = vmul.f32 -1.442695, %v84_v12 }
  0xe8   :  { %110 = vpow2.f32 %v99_v13 }
  0xf2   :  { %v111_v14 = vpop.eup %110 }
  0xf3   :  { %v88_v15 = vadd.f32 1.0, %v111_v14 }
  0xf5   :  { %112 = vrcp.f32 %v88_v15 }
  0xff   :  { %v113_v16 = vpop.eup %112 }
 0x100   :  { %v91_v17 = vmul.f32 %v113_v16, %v84_v12 }
 0x102   :  { %92 = vst [vmem:[%s151_s3] sm:$0xf] %v91_v17 }

// kernel: _lambda_.40
= control target key start
LH: loop header
LB: loop body
LE: loop exit
PB: predicated region body
PF: predicated region fallthrough
CT: control target
= control target key end

     0   :  { %v131_v1 = vmov 0   ;;  %vm46_vm0 = vcmask 261120   ;;  %v103_v6 = vlaneseq  ;;  %s173_s1 = inlined_call_operand.vmem [shape: bf16[32,256], index: 1, kind: input, shape index: {}]   ;;  %s174_s0 = inlined_call_operand.vmem [shape: bf16[4,32], index: 0, kind: input, shape index: {}]   ;;  %s175_s2 = inlined_call_operand.vmem [shape: f32[1,256], index: 2, kind: input, shape index: {}]   ;;  %s176_s3 = inlined_call_operand.vmem [shape: f32[4,256], index: 3, kind: output, shape index: {}]  }
   0x1   :  { %v125_v0 = vld [vmem:[%s173_s1 + $0x4] ss:$8 sps:$4 sm:$0xff]   ;;  %82 = vmatprep.mubr.bf16.mxu0 %v131_v1  ;;  %v127_v2 = vld [vmem:[%s173_s1] ss:$8 sps:$4 sm:$0xff]   ;;  %v128_v3 = vld [vmem:[%s173_s1 + $0x14] ss:$8 sps:$4 sm:$0xff]  }
   0x2   :  { %50 = vmatprep.subr.bf16.mxu0 %v125_v0  ;;  %v130_v4 = vld [vmem:[%s173_s1 + $0x10] ss:$8 sps:$4 sm:$0xff]   ;;  %v21_v5 = vld [vmem:[%s174_s0] sm:$0x3]  ;;  %v104_v7 = vshrl.u32 %v103_v6, 7 }
   0x3   :  { %51 = vmatpush1.bf16.msra.mxu0 %v127_v2  ;;  %v101_v10 = vld [vmem:[%s175_s2] sm:$0x3] }
   0x4   :  { %52 = vmatprep.subr.bf16.mxu0 %v128_v3  ;;  %v105_v8 = vsub.s32 0, %v104_v7  ;;  %v109_v9 = vsub.s32 1, %v104_v7 }
   0x6   :  { %v106_v11 = vrot.slane %v101_v10, %v105_v8  ;;  %v110_v12 = vrot.slane %v101_v10, %v109_v9 }
   0x7   :  { %53 = vmatpush1.bf16.msra.mxu0 %v130_v4 }
   0x8   :  { %v111_v14 = vcombine.low %v106_v11, %v110_v12 }
   0xa   :  { %123 = vmatmul.mubr.msk.bf16.vlgmr.msra.gmra.mrb[0].mxu0 %vm46_vm0, %v21_v5 }
  0xdd   :  { %v84_v13 = vpop.f32.mrb[0].mxu0 }
  0xde   :  { %v86_v15 = vpop.f32.mrb[1].mxu0 }
  0xdf   :  { %v93_v16 = vcombine.low %v84_v13, %v86_v15  ;;  %v88_v17 = vpop.f32.mrb[2].mxu0 }
  0xe0   :  { %v89_v18 = vpop.f32.mrb[3].mxu0 }
  0xe1   :  { %v113_v19 = vadd.f32 %v111_v14, %v93_v16 }
  0xe3   :  { %114 = vst [vmem:[%s176_s3] sm:$0xff] %v113_v19 }

// kernel: _lambda_.41
= control target key start
LH: loop header
LB: loop body
LE: loop exit
PB: predicated region body
PF: predicated region fallthrough
CT: control target
= control target key end

     0   :  { %s426_s12 = smov 0   ;;  %s465_s0 = inlined_call_operand.vmem [shape: bf16[4,17,32], index: 0, kind: input, shape index: {}]   ;;  %s466_s1 = inlined_call_operand.vmem [shape: f32[4,1,32], index: 1, kind: input, shape index: {}]   ;;  %s467_s2 = inlined_call_operand.vmem [shape: f32[4,1,32], index: 2, kind: input, shape index: {}]   ;;  %s468_s3 = inlined_call_operand.vmem [shape: bf16[4,17,32], index: 3, kind: output, shape index: {}]  }
   0x1 LB: > { %s363_s13 = sadd.s32 4294967295, %s404_s12   ;;  %p367_p0 = scmp.ge.s32.totalorder %s404_s12, 1  ;;  %s404_s12 = sphi %s426_s12, %s13_s12  }
   0x2   : > { %p153_p1 = scmp.lt.s32.totalorder %s404_s12, 5 }
   0x4   : > { %p154_p2 = pnand %p367_p0, %p153_p1 }
   0x5   : > { %p183_p3 = scmp.lt.s32.totalorder (!%p154_p2), %s363_s13, 3  ;;  %vm212_vm0 = vcmask (!%p154_p2), 253952   ;;  %vm205_vm1 = vcmask (!%p154_p2), 261120   ;;  %v251_v25 = vlaneseq (!%p154_p2)  ;;  %vm285_vm2 = vsmask.f32 (!%p154_p2), 256 }
   0x6   : > { %157 = sbr.rel (%p154_p2) target bundleno = 341 (0x155), region = 32  ;;  %vm286_vm3 = vmand (!%p154_p2), %vm212_vm0, %vm285_vm2  ;;  %vm281_vm4 = vcmask (!%p154_p2), 257024  }
   0x7   : > { %v252_v31 = vshrl.u32 (!%p154_p2), %v251_v25, 7 }
   0x9   : > { %v253_v36 = vsub.s32 (!%p154_p2), 0, %v252_v31 }
   0xd   : > { %s470_s13 = smov (!%p183_p3, %s363_s13), 3 }
   0xe   : > { %s383_s14 = smul.u32 12, %s470_s13  ;;  %s193_s20 = scalar_lea.vmem %s467_s2, %s470_s13 }
   0xf   : > { %v248_v32 = vld [vmem:[%s193_s20] sm:$0x1]  ;;  %s190_s23 = scalar_lea.vmem %s466_s1, %s470_s13 }
  0x10   : > { %s187_s17 = scalar_lea.vmem %s465_s0, %s383_s14  ;;  %v249_v35 = vadd.f32 1.0, %v248_v32  ;;  %v370_v40 = vld [vmem:[%s190_s23] ss:$0 sm:$0xff]  ;;  %s198_s26 = scalar_lea.vmem %s468_s3, %s383_s14 }
  0x11   : > { %v201_v0 = vld [vmem:[%s187_s17 + $0x8] sm:$0x1]  ;;  %v380_v1 = vld [vmem:[%s187_s17] sm:$0xff]  }
  0x12   : > { %v204_v2 = vunpack.c.l.bf16 %v201_v0  ;;  %v382_v3 = vunpack.c.h.bf16 %v380_v1  ;;  %v381_v4 = vunpack.c.l.bf16 %v380_v1  ;;  %v254_v37 = vrot.slane %v249_v35, %v253_v36  ;;  %v287_v46 = vld [vmem:[%s198_s26 + $0x8] sm:$0x1] }
  0x14   : > { %v213_v5 = vsel %vm212_vm0, %v204_v2, 0.0  ;;  %v209_v6 = vsel %vm205_vm1, %v382_v3, 0.0  ;;  %v206_v7 = vsel %vm205_vm1, %v381_v4, 0.0 }
  0x15   : > { %214 = vadd.xlane.f32.xlu0 %v213_v5  ;;  %210 = vadd.xlane.f32.xlu1 %v209_v6 }
  0x19   : > { %207 = vadd.xlane.f32.xlu0 %v206_v7 }
  0xa2   : > { %v215_v8 = vpop.xlane.xlu0 %214  ;;  %v211_v9 = vpop.xlane.xlu1 %210 }
  0xa3   : > { %v219_v10 = vmul.f32 0.03125, %v215_v8  ;;  %v218_v11 = vmul.f32 0.03125, %v211_v9 }
  0xa5   : > { %v222_v12 = vsub.f32 %v204_v2, %v219_v10  ;;  %v221_v13 = vsub.f32 %v382_v3, %v218_v11 }
  0xa6   : > { %v208_v14 = vpop.xlane.xlu0 %207 }
  0xa7   : > { %v217_v15 = vmul.f32 0.03125, %v208_v14  ;;  %v225_v16 = vmul.f32 %v222_v12, %v222_v12  ;;  %v224_v17 = vmul.f32 %v221_v13, %v221_v13 }
  0xa9   : > { %v220_v18 = vsub.f32 %v381_v4, %v217_v15  ;;  %v232_v19 = vsel %vm212_vm0, %v225_v16, 0.0  ;;  %v229_v20 = vsel %vm205_vm1, %v224_v17, 0.0 }
  0xaa   : > { %233 = vadd.xlane.f32.xlu1 %v232_v19 }
  0xab   : > { %v223_v21 = vmul.f32 %v220_v18, %v220_v18 }
  0xad   : > { %v226_v22 = vsel %vm205_vm1, %v223_v21, 0.0 }
  0xae   : > { %230 = vadd.xlane.f32.xlu1 %v229_v20  ;;  %227 = vadd.xlane.f32.xlu0 %v226_v22 }
 0x137   : > { %v234_v23 = vpop.xlane.xlu1 %233 }
 0x138   : > { %v237_v24 = vmul.f32 0.03125, %v234_v23 }
 0x13a   : > { %v240_v26 = vadd.f32 1e-05, %v237_v24 }
 0x13b   : > { %v231_v27 = vpop.xlane.xlu1 %230  ;;  %v228_v28 = vpop.xlane.xlu0 %227 }
 0x13c   : > { %392 = vrsqrt.f32 %v240_v26  ;;  %v236_v29 = vmul.f32 0.03125, %v231_v27  ;;  %v235_v30 = vmul.f32 0.03125, %v228_v28 }
 0x13e   : > { %v239_v33 = vadd.f32 1e-05, %v236_v29  ;;  %v238_v34 = vadd.f32 1e-05, %v235_v30 }
 0x140   : > { %394 = vrsqrt.f32 %v239_v33 }
 0x141   : > { %396 = vrsqrt.f32 %v238_v34 }
 0x146   : > { %v393_v38 = vpop.eup %392 }
 0x147   : > { %v246_v39 = vmul.f32 %v393_v38, %v222_v12 }
 0x149   : > { %v258_v41 = vmul.f32 %v254_v37, %v246_v39 }
 0x14a   : > { %v395_v42 = vpop.eup %394 }
 0x14b   : > { %v397_v43 = vpop.eup %396  ;;  %v267_v44 = vadd.f32 %v370_v40, %v258_v41  ;;  %v245_v45 = vmul.f32 %v395_v42, %v221_v13 }
 0x14c   : > { %v244_v47 = vmul.f32 %v397_v43, %v220_v18 }
 0x14d   : > { %v378_v48 = vpack.c.bf16 %v267_v44, %v267_v44  ;;  %v257_v49 = vmul.f32 %v254_v37, %v245_v45 }
 0x14e   : > { %v256_v50 = vmul.f32 %v254_v37, %v244_v47 }
 0x14f   : > { %v288_v51 = vsel %vm286_vm3, %v378_v48, %v287_v46  ;;  %v266_v52 = vadd.f32 %v370_v40, %v257_v49 }
 0x150   : > { %289 = vst [vmem:[%s198_s26 + $0x8] sm:$0x1] %v288_v51  ;;  %v265_v53 = vadd.f32 %v370_v40, %v256_v50 }
 0x151   : > { %v377_v54 = vpack.c.bf16 %v266_v52, %v266_v52 }
 0x152   : > { %v376_v55 = vpack.c.bf16 %v265_v53, %v265_v53 }
 0x153   : > { %283 = vst.msk [vmem:[%s198_s26 + $0x4] sm:$0xf] %vm281_vm4, %v377_v54 }
 0x154   : > { %282 = vst.msk [vmem:[%s198_s26] sm:$0xf] %vm281_vm4, %v376_v55 }
 0x155 PF: > { %s13_s12 = sadd.s32 1, %s404_s12  }
 0x156   : > { %p10_p4 = scmp.ge.s32.totalorder %s13_s12, 6  }
 0x158   :  { %12 = sbr.rel (!%p10_p4) target bundleno = 1 (0x1), region = 68 }

// kernel: _lambda_.42
= control target key start
LH: loop header
LB: loop body
LE: loop exit
PB: predicated region body
PF: predicated region fallthrough
CT: control target
= control target key end

     0   :  { %v367_v0 = vmov 0.0   ;;  %vm368_vm0 = vmmov 0   ;;  %vm85_vm1 = vcmask 261120   ;;  %s433_s1 = inlined_call_operand.vmem [shape: bf16[32,128], index: 1, kind: input, shape index: {}]   ;;  %s434_s0 = inlined_call_operand.vmem [shape: bf16[68,32], index: 0, kind: input, shape index: {}]   ;;  %s435_s2 = inlined_call_operand.vmem [shape: f32[1,128], index: 2, kind: input, shape index: {}]   ;;  %s436_s3 = inlined_call_operand.vmem [shape: bf16[68,128], index: 3, kind: output, shape index: {}]  }
   0x1   :  { %330 = vmatprep.subr.bf16.mxu0 %v367_v0  ;;  %27 = vst [vmem:[#allocation2 + $0x40] sm:$0xf] %v367_v0  ;;  %v360_v1 = vld [vmem:[%s433_s1] sm:$0xff]   ;;  %354 = vmatprep.subr.bf16.mxu1 %v367_v0  ;;  %v361_v2 = vld [vmem:[%s433_s1 + $0x8] sm:$0xff]   ;;  %v363_v4 = vld [vmem:[%s434_s0 + $0x18] sm:$0xff]  }
   0x2   :  { %334 = vmatprep.mubr.msk.bf16.mxu0 %vm368_vm0, %v367_v0  ;;  %346 = vmatprep.mubr.msk.bf16.mxu1 %vm368_vm0, %v367_v0  ;;  %v362_v3 = vld [vmem:[%s434_s0] sm:$0xff]   ;;  %v364_v5 = vld [vmem:[%s434_s0 + $0x8] sm:$0xff]   ;;  %v366_v7 = vld [vmem:[%s434_s0 + $0x10] sm:$0xff]  }
   0x3   :  { %331 = vmatpush3.bf16.msra.mxu0 %v360_v1  ;;  %356 = vmatpush3.bf16.msra.mxu1 %v360_v1  ;;  %v365_v6 = vld [vmem:[%s434_s0 + $0x20] ss:$0 sps:$4 sm:$0x33]  }
   0x4   :  { %332 = vmatprep.subr.bf16.mxu0 %v367_v0  ;;  %355 = vmatprep.subr.bf16.mxu1 %v367_v0  ;;  %v281_v12 = vld [vmem:[%s435_s2] ss:$0 sm:$0xff] }
   0x7   :  { %333 = vmatpush3.bf16.msra.mxu0 %v361_v2  ;;  %357 = vmatpush3.bf16.msra.mxu1 %v361_v2 }
   0x8   :  { %v36_v21 = vld [vmem:[#allocation2 + $0x40] sm:$0xf] }
   0xa   :  { %335 = vmatmul.mubr.msk.bf16.vlgmr.msra.gmra.mrb[0].mxu0 %vm85_vm1, %v362_v3  ;;  %347 = vmatmul.mubr.msk.bf16.vlgmr.msra.gmra.mrb[0].mxu1 %vm85_vm1, %v363_v4 }
   0xb   :  { %338 = vmatprep.mubr.msk.bf16.mxu0 %vm368_vm0, %v367_v0  ;;  %350 = vmatprep.mubr.msk.bf16.mxu1 %vm368_vm0, %v367_v0 }
  0x12   :  { %339 = vmatmul.mubr.msk.bf16.gmra.mrb[4].mxu0 %vm85_vm1, %v364_v5  ;;  %351 = vmatmul.mubr.msk.bf16.gmra.mrb[4].mxu1 %vm85_vm1, %v365_v6 }
  0x13   :  { %342 = vmatprep.mubr.msk.bf16.mxu0 %vm368_vm0, %v367_v0 }
  0x1a   :  { %343 = vmatmul.mubr.msk.bf16.gmra.mrb[8].mxu0 %vm85_vm1, %v366_v7 }
  0xdd   :  { %v135_v8 = vpop.f32.mrb[0].mxu0  ;;  %v159_v9 = vpop.f32.mrb[0].mxu1 }
  0xde   :  { %v336_v10 = vpop.f32.mrb[1].mxu0  ;;  %v348_v11 = vpop.f32.mrb[1].mxu1  ;;  %v216_v16 = vadd.f32 %v281_v12, %v159_v9  ;;  %v210_v18 = vadd.f32 %v281_v12, %v135_v8 }
  0xdf   :  { %v138_v13 = vpop.f32.mrb[2].mxu0  ;;  %v162_v14 = vpop.f32.mrb[2].mxu1 }
  0xe0   :  { %v337_v15 = vpop.f32.mrb[3].mxu0  ;;  %v349_v17 = vpop.f32.mrb[3].mxu1  ;;  %v211_v19 = vadd.f32 %v281_v12, %v138_v13  ;;  %v217_v20 = vadd.f32 %v281_v12, %v162_v14 }
  0xe2   :  { %v303_v22 = vpack.c.bf16 %v211_v19, %v210_v18  ;;  %v318_v23 = vpack.c.bf16 %v217_v20, %v216_v16 }
  0xe4   :  { %304 = vst [vmem:[%s436_s3] sm:$0xff] %v303_v22   ;;  %322 = vst [vmem:[%s436_s3 + $0x18] sm:$0xff] %v318_v23  }
  0xe5   :  { %v143_v24 = vpop.f32.mrb[4].mxu0  ;;  %v167_v25 = vpop.f32.mrb[4].mxu1 }
  0xe6   :  { %v340_v26 = vpop.f32.mrb[5].mxu0  ;;  %v181_v27 = vadd.f32 %v167_v25, %v36_v21  ;;  %v352_v28 = vpop.f32.mrb[5].mxu1  ;;  %v212_v33 = vadd.f32 %v281_v12, %v143_v24 }
  0xe7   :  { %v146_v29 = vpop.f32.mrb[6].mxu0  ;;  %v170_v30 = vpop.f32.mrb[6].mxu1 }
  0xe8   :  { %v341_v31 = vpop.f32.mrb[7].mxu0  ;;  %190 = vst [vmem:[#allocation2 + $0x40] sm:$0xf] %v181_v27  ;;  %v353_v32 = vpop.f32.mrb[7].mxu1  ;;  %v213_v34 = vadd.f32 %v281_v12, %v146_v29 }
  0xea   :  { %v308_v35 = vpack.c.bf16 %v213_v34, %v212_v33 }
  0xec   :  { %320 = vst [vmem:[%s436_s3 + $0x8] sm:$0xff] %v308_v35  }
  0xed   :  { %v151_v36 = vpop.f32.mrb[8].mxu0 }
  0xee   :  { %v344_v37 = vpop.f32.mrb[9].mxu0  ;;  %v214_v43 = vadd.f32 %v281_v12, %v151_v36 }
  0xef   :  { %v202_v38 = vld [vmem:[#allocation2 + $0x40] sm:$0xf]  ;;  %v154_v39 = vpop.f32.mrb[10].mxu0 }
  0xf0   :  { %v218_v40 = vadd.f32 %v281_v12, %v202_v38  ;;  %v345_v41 = vpop.f32.mrb[11].mxu0  ;;  %v215_v44 = vadd.f32 %v281_v12, %v154_v39 }
  0xf2   :  { %v299_v42 = vpack.c.bf16 %v218_v40, %v218_v40  ;;  %v313_v45 = vpack.c.bf16 %v215_v44, %v214_v43 }
  0xf4   :  { %264 = vst [vmem:[%s436_s3 + $0x20] sm:$0x3] %v299_v42  ;;  %321 = vst [vmem:[%s436_s3 + $0x10] sm:$0xff] %v313_v45  }

// kernel: _lambda_.45
= control target key start
LH: loop header
LB: loop body
LE: loop exit
PB: predicated region body
PF: predicated region fallthrough
CT: control target
= control target key end

     0   :  { %s673_s21 = smov 0   ;;  %s736_s0 = inlined_call_operand.vmem [shape: bf16[4,17,32], index: 0, kind: input, shape index: {}]   ;;  %s737_s1 = inlined_call_operand.vmem [shape: bf16[4,17,32], index: 1, kind: input, shape index: {}]   ;;  %s738_s2 = inlined_call_operand.vmem [shape: f32[4,1,32], index: 2, kind: input, shape index: {}]   ;;  %s739_s3 = inlined_call_operand.vmem [shape: f32[4,1,32], index: 3, kind: input, shape index: {}]   ;;  %s740_s4 = inlined_call_operand.vmem [shape: f32[4,1,32], index: 4, kind: input, shape index: {}]   ;;  %s741_s5 = inlined_call_operand.vmem [shape: bf16[4,17,32], index: 5, kind: output, shape index: {0}]   ;;  %s742_s6 = inlined_call_operand.vmem [shape: bf16[4,17,32], index: 6, kind: output, shape index: {1}]  }
   0x1 LB: > { %s582_s22 = sadd.s32 4294967295, %s636_s21   ;;  %p586_p0 = scmp.ge.s32.totalorder %s636_s21, 1  ;;  %s636_s21 = sphi %s673_s21, %s17_s21  }
   0x2   : > { %p249_p1 = scmp.lt.s32.totalorder %s636_s21, 5 }
   0x4   : > { %p250_p2 = pnand %p586_p0, %p249_p1 }
   0x5   : > { %p298_p3 = scmp.lt.s32.totalorder (!%p250_p2), %s582_s22, 3  ;;  %vm368_vm0 = vcmask (!%p250_p2), 253952   ;;  %vm369_vm1 = vsmask.f32 (!%p250_p2), 256  ;;  %vm374_vm2 = vcmask (!%p250_p2), 261120   ;;  %vm365_vm3 = vcmask (!%p250_p2), 257024  }
   0x6   : > { %253 = sbr.rel (%p250_p2) target bundleno = 346 (0x15a), region = 40  ;;  %vm704_vm4 = vmand (!%p250_p2), %vm368_vm0, %vm369_vm1  ;;  %v420_v43 = vlaneseq (!%p250_p2) }
   0x8   : > { %v421_v49 = vshrl.u32 (!%p250_p2), %v420_v43, 7 }
   0xa   : > { %v422_v54 = vsub.s32 (!%p250_p2), 0, %v421_v49 }
   0xd   : > { %s746_s22 = smov (!%p298_p3, %s582_s22), 3 }
   0xe   : > { %s684_s23 = smul.u32 12, %s746_s22  ;;  %s310_s26 = scalar_lea.vmem %s738_s2, %s746_s22 }
   0xf   : > { %v591_v0 = vld [vmem:[%s310_s26] ss:$0 sm:$0xff]  ;;  %s316_s14 = scalar_lea.vmem %s740_s4, %s746_s22  ;;  %s313_s17 = scalar_lea.vmem %s739_s3, %s746_s22 }
  0x10   : > { %s302_s29 = scalar_lea.vmem %s736_s0, %s684_s23  ;;  %s307_s8 = scalar_lea.vmem %s737_s1, %s684_s23  ;;  %v417_v50 = vld [vmem:[%s316_s14] sm:$0x1] }
  0x11   : > { %v329_v1 = vld [vmem:[%s302_s29 + $0x8] sm:$0x1]  ;;  %v608_v3 = vld [vmem:[%s302_s29] sm:$0xff]   ;;  %s321_s11 = scalar_lea.vmem %s741_s5, %s684_s23  ;;  %v418_v53 = vadd.f32 1.0, %v417_v50  ;;  %s326_s20 = scalar_lea.vmem %s742_s6, %s684_s23 }
  0x12   : > { %v335_v2 = vld [vmem:[%s307_s8 + $0x8] sm:$0x1]  ;;  %v332_v4 = vunpack.c.l.bf16 %v329_v1  ;;  %v612_v6 = vld [vmem:[%s307_s8] sm:$0xff]   ;;  %v610_v7 = vunpack.c.h.bf16 %v608_v3  ;;  %v609_v9 = vunpack.c.l.bf16 %v608_v3 }
  0x13   : > { %v338_v5 = vunpack.c.l.bf16 %v335_v2  ;;  %v614_v8 = vunpack.c.h.bf16 %v612_v6  ;;  %v613_v10 = vunpack.c.l.bf16 %v612_v6  ;;  %v371_v15 = vld [vmem:[%s321_s11 + $0x8] sm:$0x1]  ;;  %v423_v55 = vrot.slane %v418_v53, %v422_v54  ;;  %v595_v58 = vld [vmem:[%s313_s17] ss:$0 sm:$0xff] }
  0x15   : > { %v348_v11 = vmul.f32 %v591_v0, %v338_v5  ;;  %v347_v12 = vmul.f32 %v614_v8, %v591_v0  ;;  %v346_v13 = vmul.f32 %v613_v10, %v591_v0  ;;  %v452_v0 = vld [vmem:[%s326_s20 + $0x8] sm:$0x1] }
  0x17   : > { %v351_v14 = vadd.f32 %v348_v11, %v332_v4  ;;  %v350_v16 = vadd.f32 %v610_v7, %v347_v12  ;;  %v349_v17 = vadd.f32 %v609_v9, %v346_v13 }
  0x19   : > { %v382_v18 = vsel %vm368_vm0, %v351_v14, 0.0  ;;  %v603_v19 = vpack.c.bf16 %v351_v14, %v351_v14  ;;  %v378_v21 = vsel %vm374_vm2, %v350_v16, 0.0  ;;  %v602_v22 = vpack.c.bf16 %v350_v16, %v350_v16 }
  0x1a   : > { %383 = vadd.xlane.f32.xlu0 %v382_v18  ;;  %v601_v23 = vpack.c.bf16 %v349_v17, %v349_v17  ;;  %379 = vadd.xlane.f32.xlu1 %v378_v21  ;;  %v375_v25 = vsel %vm374_vm2, %v349_v17, 0.0 }
  0x1b   : > { %v372_v24 = vsel %vm704_vm4, %v603_v19, %v371_v15  ;;  %367 = vst.msk [vmem:[%s321_s11 + $0x4] sm:$0xf] %vm365_vm3, %v602_v22 }
  0x1c   : > { %373 = vst [vmem:[%s321_s11 + $0x8] sm:$0x1] %v372_v24  ;;  %366 = vst.msk [vmem:[%s321_s11] sm:$0xf] %vm365_vm3, %v601_v23 }
  0x1e   : > { %376 = vadd.xlane.f32.xlu0 %v375_v25 }
  0xa7   : > { %v384_v26 = vpop.xlane.xlu0 %383  ;;  %v380_v28 = vpop.xlane.xlu1 %379 }
  0xa8   : > { %v388_v27 = vmul.f32 0.03125, %v384_v26  ;;  %v387_v29 = vmul.f32 0.03125, %v380_v28 }
  0xaa   : > { %v391_v30 = vsub.f32 %v351_v14, %v388_v27  ;;  %v390_v31 = vsub.f32 %v350_v16, %v387_v29 }
  0xab   : > { %v377_v32 = vpop.xlane.xlu0 %376 }
  0xac   : > { %v386_v33 = vmul.f32 0.03125, %v377_v32  ;;  %v394_v34 = vmul.f32 %v391_v30, %v391_v30  ;;  %v393_v35 = vmul.f32 %v390_v31, %v390_v31 }
  0xae   : > { %v389_v36 = vsub.f32 %v349_v17, %v386_v33  ;;  %v401_v37 = vsel %vm368_vm0, %v394_v34, 0.0  ;;  %v398_v38 = vsel %vm374_vm2, %v393_v35, 0.0 }
  0xaf   : > { %402 = vadd.xlane.f32.xlu1 %v401_v37 }
  0xb0   : > { %v392_v39 = vmul.f32 %v389_v36, %v389_v36 }
  0xb2   : > { %v395_v40 = vsel %vm374_vm2, %v392_v39, 0.0 }
  0xb3   : > { %399 = vadd.xlane.f32.xlu1 %v398_v38  ;;  %396 = vadd.xlane.f32.xlu0 %v395_v40 }
 0x13c   : > { %v403_v41 = vpop.xlane.xlu1 %402 }
 0x13d   : > { %v406_v42 = vmul.f32 0.03125, %v403_v41 }
 0x13f   : > { %v409_v44 = vadd.f32 1e-05, %v406_v42 }
 0x140   : > { %v400_v45 = vpop.xlane.xlu1 %399  ;;  %v397_v46 = vpop.xlane.xlu0 %396 }
 0x141   : > { %624 = vrsqrt.f32 %v409_v44  ;;  %v405_v47 = vmul.f32 0.03125, %v400_v45  ;;  %v404_v48 = vmul.f32 0.03125, %v397_v46 }
 0x143   : > { %v408_v51 = vadd.f32 1e-05, %v405_v47  ;;  %v407_v52 = vadd.f32 1e-05, %v404_v48 }
 0x145   : > { %626 = vrsqrt.f32 %v408_v51 }
 0x146   : > { %628 = vrsqrt.f32 %v407_v52 }
 0x14b   : > { %v625_v56 = vpop.eup %624 }
 0x14c   : > { %v415_v57 = vmul.f32 %v625_v56, %v391_v30 }
 0x14e   : > { %v427_v59 = vmul.f32 %v423_v55, %v415_v57 }
 0x14f   : > { %v627_v60 = vpop.eup %626 }
 0x150   : > { %v629_v61 = vpop.eup %628  ;;  %v436_v62 = vadd.f32 %v595_v58, %v427_v59  ;;  %v414_v63 = vmul.f32 %v627_v60, %v390_v31 }
 0x151   : > { %v413_v1 = vmul.f32 %v629_v61, %v389_v36 }
 0x152   : > { %v606_v2 = vpack.c.bf16 %v436_v62, %v436_v62  ;;  %v426_v3 = vmul.f32 %v423_v55, %v414_v63 }
 0x153   : > { %v425_v4 = vmul.f32 %v423_v55, %v413_v1 }
 0x154   : > { %v453_v5 = vsel %vm704_vm4, %v606_v2, %v452_v0  ;;  %v435_v6 = vadd.f32 %v595_v58, %v426_v3 }
 0x155   : > { %454 = vst [vmem:[%s326_s20 + $0x8] sm:$0x1] %v453_v5  ;;  %v434_v7 = vadd.f32 %v595_v58, %v425_v4 }
 0x156   : > { %v605_v8 = vpack.c.bf16 %v435_v6, %v435_v6 }
 0x157   : > { %v604_v9 = vpack.c.bf16 %v434_v7, %v434_v7 }
 0x158   : > { %451 = vst.msk [vmem:[%s326_s20 + $0x4] sm:$0xf] %vm365_vm3, %v605_v8 }
 0x159   : > { %450 = vst.msk [vmem:[%s326_s20] sm:$0xf] %vm365_vm3, %v604_v9 }
 0x15a PF: > { %s17_s21 = sadd.s32 1, %s636_s21  }
 0x15b   : > { %p14_p4 = scmp.ge.s32.totalorder %s17_s21, 6  }
 0x15d   :  { %16 = sbr.rel (!%p14_p4) target bundleno = 1 (0x1), region = 94 }

// kernel: _lambda_.46
= control target key start
LH: loop header
LB: loop body
LE: loop exit
PB: predicated region body
PF: predicated region fallthrough
CT: control target
= control target key end

     0   :  { %v647_v0 = vmov 0.0   ;;  %vm648_vm0 = vmmov 0   ;;  %vm85_vm1 = vcmask 261120   ;;  %v649_v57 = vmov -1.0   ;;  %s894_s1 = inlined_call_operand.vmem [shape: bf16[32,128], index: 1, kind: input, shape index: {}]   ;;  %s895_s0 = inlined_call_operand.vmem [shape: bf16[68,32], index: 0, kind: input, shape index: {}]   ;;  %s896_s2 = inlined_call_operand.vmem [shape: f32[1,128], index: 2, kind: input, shape index: {}]   ;;  %s897_s3 = inlined_call_operand.vmem [shape: bf16[68,128], index: 3, kind: output, shape index: {}]  }
   0x1   :  { %573 = vmatprep.subr.bf16.mxu0 %v647_v0  ;;  %27 = vst [vmem:[#allocation2 + $0x40] sm:$0xf] %v647_v0  ;;  %597 = vmatprep.subr.bf16.mxu1 %v647_v0  ;;  %v604_v1 = vld [vmem:[%s894_s1] sm:$0xff]   ;;  %v605_v2 = vld [vmem:[%s894_s1 + $0x8] sm:$0xff]   ;;  %v607_v4 = vld [vmem:[%s895_s0 + $0x18] sm:$0xff]  }
   0x2   :  { %577 = vmatprep.mubr.msk.bf16.mxu0 %vm648_vm0, %v647_v0  ;;  %589 = vmatprep.mubr.msk.bf16.mxu1 %vm648_vm0, %v647_v0  ;;  %v606_v3 = vld [vmem:[%s895_s0] sm:$0xff]   ;;  %v608_v5 = vld [vmem:[%s895_s0 + $0x8] sm:$0xff]   ;;  %v610_v7 = vld [vmem:[%s895_s0 + $0x10] sm:$0xff]  }
   0x3   :  { %574 = vmatpush3.bf16.msra.mxu0 %v604_v1  ;;  %599 = vmatpush3.bf16.msra.mxu1 %v604_v1  ;;  %v609_v6 = vld [vmem:[%s895_s0 + $0x20] ss:$0 sps:$4 sm:$0x33]  }
   0x4   :  { %575 = vmatprep.subr.bf16.mxu0 %v647_v0  ;;  %598 = vmatprep.subr.bf16.mxu1 %v647_v0  ;;  %v699_v9 = vld [vmem:[%s896_s2] ss:$0 sm:$0xff] }
   0x7   :  { %576 = vmatpush3.bf16.msra.mxu0 %v605_v2  ;;  %600 = vmatpush3.bf16.msra.mxu1 %v605_v2 }
   0x8   :  { %v36_v36 = vld [vmem:[#allocation2 + $0x40] sm:$0xf] }
   0xa   :  { %578 = vmatmul.mubr.msk.bf16.vlgmr.msra.gmra.mrb[0].mxu0 %vm85_vm1, %v606_v3  ;;  %590 = vmatmul.mubr.msk.bf16.vlgmr.msra.gmra.mrb[0].mxu1 %vm85_vm1, %v607_v4 }
   0xb   :  { %581 = vmatprep.mubr.msk.bf16.mxu0 %vm648_vm0, %v647_v0  ;;  %593 = vmatprep.mubr.msk.bf16.mxu1 %vm648_vm0, %v647_v0 }
  0x12   :  { %582 = vmatmul.mubr.msk.bf16.gmra.mrb[4].mxu0 %vm85_vm1, %v608_v5  ;;  %594 = vmatmul.mubr.msk.bf16.gmra.mrb[4].mxu1 %vm85_vm1, %v609_v6 }
  0x13   :  { %585 = vmatprep.mubr.msk.bf16.mxu0 %vm648_vm0, %v647_v0 }
  0x1a   :  { %586 = vmatmul.mubr.msk.bf16.gmra.mrb[8].mxu0 %vm85_vm1, %v610_v7 }
  0xdd   :  { %v135_v8 = vpop.f32.mrb[0].mxu0  ;;  %v159_v10 = vpop.f32.mrb[0].mxu1 }
  0xde   :  { %v579_v11 = vpop.f32.mrb[1].mxu0  ;;  %v591_v12 = vpop.f32.mrb[1].mxu1  ;;  %v210_v15 = vadd.f32 %v699_v9, %v135_v8  ;;  %v216_v16 = vadd.f32 %v699_v9, %v159_v10 }
  0xdf   :  { %v138_v13 = vpop.f32.mrb[2].mxu0  ;;  %v162_v14 = vpop.f32.mrb[2].mxu1 }
  0xe0   :  { %v580_v17 = vpop.f32.mrb[3].mxu0  ;;  %v592_v18 = vpop.f32.mrb[3].mxu1  ;;  %v228_v19 = vmul.f32 0.70710677, %v210_v15  ;;  %v234_v20 = vmul.f32 0.70710677, %v216_v16  ;;  %v211_v21 = vadd.f32 %v699_v9, %v138_v13  ;;  %v217_v22 = vadd.f32 %v699_v9, %v162_v14 }
  0xe1   :  { %v719_v53 = vmul.f32 0.5, %v210_v15  ;;  %v731_v59 = vmul.f32 0.5, %v216_v16 }
  0xe2   :  { %v255_v23 = vand.u32 2147483647, %v228_v19  ;;  %v261_v24 = vand.u32 2147483647, %v234_v20  ;;  %v705_v25 = vmul.f32 0.70710677, %v211_v21 }
  0xe3   :  { %v708_v30 = vmul.f32 0.70710677, %v217_v22  ;;  %vm237_vm2 = vcmp.ge.f32.partialorder %v228_v19, 0.0  ;;  %vm243_vm3 = vcmp.ge.f32.partialorder %v234_v20, 0.0  ;;  %v740_v2 = vmul.f32 0.5, %v211_v21 }
  0xe4   :  { %v264_v27 = vmul.f32 0.3275911, %v255_v23  ;;  %v270_v28 = vmul.f32 0.3275911, %v261_v24  ;;  %v256_v29 = vand.u32 2147483647, %v705_v25 }
  0xe5   :  { %v143_v26 = vpop.f32.mrb[4].mxu0  ;;  %v167_v33 = vpop.f32.mrb[4].mxu1  ;;  %v262_v40 = vand.u32 2147483647, %v708_v30  ;;  %v381_v50 = vsub.f32 0.0, %v255_v23  ;;  %v387_v54 = vsub.f32 0.0, %v261_v24 }
  0xe6   :  { %v273_v31 = vadd.f32 1.0, %v264_v27  ;;  %v279_v32 = vadd.f32 1.0, %v270_v28  ;;  %v583_v34 = vpop.f32.mrb[5].mxu0  ;;  %v265_v35 = vmul.f32 0.3275911, %v256_v29  ;;  %v595_v41 = vpop.f32.mrb[5].mxu1  ;;  %v181_v42 = vadd.f32 %v167_v33, %v36_v36 }
  0xe7   :  { %v146_v37 = vpop.f32.mrb[6].mxu0  ;;  %v170_v43 = vpop.f32.mrb[6].mxu1  ;;  %v271_v44 = vmul.f32 0.3275911, %v262_v40  ;;  %v712_v46 = vadd.f32 %v699_v9, %v143_v26  ;;  %v729_v58 = vsel %vm237_vm2, 1.0, %v649_v57  ;;  %v734_v61 = vsel %vm243_vm3, 1.0, %v649_v57 }
  0xe8   :  { %611 = vrcp.f32 %v273_v31  ;;  %v584_v38 = vpop.f32.mrb[7].mxu0  ;;  %v274_v39 = vadd.f32 1.0, %v265_v35  ;;  %190 = vst [vmem:[#allocation2 + $0x40] sm:$0xf] %v181_v42  ;;  %v715_v47 = vadd.f32 %v699_v9, %v146_v37  ;;  %v596_v49 = vpop.f32.mrb[7].mxu1  ;;  %v382_v62 = vsub.f32 0.0, %v256_v29 }
  0xe9   :  { %613 = vrcp.f32 %v279_v32  ;;  %v280_v51 = vadd.f32 1.0, %v271_v44  ;;  %v722_v55 = vmul.f32 0.70710677, %v712_v46  ;;  %v390_v1 = vmul.f32 %v381_v50, %v255_v23 }
  0xea   :  { %615 = vrcp.f32 %v274_v39  ;;  %v725_v56 = vmul.f32 0.70710677, %v715_v47  ;;  %vm238_vm4 = vcmp.ge.f32.partialorder %v705_v25, 0.0  ;;  %v388_v3 = vsub.f32 0.0, %v262_v40 }
  0xeb   :  { %617 = vrcp.f32 %v280_v51  ;;  %v257_v63 = vand.u32 2147483647, %v722_v55  ;;  %v396_v5 = vmul.f32 %v387_v54, %v261_v24  ;;  %v752_v12 = vmul.f32 0.5, %v217_v22 }
  0xec   :  { %v738_v0 = vand.u32 2147483647, %v725_v56  ;;  %vm244_vm5 = vcmp.ge.f32.partialorder %v708_v30, 0.0  ;;  %v391_v15 = vmul.f32 %v382_v62, %v256_v29  ;;  %v399_v19 = vmul.f32 1.442695, %v390_v1 }
  0xed   :  { %v151_v45 = vpop.f32.mrb[8].mxu0  ;;  %v266_v6 = vmul.f32 0.3275911, %v257_v63  ;;  %v397_v20 = vmul.f32 %v388_v3, %v262_v40  ;;  %v411_v26 = vmul.f32 1.442695, %v396_v5  ;;  %v773_v32 = vsel %vm238_vm4, 1.0, %v649_v57 }
  0xee   :  { %v587_v48 = vpop.f32.mrb[9].mxu0  ;;  %v267_v7 = vmul.f32 0.3275911, %v738_v0  ;;  %v747_v8 = vadd.f32 %v699_v9, %v151_v45  ;;  %v401_v33 = vmul.f32 1.442695, %v391_v15  ;;  %v778_v34 = vsel %vm244_vm5, 1.0, %v649_v57 }
  0xef   :  { %v717_v52 = vpop.f32.mrb[10].mxu0  ;;  %v202_v13 = vld [vmem:[#allocation2 + $0x40] sm:$0xf]  ;;  %v275_v16 = vadd.f32 1.0, %v266_v6  ;;  %v413_v38 = vmul.f32 1.442695, %v397_v20 }
  0xf0   :  { %v588_v60 = vpop.f32.mrb[11].mxu0  ;;  %v757_v17 = vadd.f32 %v699_v9, %v202_v13  ;;  %v276_v21 = vadd.f32 1.0, %v267_v7  ;;  %v762_v22 = vmul.f32 0.70710677, %v747_v8  ;;  %v383_v41 = vsub.f32 0.0, %v257_v63 }
  0xf1   :  { %619 = vrcp.f32 %v275_v16  ;;  %v384_v48 = vsub.f32 0.0, %v738_v0  ;;  %v800_v7 = vadd.f32 %v699_v9, %v717_v52  ;;  %vm239_vm6 = vcmp.ge.f32.partialorder %v722_v55, 0.0 }
  0xf2   :  { %v743_v4 = vpop.eup %611  ;;  %v767_v29 = vmul.f32 0.70710677, %v757_v17  ;;  %621 = vrcp.f32 %v276_v21  ;;  %v789_v30 = vand.u32 2147483647, %v762_v22  ;;  %v392_v62 = vmul.f32 %v383_v41, %v257_v63 }
  0xf3   :  { %v749_v10 = vpop.eup %613  ;;  %v300_v11 = vmul.f32 1.0614054, %v743_v4  ;;  %623 = vpow2.f32 %v399_v19  ;;  %v393_v15 = vmul.f32 %v384_v48, %v738_v0  ;;  %v819_v48 = vmul.f32 0.70710677, %v800_v7 }
  0xf4   :  { %v306_v14 = vmul.f32 1.0614054, %v749_v10  ;;  %v759_v23 = vpop.eup %615  ;;  %625 = vpow2.f32 %v411_v26  ;;  %v786_v43 = vand.u32 2147483647, %v767_v29  ;;  %v268_v1 = vmul.f32 0.3275911, %v789_v30 }
  0xf5   :  { %v309_v18 = vadd.f32 -1.4531521, %v300_v11  ;;  %v301_v28 = vmul.f32 1.0614054, %v759_v23  ;;  %v780_v35 = vpop.eup %617  ;;  %627 = vpow2.f32 %v401_v33  ;;  %v403_v9 = vmul.f32 1.442695, %v392_v62 }
  0xf6   :  { %v315_v24 = vadd.f32 -1.4531521, %v306_v14  ;;  %v307_v40 = vmul.f32 1.0614054, %v780_v35  ;;  %629 = vpow2.f32 %v413_v38  ;;  %v272_v51 = vmul.f32 0.3275911, %v786_v43 }
  0xf7   :  { %v318_v27 = vmul.f32 %v743_v4, %v309_v18  ;;  %v310_v37 = vadd.f32 -1.4531521, %v301_v28  ;;  %v277_v16 = vadd.f32 1.0, %v268_v1  ;;  %v405_v38 = vmul.f32 1.442695, %v393_v15 }
  0xf8   :  { %v324_v31 = vmul.f32 %v749_v10, %v315_v24  ;;  %v316_v45 = vadd.f32 -1.4531521, %v307_v40  ;;  %v281_v6 = vadd.f32 1.0, %v272_v51  ;;  %v830_v15 = vand.u32 2147483647, %v819_v48 }
  0xf9   :  { %v327_v36 = vadd.f32 1.4214138, %v318_v27  ;;  %v319_v42 = vmul.f32 %v759_v23, %v310_v37  ;;  %vm240_vm7 = vcmp.ge.f32.partialorder %v725_v56, 0.0  ;;  %vm245_vm8 = vcmp.ge.f32.partialorder %v767_v29, 0.0 }
  0xfa   :  { %v333_v39 = vadd.f32 1.4214138, %v324_v31  ;;  %v325_v60 = vmul.f32 %v780_v35, %v316_v45  ;;  %631 = vrcp.f32 %v281_v6  ;;  %v227_v29 = vmul.f32 0.5, %v757_v17 }
  0xfb   :  { %v336_v25 = vmul.f32 %v743_v4, %v327_v36  ;;  %v328_v50 = vadd.f32 1.4214138, %v319_v42  ;;  %v802_v11 = vpop.eup %619  ;;  %633 = vrcp.f32 %v277_v16  ;;  %vm241_vm9 = vcmp.ge.f32.partialorder %v762_v22, 0.0 }
  0xfc   :  { %v342_v44 = vmul.f32 %v749_v10, %v333_v39  ;;  %v334_v14 = vadd.f32 1.4214138, %v325_v60  ;;  %v806_v63 = vpop.eup %621  ;;  %v302_v20 = vmul.f32 1.0614054, %v802_v11  ;;  %635 = vpow2.f32 %v403_v9 }
  0xfd   :  { %v345_v49 = vadd.f32 -0.28449672, %v336_v25  ;;  %v337_v5 = vmul.f32 %v759_v23, %v328_v50  ;;  %v303_v52 = vmul.f32 1.0614054, %v806_v63  ;;  %v624_v26 = vpop.eup %623  ;;  %v389_v25 = vsub.f32 0.0, %v786_v43 }
  0xfe   :  { %v351_v54 = vadd.f32 -0.28449672, %v342_v44  ;;  %v343_v24 = vmul.f32 %v780_v35, %v334_v14  ;;  %v311_v0 = vadd.f32 -1.4531521, %v302_v20  ;;  %v626_v31 = vpop.eup %625  ;;  %637 = vpow2.f32 %v405_v38 }
  0xff   :  { %v354_v3 = vmul.f32 %v743_v4, %v345_v49  ;;  %v346_v19 = vadd.f32 -0.28449672, %v337_v5  ;;  %v312_v37 = vadd.f32 -1.4531521, %v303_v52  ;;  %v628_v42 = vpop.eup %627  ;;  %v398_v6 = vmul.f32 %v389_v25, %v786_v43 }
 0x100   :  { %v360_v13 = vmul.f32 %v749_v10, %v351_v54  ;;  %v352_v36 = vadd.f32 -0.28449672, %v343_v24  ;;  %v320_v41 = vmul.f32 %v802_v11, %v311_v0  ;;  %v630_v49 = vpop.eup %629  ;;  %v250_v17 = vsel %vm241_vm9, 1.0, %v649_v57 }
 0x101   :  { %v363_v18 = vadd.f32 0.2548296, %v354_v3  ;;  %v355_v28 = vmul.f32 %v759_v23, %v346_v19  ;;  %v321_v45 = vmul.f32 %v806_v63, %v312_v37  ;;  %v385_v19 = vsub.f32 0.0, %v789_v30 }
 0x102   :  { %v369_v21 = vadd.f32 0.2548296, %v360_v13  ;;  %v329_v51 = vadd.f32 1.4214138, %v320_v41  ;;  %v415_v52 = vmul.f32 1.442695, %v398_v6 }
 0x103   :  { %v372_v27 = vmul.f32 %v743_v4, %v363_v18  ;;  %v364_v40 = vadd.f32 0.2548296, %v355_v28  ;;  %v361_v4 = vmul.f32 %v780_v35, %v352_v36  ;;  %v330_v62 = vadd.f32 1.4214138, %v321_v45 }
 0x104   :  { %v378_v33 = vmul.f32 %v749_v10, %v369_v21  ;;  %v338_v5 = vmul.f32 %v802_v11, %v329_v51  ;;  %v832_v16 = vpop.eup %631  ;;  %vm242_vm10 = vcmp.ge.f32.partialorder %v819_v48, 0.0 }
 0x105   :  { %v417_v39 = vmul.f32 %v624_v26, %v372_v27  ;;  %v373_v50 = vmul.f32 %v759_v23, %v364_v40  ;;  %v370_v60 = vadd.f32 0.2548296, %v361_v4  ;;  %v339_v23 = vmul.f32 %v806_v63, %v330_v62  ;;  %v837_v21 = vpop.eup %633 }
 0x106   :  { %v423_v44 = vmul.f32 %v626_v31, %v378_v33  ;;  %v269_v26 = vmul.f32 0.3275911, %v830_v15  ;;  %v304_v37 = vmul.f32 1.0614054, %v837_v21  ;;  %v636_v25 = vpop.eup %635 }
 0x107   :  { %v426_v10 = vsub.f32 1.0, %v417_v39  ;;  %v418_v3 = vmul.f32 %v628_v42, %v373_v50  ;;  %v379_v14 = vmul.f32 %v780_v35, %v370_v60  ;;  %v348_v35 = vadd.f32 -0.28449672, %v339_v23 }
 0x108   :  { %v432_v54 = vsub.f32 1.0, %v423_v44  ;;  %v278_v38 = vadd.f32 1.0, %v269_v26  ;;  %v313_v4 = vadd.f32 -1.4531521, %v304_v37  ;;  %v638_v45 = vpop.eup %637  ;;  %v386_v23 = vsub.f32 0.0, %v830_v15 }
 0x109   :  { %v435_v1 = vmul.f32 %v426_v10, %v729_v58  ;;  %v427_v18 = vsub.f32 1.0, %v418_v3  ;;  %v347_v58 = vadd.f32 -0.28449672, %v338_v5  ;;  %v424_v20 = vmul.f32 %v630_v49, %v379_v14 }
 0x10a   :  { %v441_v13 = vmul.f32 %v432_v54, %v734_v61  ;;  %v308_v61 = vmul.f32 1.0614054, %v832_v16  ;;  %v357_v31 = vmul.f32 %v806_v63, %v348_v35  ;;  %639 = vrcp.f32 %v278_v38 }
 0x10b   :  { %v444_v43 = vadd.f32 1.0, %v435_v1  ;;  %v436_v24 = vmul.f32 %v427_v18, %v773_v32  ;;  %v356_v9 = vmul.f32 %v802_v11, %v347_v58  ;;  %v433_v28 = vsub.f32 1.0, %v424_v20 }
 0x10c   :  { %v450_v27 = vadd.f32 1.0, %v441_v13  ;;  %v317_v0 = vadd.f32 -1.4531521, %v308_v61  ;;  %v366_v41 = vadd.f32 0.2548296, %v357_v31  ;;  %641 = vpow2.f32 %v415_v52 }
 0x10d   :  { %v445_v33 = vadd.f32 1.0, %v436_v24  ;;  %v365_v36 = vadd.f32 0.2548296, %v356_v9  ;;  %v453_v39 = vmul.f32 %v444_v43, %v719_v53  ;;  %v442_v40 = vmul.f32 %v433_v28, %v778_v34 }
 0x10e   :  { %v326_v32 = vmul.f32 %v832_v16, %v317_v0  ;;  %v375_v50 = vmul.f32 %v806_v63, %v366_v41  ;;  %v322_v34 = vmul.f32 %v837_v21, %v313_v4  ;;  %v394_v54 = vmul.f32 %v385_v19, %v789_v30 }
 0x10f   :  { %v454_v42 = vmul.f32 %v445_v33, %v740_v2  ;;  %v374_v44 = vmul.f32 %v802_v11, %v365_v36  ;;  %v451_v49 = vadd.f32 1.0, %v442_v40  ;;  %v459_v60 = vmul.f32 %v450_v27, %v731_v59 }
 0x110   :  { %v335_v10 = vadd.f32 1.4214138, %v326_v32  ;;  %v420_v62 = vmul.f32 %v638_v45, %v375_v50  ;;  %v248_v63 = vsel %vm239_vm6, 1.0, %v649_v57  ;;  %v331_v3 = vadd.f32 1.4214138, %v322_v34 }
 0x111   :  { %v546_v51 = vpack.c.bf16 %v454_v42, %v453_v39  ;;  %v419_v53 = vmul.f32 %v636_v25, %v374_v44  ;;  %v460_v2 = vmul.f32 %v451_v49, %v752_v12  ;;  %v249_v59 = vsel %vm240_vm7, 1.0, %v649_v57 }
 0x112   :  { %v344_v11 = vmul.f32 %v832_v16, %v335_v10  ;;  %v429_v12 = vsub.f32 1.0, %v420_v62  ;;  %v340_v13 = vmul.f32 %v837_v21, %v331_v3  ;;  %v407_v14 = vmul.f32 1.442695, %v394_v54 }
 0x113   :  { %547 = vst [vmem:[%s897_s3] sm:$0xff] %v546_v51   ;;  %v428_v1 = vsub.f32 1.0, %v419_v53  ;;  %v561_v5 = vpack.c.bf16 %v460_v2, %v459_v60  ;;  %v221_v43 = vmul.f32 0.5, %v712_v46  ;;  %v222_v20 = vmul.f32 0.5, %v715_v47 }
 0x114   :  { %v353_v6 = vadd.f32 -0.28449672, %v344_v11  ;;  %v438_v18 = vmul.f32 %v429_v12, %v249_v59  ;;  %v349_v19 = vadd.f32 -0.28449672, %v340_v13  ;;  %v640_v35 = vpop.eup %639  ;;  %643 = vpow2.f32 %v407_v14 }
 0x115   :  { %v437_v30 = vmul.f32 %v428_v1, %v248_v63  ;;  %565 = vst [vmem:[%s897_s3 + $0x18] sm:$0xff] %v561_v5   ;;  %v395_v9 = vmul.f32 %v386_v23, %v830_v15  ;;  %v305_v0 = vmul.f32 1.0614054, %v640_v35  ;;  %v254_v15 = vsel %vm245_vm8, 1.0, %v649_v57 }
 0x116   :  { %v362_v55 = vmul.f32 %v832_v16, %v353_v6  ;;  %v447_v61 = vadd.f32 1.0, %v438_v18  ;;  %v358_v24 = vmul.f32 %v837_v21, %v349_v19  ;;  %v642_v52 = vpop.eup %641  ;;  %v251_v60 = vsel %vm242_vm10, 1.0, %v649_v57 }
 0x117   :  { %v446_v58 = vadd.f32 1.0, %v437_v30  ;;  %v314_v36 = vadd.f32 -1.4531521, %v305_v0  ;;  %v409_v47 = vmul.f32 1.442695, %v395_v9  ;;  %v223_v62 = vmul.f32 0.5, %v747_v8 }
 0x118   :  { %v371_v56 = vadd.f32 0.2548296, %v362_v55  ;;  %v456_v28 = vmul.f32 %v447_v61, %v222_v20  ;;  %v367_v33 = vadd.f32 0.2548296, %v358_v24  ;;  %v224_v63 = vmul.f32 0.5, %v800_v7 }
 0x119   :  { %v455_v26 = vmul.f32 %v446_v58, %v221_v43  ;;  %v323_v38 = vmul.f32 %v640_v35, %v314_v36  ;;  %645 = vpow2.f32 %v409_v47 }
 0x11a   :  { %v380_v27 = vmul.f32 %v832_v16, %v371_v56  ;;  %v376_v16 = vmul.f32 %v837_v21, %v367_v33 }
 0x11b   :  { %v551_v46 = vpack.c.bf16 %v456_v28, %v455_v26  ;;  %v332_v40 = vadd.f32 1.4214138, %v323_v38 }
 0x11c   :  { %v425_v31 = vmul.f32 %v642_v52, %v380_v27 }
 0x11d   :  { %563 = vst [vmem:[%s897_s3 + $0x8] sm:$0xff] %v551_v46   ;;  %v341_v41 = vmul.f32 %v640_v35, %v332_v40 }
 0x11e   :  { %v434_v37 = vsub.f32 1.0, %v425_v31  ;;  %v644_v25 = vpop.eup %643 }
 0x11f   :  { %v421_v44 = vmul.f32 %v644_v25, %v376_v16  ;;  %v350_v4 = vadd.f32 -0.28449672, %v341_v41 }
 0x120   :  { %v443_v39 = vmul.f32 %v434_v37, %v254_v15 }
 0x121   :  { %v359_v49 = vmul.f32 %v640_v35, %v350_v4  ;;  %v430_v10 = vsub.f32 1.0, %v421_v44 }
 0x122   :  { %v452_v32 = vadd.f32 1.0, %v443_v39 }
 0x123   :  { %v368_v21 = vadd.f32 0.2548296, %v359_v49  ;;  %v646_v51 = vpop.eup %645  ;;  %v439_v53 = vmul.f32 %v430_v10, %v250_v17 }
 0x124   :  { %v461_v42 = vmul.f32 %v452_v32, %v227_v29 }
 0x125   :  { %v377_v50 = vmul.f32 %v640_v35, %v368_v21  ;;  %v448_v2 = vadd.f32 1.0, %v439_v53 }
 0x126   :  { %v542_v45 = vpack.c.bf16 %v461_v42, %v461_v42 }
 0x127   :  { %v422_v34 = vmul.f32 %v646_v51, %v377_v50  ;;  %v457_v1 = vmul.f32 %v448_v2, %v223_v62 }
 0x128   :  { %507 = vst [vmem:[%s897_s3 + $0x20] sm:$0x3] %v542_v45 }
 0x129   :  { %v431_v54 = vsub.f32 1.0, %v422_v34 }
 0x12b   :  { %v440_v11 = vmul.f32 %v431_v54, %v251_v60 }
 0x12d   :  { %v449_v22 = vadd.f32 1.0, %v440_v11 }
 0x12f   :  { %v458_v3 = vmul.f32 %v449_v22, %v224_v63 }
 0x131   :  { %v556_v5 = vpack.c.bf16 %v458_v3, %v457_v1 }
 0x133   :  { %564 = vst [vmem:[%s897_s3 + $0x10] sm:$0xff] %v556_v5  }

// kernel: _lambda_.47
= control target key start
LH: loop header
LB: loop body
LE: loop exit
PB: predicated region body
PF: predicated region fallthrough
CT: control target
= control target key end

     0   :  { %v441_v0 = vmov 0.0   ;;  %vm442_vm0 = vmmov 0   ;;  %s525_s1 = inlined_call_operand.vmem [shape: bf16[128,128], index: 1, kind: input, shape index: {}]   ;;  %s526_s0 = inlined_call_operand.vmem [shape: bf16[68,128], index: 0, kind: input, shape index: {}]   ;;  %s527_s2 = inlined_call_operand.vmem [shape: f32[1,128], index: 2, kind: input, shape index: {}]   ;;  %s528_s3 = inlined_call_operand.vmem [shape: bf16[68,128], index: 3, kind: output, shape index: {}]  }
   0x1   :  { %374 = vmatprep.subr.bf16.mxu0 %v441_v0  ;;  %27 = vst [vmem:[#allocation2 + $0x40] sm:$0xf] %v441_v0  ;;  %v428_v1 = vld [vmem:[%s525_s1] sm:$0xff]   ;;  %410 = vmatprep.subr.bf16.mxu1 %v441_v0  ;;  %v429_v2 = vld [vmem:[%s525_s1 + $0x8] sm:$0xff]   ;;  %v430_v3 = vld [vmem:[%s525_s1 + $0x10] sm:$0xff]  }
   0x2   :  { %390 = vmatprep.mubr.msk.bf16.mxu0 %vm442_vm0, %v441_v0  ;;  %402 = vmatprep.mubr.msk.bf16.mxu1 %vm442_vm0, %v441_v0  ;;  %v431_v4 = vld [vmem:[%s525_s1 + $0x18] sm:$0xff]   ;;  %v432_v5 = vld [vmem:[%s525_s1 + $0x20] sm:$0xff]   ;;  %v433_v6 = vld [vmem:[%s525_s1 + $0x28] sm:$0xff]  }
   0x3   :  { %375 = vmatpush3.bf16.msra.mxu0 %v428_v1  ;;  %418 = vmatpush3.bf16.msra.mxu1 %v428_v1  ;;  %v434_v7 = vld [vmem:[%s525_s1 + $0x30] sm:$0xff]   ;;  %v435_v8 = vld [vmem:[%s525_s1 + $0x38] sm:$0xff]   ;;  %v436_v9 = vld [vmem:[%s526_s0] sm:$0xff]  }
   0x4   :  { %376 = vmatprep.subr.bf16.mxu0 %v441_v0  ;;  %411 = vmatprep.subr.bf16.mxu1 %v441_v0  ;;  %v437_v10 = vld [vmem:[%s526_s0 + $0x18] sm:$0xff]   ;;  %v438_v11 = vld [vmem:[%s526_s0 + $0x8] sm:$0xff]   ;;  %v439_v12 = vld [vmem:[%s526_s0 + $0x20] ss:$0 sps:$4 sm:$0x33]  }
   0x5   :  { %v440_v13 = vld [vmem:[%s526_s0 + $0x10] sm:$0xff]   ;;  %v319_v18 = vld [vmem:[%s527_s2] ss:$0 sm:$0xff] }
   0x7   :  { %377 = vmatpush3.bf16.msra.mxu0 %v429_v2  ;;  %419 = vmatpush3.bf16.msra.mxu1 %v429_v2 }
   0x8   :  { %378 = vmatprep.subr.bf16.mxu0 %v441_v0  ;;  %412 = vmatprep.subr.bf16.mxu1 %v441_v0  ;;  %v36_v27 = vld [vmem:[#allocation2 + $0x40] sm:$0xf] }
   0xb   :  { %379 = vmatpush3.bf16.msra.mxu0 %v430_v3  ;;  %420 = vmatpush3.bf16.msra.mxu1 %v430_v3 }
   0xc   :  { %380 = vmatprep.subr.bf16.mxu0 %v441_v0  ;;  %413 = vmatprep.subr.bf16.mxu1 %v441_v0 }
   0xf   :  { %381 = vmatpush3.bf16.msra.mxu0 %v431_v4  ;;  %421 = vmatpush3.bf16.msra.mxu1 %v431_v4 }
  0x10   :  { %382 = vmatprep.subr.bf16.mxu0 %v441_v0  ;;  %414 = vmatprep.subr.bf16.mxu1 %v441_v0 }
  0x13   :  { %383 = vmatpush3.bf16.msra.mxu0 %v432_v5  ;;  %422 = vmatpush3.bf16.msra.mxu1 %v432_v5 }
  0x14   :  { %384 = vmatprep.subr.bf16.mxu0 %v441_v0  ;;  %415 = vmatprep.subr.bf16.mxu1 %v441_v0 }
  0x17   :  { %385 = vmatpush3.bf16.msra.mxu0 %v433_v6  ;;  %423 = vmatpush3.bf16.msra.mxu1 %v433_v6 }
  0x18   :  { %386 = vmatprep.subr.bf16.mxu0 %v441_v0  ;;  %416 = vmatprep.subr.bf16.mxu1 %v441_v0 }
  0x1b   :  { %387 = vmatpush3.bf16.msra.mxu0 %v434_v7  ;;  %424 = vmatpush3.bf16.msra.mxu1 %v434_v7 }
  0x1c   :  { %388 = vmatprep.subr.bf16.mxu0 %v441_v0  ;;  %417 = vmatprep.subr.bf16.mxu1 %v441_v0 }
  0x1f   :  { %389 = vmatpush3.bf16.msra.mxu0 %v435_v8  ;;  %425 = vmatpush3.bf16.msra.mxu1 %v435_v8 }
  0x22   :  { %391 = vmatmul.mubr.bf16.vlgmr.msra.gmra.mrb[0].mxu0 %v436_v9  ;;  %403 = vmatmul.mubr.bf16.vlgmr.msra.gmra.mrb[0].mxu1 %v437_v10 }
  0x23   :  { %394 = vmatprep.mubr.msk.bf16.mxu0 %vm442_vm0, %v441_v0  ;;  %406 = vmatprep.mubr.msk.bf16.mxu1 %vm442_vm0, %v441_v0 }
  0x2a   :  { %395 = vmatmul.mubr.bf16.gmra.mrb[4].mxu0 %v438_v11  ;;  %407 = vmatmul.mubr.bf16.gmra.mrb[4].mxu1 %v439_v12 }
  0x2b   :  { %398 = vmatprep.mubr.msk.bf16.mxu0 %vm442_vm0, %v441_v0 }
  0x32   :  { %399 = vmatmul.mubr.bf16.gmra.mrb[8].mxu0 %v440_v13 }
  0xf5   :  { %v172_v14 = vpop.f32.mrb[0].mxu0  ;;  %v196_v15 = vpop.f32.mrb[0].mxu1 }
  0xf6   :  { %v392_v16 = vpop.f32.mrb[1].mxu0  ;;  %v404_v17 = vpop.f32.mrb[1].mxu1  ;;  %v253_v22 = vadd.f32 %v319_v18, %v196_v15  ;;  %v247_v24 = vadd.f32 %v319_v18, %v172_v14 }
  0xf7   :  { %v175_v19 = vpop.f32.mrb[2].mxu0  ;;  %v199_v20 = vpop.f32.mrb[2].mxu1 }
  0xf8   :  { %v393_v21 = vpop.f32.mrb[3].mxu0  ;;  %v405_v23 = vpop.f32.mrb[3].mxu1  ;;  %v248_v25 = vadd.f32 %v319_v18, %v175_v19  ;;  %v254_v26 = vadd.f32 %v319_v18, %v199_v20 }
  0xfa   :  { %v341_v28 = vpack.c.bf16 %v248_v25, %v247_v24  ;;  %v356_v29 = vpack.c.bf16 %v254_v26, %v253_v22 }
  0xfc   :  { %342 = vst [vmem:[%s528_s3] sm:$0xff] %v341_v28   ;;  %360 = vst [vmem:[%s528_s3 + $0x18] sm:$0xff] %v356_v29  }
  0xfd   :  { %v180_v30 = vpop.f32.mrb[4].mxu0  ;;  %v204_v31 = vpop.f32.mrb[4].mxu1 }
  0xfe   :  { %v396_v32 = vpop.f32.mrb[5].mxu0  ;;  %v218_v33 = vadd.f32 %v204_v31, %v36_v27  ;;  %v408_v34 = vpop.f32.mrb[5].mxu1  ;;  %v249_v39 = vadd.f32 %v319_v18, %v180_v30 }
  0xff   :  { %v183_v35 = vpop.f32.mrb[6].mxu0  ;;  %v207_v36 = vpop.f32.mrb[6].mxu1 }
 0x100   :  { %v397_v37 = vpop.f32.mrb[7].mxu0  ;;  %227 = vst [vmem:[#allocation2 + $0x40] sm:$0xf] %v218_v33  ;;  %v409_v38 = vpop.f32.mrb[7].mxu1  ;;  %v250_v40 = vadd.f32 %v319_v18, %v183_v35 }
 0x102   :  { %v346_v41 = vpack.c.bf16 %v250_v40, %v249_v39 }
 0x104   :  { %358 = vst [vmem:[%s528_s3 + $0x8] sm:$0xff] %v346_v41  }
 0x105   :  { %v188_v42 = vpop.f32.mrb[8].mxu0 }
 0x106   :  { %v400_v43 = vpop.f32.mrb[9].mxu0  ;;  %v251_v49 = vadd.f32 %v319_v18, %v188_v42 }
 0x107   :  { %v239_v44 = vld [vmem:[#allocation2 + $0x40] sm:$0xf]  ;;  %v191_v45 = vpop.f32.mrb[10].mxu0 }
 0x108   :  { %v255_v46 = vadd.f32 %v319_v18, %v239_v44  ;;  %v401_v47 = vpop.f32.mrb[11].mxu0  ;;  %v252_v50 = vadd.f32 %v319_v18, %v191_v45 }
 0x10a   :  { %v337_v48 = vpack.c.bf16 %v255_v46, %v255_v46  ;;  %v351_v51 = vpack.c.bf16 %v252_v50, %v251_v49 }
 0x10c   :  { %301 = vst [vmem:[%s528_s3 + $0x20] sm:$0x3] %v337_v48  ;;  %359 = vst [vmem:[%s528_s3 + $0x10] sm:$0xff] %v351_v51  }

// kernel: _lambda_.43
= control target key start
LH: loop header
LB: loop body
LE: loop exit
PB: predicated region body
PF: predicated region fallthrough
CT: control target
= control target key end

     0   :  { %s2529_s9 = smov 0   ;;  %s2531_s10 = smov 0   ;;  %s3386_s0 = inlined_call_operand.vmem [shape: bf16[2,40,96], index: 0, kind: input, shape index: {}, may-alias: {0,1}]   ;;  %s3387_s1 = inlined_call_operand.vmem [shape: bf16[2,40,96], index: 1, kind: input, shape index: {}, may-alias: {0,1}]   ;;  %s3388_s2 = inlined_call_operand.vmem [shape: bf16[2,40,32], index: 2, kind: output, shape index: {}]  }
   0x1   :  { %s2533_s11 = smov 0  }
   0x2 LB: > { %s31_s12 = sadd.s32 1, %s2487_s10  ;;  %p2062_p0 = scmp.ge.s32.totalorder %s2491_s11, 1  ;;  %s2491_s11 = sphi %s2533_s11, %s12_s11   ;;  %s2487_s10 = sphi %s2531_s10, %s3404_s10   ;;  %s2483_s9 = sphi %s2529_s9, %s3403_s9  }
   0x3   : > { %p33_p1 = scmp.ge.s32.totalorder %s31_s12, 2  ;;  %p157_p2 = scmp.lt.s32.totalorder %s2491_s11, 3 }
   0x5   : > { %s3406_s12 = smov (%p33_p1, %s31_s12), 0  ;;  %p158_p3 = pnand %p2062_p0, %p157_p2 }
   0x6   : > { %p197_p4 = scmp.lt.s32.totalorder (!%p158_p3), %s2483_s9, 1  ;;  %v2493_v0 = vmov (!%p158_p3), 0.0   ;;  %s2494_s17 = smov (!%p158_p3), 96   ;;  %vm2495_vm0 = vmmov (!%p158_p3), 0   ;;  %vm297_vm1 = vcmask (!%p158_p3), 64512   ;;  %vm231_vm2 = vcmask (!%p158_p3), 31744  }
   0x7   : > { %161 = sbr.rel (%p158_p3) target bundleno = 1853 (0x73d), region = 28  ;;  %2156 = vmatprep.subr.bf16.mxu0 (!%p158_p3), %v2493_v0  ;;  %2174 = vmatprep.subr.bf16.mxu1 (!%p158_p3), %v2493_v0  ;;  %v2496_v13 = vmov (!%p158_p3), -1e+30   ;;  %237 = vst.msk [vmem:[#allocation3] sm:$0xff] (!%p158_p3), %vm231_vm2, %v2493_v0  ;;  %238 = vst.msk [vmem:[#allocation3 + $0x8] sm:$0xff] (!%p158_p3), %vm231_vm2, %v2493_v0  ;;  %v259_v14 = vlaneseq (!%p158_p3)  ;;  %vm387_vm4 = vcmask (!%p158_p3), 326656  }
   0x8   : > { %2162 = vmatprep.mubr.msk.bf16.mxu0 (!%p158_p3), %vm2495_vm0, %v2493_v0  ;;  %2180 = vmatprep.mubr.msk.bf16.mxu1 (!%p158_p3), %vm2495_vm0, %v2493_v0  ;;  %232 = vst.msk [vmem:[#allocation2] sm:$0xff] (!%p158_p3), %vm231_vm2, %v2496_v13  ;;  %233 = vst.msk [vmem:[#allocation2 + $0x8] sm:$0xff] (!%p158_p3), %vm231_vm2, %v2496_v13  ;;  %v2497_v44 = vmov (!%p158_p3), 0   ;;  %vm493_vm5 = vcmask (!%p158_p3), 7168   ;;  %s2498_s21 = smov (!%p158_p3), 64   ;;  %s2499_s22 = smov (!%p158_p3), 88  }
   0x9   : > { %234 = vst.msk [vmem:[#allocation2 + $0x10] sm:$0xff] (!%p158_p3), %vm231_vm2, %v2496_v13  ;;  %235 = vst.msk [vmem:[#allocation2 + $0x18] sm:$0xff] (!%p158_p3), %vm231_vm2, %v2496_v13  ;;  %v260_v15 = vand.u32 (!%p158_p3), 127, %v259_v14  ;;  %2346 = vset.pattern.permute.xlu1 (!%p158_p3), %v2497_v44  ;;  %2347 = vset.pattern.permute.xlu0 (!%p158_p3), %v2497_v44  ;;  %s2500_s23 = smov (!%p158_p3), 80   ;;  %s2501_s24 = smov (!%p158_p3), 72   ;;  %vm554_vm6 = vcmask (!%p158_p3), 1043456  }
   0xa   : > { %236 = vst.msk [vmem:[#allocation2 + $0x20] sm:$0xff] (!%p158_p3), %vm231_vm2, %v2496_v13  ;;  %239 = vst.msk [vmem:[#allocation3 + $0x10] sm:$0xff] (!%p158_p3), %vm231_vm2, %v2493_v0  ;;  %s2502_s25 = smov (!%p158_p3), 104   ;;  %s2503_s26 = smov (!%p158_p3), 120   ;;  %vm242_vm7 = vcmask (!%p158_p3), 261120   ;;  %vm835_vm8 = vcmask (!%p158_p3), 15368  }
   0xb   : > { %240 = vst.msk [vmem:[#allocation3 + $0x18] sm:$0xff] (!%p158_p3), %vm231_vm2, %v2493_v0  ;;  %241 = vst.msk [vmem:[#allocation3 + $0x20] sm:$0xff] (!%p158_p3), %vm231_vm2, %v2493_v0  ;;  %vm263_vm3 = vcmp.lt.s32.totalorder (!%p158_p3), %v260_v15, 34  ;;  %s2504_s27 = smov (!%p158_p3), 112   ;;  %s2506_s28 = smov (!%p158_p3), 56   ;;  %vm1197_vm9 = vcmask (!%p158_p3), 23568  }
   0xc   : > { %v2606_v17 = vsel (!%p158_p3), %vm263_vm3, 0.0, %v2496_v13  ;;  %243 = vst.msk [vmem:[#allocation4] sm:$0xff] (!%p158_p3), %vm242_vm7, %v2493_v0  ;;  %244 = vst.msk [vmem:[#allocation4 + $0x8] sm:$0xff] (!%p158_p3), %vm242_vm7, %v2493_v0  ;;  %s2508_s29 = smov (!%p158_p3), 48   ;;  %vm1559_vm10 = vcmask (!%p158_p3), 31768   ;;  %s2510_s30 = smov (!%p158_p3), 40  }
   0xd   : > { %245 = vst.msk [vmem:[#allocation4 + $0x10] sm:$0xff] (!%p158_p3), %vm242_vm7, %v2493_v0  ;;  %246 = vst.msk [vmem:[#allocation4 + $0x18] sm:$0xff] (!%p158_p3), %vm242_vm7, %v2493_v0  ;;  %s2511_s3 = smov (!%p158_p3), 8   ;;  %vm980_vm11 = vcmask (!%p158_p3), 130112   ;;  %s2512_s4 = smov (!%p158_p3), 16   ;;  %vm1342_vm12 = vcmask (!%p158_p3), 195712  }
   0xe   : > { %s3408_s9 = smov (!%p197_p4, %s2483_s9), 1  ;;  %247 = vst.msk [vmem:[#allocation4 + $0x20] sm:$0xff] %vm242_vm7, %v2493_v0  ;;  %s2513_s5 = smov 24   ;;  %vm1704_vm13 = vcmask 261312   ;;  %vm1944_vm14 = vcmask 257024  }
   0xf   : > { %s2549_s13 = smul.u32 20, %s3408_s9  ;;  %v2635_v45 = vld [vmem:[#allocation2] sm:$0xff]  ;;  %v2637_v47 = vld [vmem:[#allocation2 + $0x8] sm:$0xff] }
  0x10   : > { %v2655_v53 = vld [vmem:[#allocation2 + $0x10] sm:$0xff]  ;;  %v2658_v55 = vld [vmem:[#allocation2 + $0x18] sm:$0xff] }
  0x11   : > { %s2555_s16 = scalar_lea.vmem %s3387_s1, %s2549_s13  ;;  %s204_s20 = scalar_lea.vmem %s3386_s0, %s2549_s13  ;;  %v2677_v61 = vld [vmem:[#allocation2 + $0x20] sm:$0xff] }
  0x12   : > { %v2558_v1 = vld [vmem:[%s2555_s16] sm:$0xff]   ;;  %v2562_v2 = vld [vmem:[%s2555_s16 + $0x8] sm:$0xff]   ;;  %v2565_v3 = vld [vmem:[%s2555_s16 + $0x10] ss:$0 sps:$4 sm:$0xff]   ;;  %s224_s8 = scalar_lea.vmem %s3388_s2, %s2549_s13 }
  0x13   : > { %291 = vrot.lane.b32.xlu0 %v2558_v1, %s2494_s17  ;;  %295 = vrot.lane.b32.xlu1 %v2565_v3, %s2494_s17  ;;  %v2583_v10 = vld [vmem:[%s204_s20] sm:$0xff]   ;;  %v2589_v11 = vld [vmem:[%s204_s20 + $0x8] sm:$0xff]  }
  0x14   : > { %v2595_v12 = vld [vmem:[%s204_s20 + $0x10] ss:$0 sps:$4 sm:$0xff]  }
  0x17   : > { %293 = vrot.lane.b32.xlu0 %v2562_v2, %s2494_s17 }
  0x85   : > { %v292_v4 = vpop.permute.xlu0 %291  ;;  %v296_v8 = vpop.permute.xlu1 %295 }
  0x86   : > { %v308_v5 = vsel %vm297_vm1, %v292_v4, 0  ;;  %v314_v9 = vsel %vm297_vm1, %v296_v8, 0 }
  0x87   : > { %2157 = vmatpush3.bf16.xpose.msra.mxu0 %v308_v5 }
  0x88   : > { %2158 = vmatprep.subr.bf16.mxu0 %v2493_v0 }
  0x89   : > { %v294_v6 = vpop.permute.xlu0 %293 }
  0x8a   : > { %v311_v7 = vsel %vm297_vm1, %v294_v6, 0 }
  0x8f   : > { %2159 = vmatpush3.bf16.xpose.msra.mxu0 %v311_v7 }
  0x90   : > { %2160 = vmatprep.subr.bf16.mxu0 %v2493_v0 }
  0x97   : > { %2161 = vmatpush3.bf16.xpose.msra.mxu0 %v314_v9 }
  0x98   : > { %2210 = vmatprep.subr.bf16.mxu0 %v2493_v0 }
  0x9e   : > { %2163 = vmatmul.mubr.msk.bf16.vlgmr.msra.gmra.mrb[0].mxu0 %vm297_vm1, %v2583_v10 }
  0x9f   : > { %2166 = vmatprep.mubr.msk.bf16.mxu0 %vm2495_vm0, %v2493_v0 }
  0xa6   : > { %2167 = vmatmul.mubr.msk.bf16.gmra.mrb[4].mxu0 %vm297_vm1, %v2589_v11 }
  0xa7   : > { %2170 = vmatprep.mubr.msk.bf16.mxu0 %vm2495_vm0, %v2493_v0 }
  0xae   : > { %2171 = vmatmul.mubr.msk.bf16.gmra.mrb[8].mxu0 %vm297_vm1, %v2595_v12 }
  0xaf   : > { %2216 = vmatprep.mubr.msk.bf16.mxu0 %vm2495_vm0, %v2493_v0 }
 0x171   : > { %v350_v16 = vpop.f32.mrb[0].mxu0 }
 0x172   : > { %v372_v18 = vmul.f32 0.35355338, %v350_v16  ;;  %v2164_v19 = vpop.f32.mrb[1].mxu0 }
 0x173   : > { %v353_v20 = vpop.f32.mrb[2].mxu0 }
 0x174   : > { %v373_v21 = vmul.f32 0.35355338, %v353_v20  ;;  %v2165_v22 = vpop.f32.mrb[3].mxu0  ;;  %v2609_v23 = vadd.f32 %v372_v18, %v2606_v17 }
 0x176   : > { %v388_v24 = vsel %vm387_vm4, %v2609_v23, -inf  ;;  %v2614_v25 = vadd.f32 %v373_v21, %v2606_v17 }
 0x177   : > { %389 = vmax.xlane.f32.xlu1 %v388_v24 }
 0x178   : > { %v391_v26 = vsel %vm387_vm4, %v2614_v25, -inf }
 0x179   : > { %392 = vmax.xlane.f32.xlu0 %v391_v26  ;;  %v358_v27 = vpop.f32.mrb[4].mxu0 }
 0x17a   : > { %v374_v28 = vmul.f32 0.35355338, %v358_v27  ;;  %v2168_v29 = vpop.f32.mrb[5].mxu0 }
 0x17b   : > { %v361_v30 = vpop.f32.mrb[6].mxu0 }
 0x17c   : > { %v375_v31 = vmul.f32 0.35355338, %v361_v30  ;;  %v2169_v32 = vpop.f32.mrb[7].mxu0  ;;  %v2619_v33 = vadd.f32 %v374_v28, %v2606_v17 }
 0x17e   : > { %v394_v34 = vsel %vm387_vm4, %v2619_v33, -inf  ;;  %v2624_v35 = vadd.f32 %v375_v31, %v2606_v17 }
 0x17f   : > { %395 = vmax.xlane.f32.xlu0 %v394_v34 }
 0x180   : > { %v397_v36 = vsel %vm387_vm4, %v2624_v35, -inf }
 0x181   : > { %398 = vmax.xlane.f32.xlu1 %v397_v36  ;;  %v366_v37 = vpop.f32.mrb[8].mxu0 }
 0x182   : > { %v376_v38 = vmul.f32 0.35355338, %v366_v37  ;;  %v2172_v39 = vpop.f32.mrb[9].mxu0 }
 0x183   : > { %v369_v40 = vpop.f32.mrb[10].mxu0 }
 0x184   : > { %v2173_v41 = vpop.f32.mrb[11].mxu0  ;;  %v2629_v42 = vadd.f32 %v376_v38, %v2606_v17 }
 0x186   : > { %v400_v43 = vsel %vm387_vm4, %v2629_v42, -inf }
 0x187   : > { %401 = vmax.xlane.f32.xlu0 %v400_v43 }
 0x204   : > { %v390_v46 = vpop.xlane.xlu1 %389 }
 0x205   : > { %v2640_v48 = vmax.f32 %v2635_v45, %v390_v46 }
 0x206   : > { %v393_v49 = vpop.xlane.xlu0 %392 }
 0x207   : > { %v408_v50 = vsub.f32 %v2635_v45, %v2640_v48  ;;  %624 = vst.msk [vmem:[#allocation2] sm:$0xff] %vm493_vm5, %v2640_v48  ;;  %v2647_v51 = vmax.f32 %v2637_v47, %v393_v49  ;;  %425 = vperm.xlu1 %2346, %v2640_v48   ;;  %v464_v48 = vld [vmem:[#allocation3 + $0x8] sm:$0xff] }
 0x209   : > { %v409_v52 = vsub.f32 %v2637_v47, %v2647_v51  ;;  %625 = vst.msk [vmem:[#allocation2 + $0x8] sm:$0xff] %vm493_vm5, %v2647_v51  ;;  %430 = vperm.xlu0 %2347, %v2647_v51  }
 0x20b   : > { %537 = vrot.lane.b32.xlu1 %v2558_v1, %s2498_s21 }
 0x20c   : > { %v396_v54 = vpop.xlane.xlu0 %395 }
 0x20d   : > { %v2661_v56 = vmax.f32 %v2655_v53, %v396_v54  ;;  %639 = vrot.lane.b32.xlu0 %v2565_v3, %s2499_s22 }
 0x20e   : > { %v399_v57 = vpop.xlane.xlu1 %398 }
 0x20f   : > { %539 = vrot.lane.b32.xlu1 %v2562_v2, %s2498_s21  ;;  %v410_v58 = vsub.f32 %v2655_v53, %v2661_v56  ;;  %626 = vst.msk [vmem:[#allocation2 + $0x10] sm:$0xff] %vm493_vm5, %v2661_v56  ;;  %v2670_v59 = vmax.f32 %v2658_v55, %v399_v57 }
 0x211   : > { %v411_v60 = vsub.f32 %v2658_v55, %v2670_v59  ;;  %627 = vst.msk [vmem:[#allocation2 + $0x18] sm:$0xff] %vm493_vm5, %v2670_v59  ;;  %997 = vrot.lane.b32.xlu0 %v2558_v1, %s2500_s23 }
 0x213   : > { %435 = vperm.xlu1 %2346, %v2661_v56   ;;  %v419_v45 = vmul.f32 1.442695, %v411_v60 }
 0x214   : > { %v402_v62 = vpop.xlane.xlu0 %401 }
 0x215   : > { %v2681_v63 = vmax.f32 %v2677_v61, %v402_v62  ;;  %999 = vrot.lane.b32.xlu0 %v2562_v2, %s2500_s23 }
 0x217   : > { %440 = vperm.xlu1 %2346, %v2670_v59   ;;  %v412_v4 = vsub.f32 %v2677_v61, %v2681_v63  ;;  %628 = vst.msk [vmem:[#allocation2 + $0x20] sm:$0xff] %vm493_vm5, %v2681_v63  ;;  %v465_v59 = vld [vmem:[#allocation3 + $0x10] sm:$0xff] }
 0x219   : > { %1001 = vrot.lane.b32.xlu0 %v2565_v3, %s2500_s23 }
 0x21b   : > { %541 = vrot.lane.b32.xlu1 %v2565_v3, %s2498_s21 }
 0x21d   : > { %1359 = vrot.lane.b32.xlu0 %v2558_v1, %s2501_s24 }
 0x21f   : > { %445 = vperm.xlu1 %2346, %v2681_v63   ;;  %v467_v63 = vld [vmem:[#allocation3 + $0x20] sm:$0xff] }
 0x221   : > { %1361 = vrot.lane.b32.xlu0 %v2562_v2, %s2501_s24 }
 0x223   : > { %635 = vrot.lane.b32.xlu1 %v2558_v1, %s2499_s22 }
 0x225   : > { %1363 = vrot.lane.b32.xlu0 %v2565_v3, %s2501_s24 }
 0x227   : > { %637 = vrot.lane.b32.xlu1 %v2562_v2, %s2499_s22 }
 0x229   : > { %1355 = vrot.lane.b32.xlu0 %v2589_v11, %s2502_s25 }
 0x22b   : > { %629 = vrot.lane.b32.xlu1 %v2583_v10, %s2503_s26 }
 0x22f   : > { %631 = vrot.lane.b32.xlu1 %v2589_v11, %s2503_s26 }
 0x233   : > { %633 = vrot.lane.b32.xlu1 %v2595_v12, %s2503_s26 }
 0x237   : > { %991 = vrot.lane.b32.xlu1 %v2583_v10, %s2504_s27 }
 0x23b   : > { %993 = vrot.lane.b32.xlu1 %v2589_v11, %s2504_s27 }
 0x23f   : > { %995 = vrot.lane.b32.xlu1 %v2595_v12, %s2504_s27 }
 0x243   : > { %1353 = vrot.lane.b32.xlu1 %v2583_v10, %s2502_s25 }
 0x247   : > { %1357 = vrot.lane.b32.xlu1 %v2595_v12, %s2502_s25 }
 0x286   : > { %v426_v5 = vpop.permute.xlu1 %425 }
 0x287   : > { %v448_v6 = vsub.f32 %v2609_v23, %v426_v5 }
 0x288   : > { %v431_v7 = vpop.permute.xlu0 %430 }
 0x289   : > { %v453_v8 = vmul.f32 1.442695, %v448_v6  ;;  %v449_v9 = vsub.f32 %v2614_v25, %v431_v7 }
 0x28a   : > { %v538_v13 = vpop.permute.xlu1 %537 }
 0x28b   : > { %2376 = vpow2.f32 %v453_v8  ;;  %v455_v14 = vmul.f32 1.442695, %v449_v9  ;;  %2175 = vmatpush3.bf16.msra.mxu1 %v538_v13 }
 0x28c   : > { %2176 = vmatprep.subr.bf16.mxu1 %v2493_v0 }
 0x28d   : > { %2378 = vpow2.f32 %v455_v14 }
 0x28e   : > { %v540_v11 = vpop.permute.xlu1 %539 }
 0x28f   : > { %2177 = vmatpush3.bf16.msra.mxu1 %v540_v11 }
 0x290   : > { %2178 = vmatprep.subr.bf16.mxu1 %v2493_v0 }
 0x292   : > { %v436_v10 = vpop.permute.xlu1 %435 }
 0x293   : > { %v450_v12 = vsub.f32 %v2619_v33, %v436_v10 }
 0x295   : > { %v2377_v15 = vpop.eup %2376  ;;  %v457_v16 = vmul.f32 1.442695, %v450_v12 }
 0x296   : > { %v441_v18 = vpop.permute.xlu1 %440  ;;  %v473_v19 = vsel %vm387_vm4, %v2377_v15, 0.0 }
 0x297   : > { %v2379_v20 = vpop.eup %2378  ;;  %2380 = vpow2.f32 %v457_v16  ;;  %v451_v21 = vsub.f32 %v2624_v35, %v441_v18  ;;  %474 = vadd.xlane.f32.xlu0 %v473_v19 }
 0x298   : > { %v476_v22 = vsel %vm387_vm4, %v2379_v20, 0.0  ;;  %v534_v26 = vpack.c.bf16 %v2379_v20, %v2377_v15 }
 0x299   : > { %v459_v23 = vmul.f32 1.442695, %v451_v21  ;;  %477 = vadd.xlane.f32.xlu1 %v476_v22  ;;  %v413_v22 = vmul.f32 1.442695, %v408_v50 }
 0x29a   : > { %v542_v24 = vpop.permute.xlu1 %541 }
 0x29b   : > { %2382 = vpow2.f32 %v459_v23  ;;  %v556_v25 = vsel %vm554_vm6, %v542_v24, 0  ;;  %v415_v23 = vmul.f32 1.442695, %v409_v52  ;;  %v417_v24 = vmul.f32 1.442695, %v410_v58 }
 0x29c   : > { %2179 = vmatpush3.bf16.msra.mxu1 %v556_v25  ;;  %v421_v58 = vmul.f32 1.442695, %v412_v4 }
 0x29d   : > { %2192 = vmatprep.subr.bf16.mxu1 %v2493_v0 }
 0x29e   : > { %v446_v27 = vpop.permute.xlu1 %445 }
 0x29f   : > { %v452_v28 = vsub.f32 %v2629_v42, %v446_v27  ;;  %2181 = vmatmul.mubr.msk.bf16.vlgmr.msra.gmra.mrb[0].mxu1 %vm387_vm4, %v534_v26  ;;  %v640_v42 = vpop.permute.xlu0 %639  ;;  %v463_v26 = vld [vmem:[#allocation3] sm:$0xff] }
 0x2a0   : > { %2184 = vmatprep.mubr.msk.bf16.mxu1 %vm2495_vm0, %v2493_v0  ;;  %v657_v43 = vsel %vm297_vm1, %v640_v42, 0 }
 0x2a1   : > { %v2381_v29 = vpop.eup %2380  ;;  %v461_v30 = vmul.f32 1.442695, %v452_v28 }
 0x2a2   : > { %v479_v31 = vsel %vm387_vm4, %v2381_v29, 0.0  ;;  %v636_v32 = vpop.permute.xlu1 %635 }
 0x2a3   : > { %2384 = vpow2.f32 %v461_v30  ;;  %480 = vadd.xlane.f32.xlu0 %v479_v31  ;;  %v651_v33 = vsel %vm297_vm1, %v636_v32, 0  ;;  %v998_v46 = vpop.permute.xlu0 %997  ;;  %v466_v30 = vld [vmem:[#allocation3 + $0x18] sm:$0xff] }
 0x2a4   : > { %v1013_v54 = vsel %vm297_vm1, %v998_v46, 0  ;;  %2386 = vpow2.f32 %v413_v22 }
 0x2a5   : > { %v2383_v34 = vpop.eup %2382  ;;  %2193 = vmatpush3.bf16.xpose.msra.mxu1 %v651_v33  ;;  %2388 = vpow2.f32 %v415_v23 }
 0x2a6   : > { %v482_v35 = vsel %vm387_vm4, %v2383_v34, 0.0  ;;  %v535_v36 = vpack.c.bf16 %v2383_v34, %v2381_v29  ;;  %2194 = vmatprep.subr.bf16.mxu1 %v2493_v0  ;;  %v638_v37 = vpop.permute.xlu1 %637  ;;  %2390 = vpow2.f32 %v417_v24 }
 0x2a7   : > { %483 = vadd.xlane.f32.xlu0 %v482_v35  ;;  %v654_v38 = vsel %vm297_vm1, %v638_v37, 0  ;;  %v1000_v57 = vpop.permute.xlu0 %999  ;;  %2392 = vpow2.f32 %v419_v45 }
 0x2a8   : > { %2185 = vmatmul.mubr.msk.bf16.gmra.mrb[4].mxu1 %vm387_vm4, %v535_v36  ;;  %v1016_v5 = vsel %vm297_vm1, %v1000_v57, 0  ;;  %2394 = vpow2.f32 %v421_v58 }
 0x2a9   : > { %2188 = vmatprep.mubr.msk.bf16.mxu1 %vm2495_vm0, %v2493_v0 }
 0x2aa   : > { %v630_v49 = vpop.permute.xlu1 %629 }
 0x2ab   : > { %v1002_v6 = vpop.permute.xlu0 %1001 }
 0x2ac   : > { %v1019_v8 = vsel %vm297_vm1, %v1002_v6, 0 }
 0x2ad   : > { %v2385_v39 = vpop.eup %2384  ;;  %2195 = vmatpush3.bf16.xpose.msra.mxu1 %v654_v38 }
 0x2ae   : > { %v485_v40 = vsel %vm387_vm4, %v2385_v39, 0.0  ;;  %v536_v41 = vpack.c.bf16 %v2385_v39, %v2385_v39  ;;  %2196 = vmatprep.subr.bf16.mxu1 %v2493_v0  ;;  %v632_v62 = vpop.permute.xlu1 %631  ;;  %v2780_v25 = vpop.eup %2386 }
 0x2af   : > { %486 = vadd.xlane.f32.xlu1 %v485_v40  ;;  %v1360_v9 = vpop.permute.xlu0 %1359  ;;  %v2782_v27 = vpop.eup %2388  ;;  %v468_v47 = vmul.f32 %v2780_v25, %v463_v26 }
 0x2b0   : > { %2189 = vmatmul.mubr.msk.bf16.gmra.mrb[8].mxu1 %vm387_vm4, %v536_v41  ;;  %v1375_v14 = vsel %vm297_vm1, %v1360_v9, 0  ;;  %v469_v52 = vmul.f32 %v2782_v27, %v464_v48  ;;  %v2794_v55 = vpop.eup %2390 }
 0x2b1   : > { %2198 = vmatprep.mubr.msk.bf16.mxu1 %vm2495_vm0, %v2493_v0  ;;  %v470_v60 = vmul.f32 %v2794_v55, %v465_v59  ;;  %v2797_v28 = vpop.eup %2392 }
 0x2b2   : > { %v634_v7 = vpop.permute.xlu1 %633  ;;  %v471_v32 = vmul.f32 %v2797_v28, %v466_v30  ;;  %v2802_v61 = vpop.eup %2394 }
 0x2b3   : > { %v1362_v11 = vpop.permute.xlu0 %1361  ;;  %v472_v4 = vmul.f32 %v2802_v61, %v467_v63 }
 0x2b4   : > { %v1378_v12 = vsel %vm297_vm1, %v1362_v11, 0 }
 0x2b5   : > { %2197 = vmatpush3.bf16.xpose.msra.mxu1 %v657_v43 }
 0x2b6   : > { %2228 = vmatprep.subr.bf16.mxu1 %v2493_v0  ;;  %v992_v13 = vpop.permute.xlu1 %991 }
 0x2b7   : > { %v1364_v15 = vpop.permute.xlu0 %1363 }
 0x2b8   : > { %v1381_v18 = vsel %vm297_vm1, %v1364_v15, 0 }
 0x2ba   : > { %v994_v10 = vpop.permute.xlu1 %993 }
 0x2bb   : > { %v1356_v20 = vpop.permute.xlu0 %1355 }
 0x2bc   : > { %2199 = vmatmul.mubr.msk.bf16.vlgmr.msra.gmra.mrb[12].mxu1 %vm297_vm1, %v630_v49 }
 0x2bd   : > { %2229 = vmatpush3.bf16.xpose.msra.mxu1 %v1013_v54  ;;  %2202 = vmatprep.mubr.msk.bf16.mxu1 %vm2495_vm0, %v2493_v0 }
 0x2be   : > { %2230 = vmatprep.subr.bf16.mxu1 %v2493_v0  ;;  %v996_v16 = vpop.permute.xlu1 %995 }
 0x2c2   : > { %v1354_v19 = vpop.permute.xlu1 %1353 }
 0x2c4   : > { %2203 = vmatmul.mubr.msk.bf16.gmra.mrb[16].mxu1 %vm297_vm1, %v632_v62 }
 0x2c5   : > { %2231 = vmatpush3.bf16.xpose.msra.mxu1 %v1016_v5  ;;  %2206 = vmatprep.mubr.msk.bf16.mxu1 %vm2495_vm0, %v2493_v0 }
 0x2c6   : > { %2232 = vmatprep.subr.bf16.mxu1 %v2493_v0  ;;  %v1358_v21 = vpop.permute.xlu1 %1357 }
 0x2cc   : > { %2207 = vmatmul.mubr.msk.bf16.gmra.mrb[20].mxu1 %vm297_vm1, %v634_v7 }
 0x2cd   : > { %2233 = vmatpush3.bf16.xpose.msra.mxu1 %v1019_v8  ;;  %2234 = vmatprep.mubr.msk.bf16.mxu1 %vm2495_vm0, %v2493_v0 }
 0x2ce   : > { %2264 = vmatprep.subr.bf16.mxu1 %v2493_v0 }
 0x2d4   : > { %2235 = vmatmul.mubr.msk.bf16.vlgmr.msra.gmra.mrb[24].mxu1 %vm297_vm1, %v992_v13 }
 0x2d5   : > { %2238 = vmatprep.mubr.msk.bf16.mxu1 %vm2495_vm0, %v2493_v0  ;;  %2265 = vmatpush3.bf16.xpose.msra.mxu1 %v1375_v14 }
 0x2d6   : > { %2266 = vmatprep.subr.bf16.mxu1 %v2493_v0 }
 0x2dc   : > { %2239 = vmatmul.mubr.msk.bf16.gmra.mrb[28].mxu1 %vm297_vm1, %v994_v10 }
 0x2dd   : > { %2242 = vmatprep.mubr.msk.bf16.mxu1 %vm2495_vm0, %v2493_v0  ;;  %2267 = vmatpush3.bf16.xpose.msra.mxu1 %v1378_v12 }
 0x2de   : > { %2268 = vmatprep.subr.bf16.mxu1 %v2493_v0 }
 0x2e4   : > { %2243 = vmatmul.mubr.msk.bf16.gmra.mrb[32].mxu1 %vm297_vm1, %v996_v16 }
 0x2e5   : > { %2269 = vmatpush3.bf16.xpose.msra.mxu1 %v1381_v18  ;;  %2270 = vmatprep.mubr.msk.bf16.mxu1 %vm2495_vm0, %v2493_v0 }
 0x2ec   : > { %2271 = vmatmul.mubr.msk.bf16.vlgmr.msra.gmra.mrb[36].mxu1 %vm297_vm1, %v1354_v19 }
 0x2ed   : > { %2274 = vmatprep.mubr.msk.bf16.mxu1 %vm2495_vm0, %v2493_v0 }
 0x2f4   : > { %2275 = vmatmul.mubr.msk.bf16.gmra.mrb[40].mxu1 %vm297_vm1, %v1356_v20 }
 0x2f5   : > { %2278 = vmatprep.mubr.msk.bf16.mxu1 %vm2495_vm0, %v2493_v0 }
 0x2fc   : > { %2279 = vmatmul.mubr.msk.bf16.gmra.mrb[44].mxu1 %vm297_vm1, %v1358_v21 }
 0x324   : > { %v475_v50 = vpop.xlane.xlu0 %474 }
 0x325   : > { %v488_v51 = vadd.f32 %v475_v50, %v468_v47 }
 0x326   : > { %v478_v53 = vpop.xlane.xlu1 %477 }
 0x327   : > { %494 = vst.msk [vmem:[#allocation3] sm:$0xff] %vm493_vm5, %v488_v51  ;;  %v489_v56 = vadd.f32 %v478_v53, %v469_v52 }
 0x329   : > { %495 = vst.msk [vmem:[#allocation3 + $0x8] sm:$0xff] %vm493_vm5, %v489_v56 }
 0x330   : > { %v481_v29 = vpop.xlane.xlu0 %480 }
 0x331   : > { %v490_v31 = vadd.f32 %v481_v29, %v470_v60 }
 0x333   : > { %496 = vst.msk [vmem:[#allocation3 + $0x10] sm:$0xff] %vm493_vm5, %v490_v31 }
 0x334   : > { %v484_v33 = vpop.xlane.xlu0 %483 }
 0x335   : > { %v491_v34 = vadd.f32 %v484_v33, %v471_v32 }
 0x337   : > { %497 = vst.msk [vmem:[#allocation3 + $0x18] sm:$0xff] %vm493_vm5, %v491_v34 }
 0x33c   : > { %v487_v35 = vpop.xlane.xlu1 %486 }
 0x33d   : > { %v492_v36 = vadd.f32 %v487_v35, %v472_v4 }
 0x33f   : > { %498 = vst.msk [vmem:[#allocation3 + $0x20] sm:$0xff] %vm493_vm5, %v492_v36 }
 0x372   : > { %v2806_v37 = vpop.f32.mrb[0].mxu1 }
 0x373   : > { %v2182_v38 = vpop.f32.mrb[1].mxu1 }
 0x374   : > { %v2808_v39 = vpop.f32.mrb[2].mxu1 }
 0x375   : > { %v2183_v40 = vpop.f32.mrb[3].mxu1 }
 0x37b   : > { %v2810_v41 = vpop.f32.mrb[4].mxu1 }
 0x37c   : > { %v2186_v42 = vpop.f32.mrb[5].mxu1 }
 0x37d   : > { %v2812_v43 = vpop.f32.mrb[6].mxu1 }
 0x37e   : > { %v2187_v46 = vpop.f32.mrb[7].mxu1 }
 0x383   : > { %v2814_v49 = vpop.f32.mrb[8].mxu1 }
 0x384   : > { %v2190_v54 = vpop.f32.mrb[9].mxu1 }
 0x385   : > { %v611_v57 = vpop.f32.mrb[10].mxu1 }
 0x386   : > { %v2191_v62 = vpop.f32.mrb[11].mxu1 }
 0x38f   : > { %v693_v5 = vpop.f32.mrb[12].mxu1 }
 0x390   : > { %v715_v6 = vmul.f32 0.35355338, %v693_v5  ;;  %v2200_v7 = vpop.f32.mrb[13].mxu1  ;;  %v2505_v5 = vmov 1  }
 0x391   : > { %v696_v8 = vpop.f32.mrb[14].mxu1 }
 0x392   : > { %v716_v9 = vmul.f32 0.35355338, %v696_v8  ;;  %v2201_v13 = vpop.f32.mrb[15].mxu1  ;;  %v2817_v14 = vadd.f32 %v715_v6, %v2606_v17 }
 0x394   : > { %v730_v11 = vsel %vm387_vm4, %v2817_v14, -inf  ;;  %v2822_v10 = vadd.f32 %v716_v9, %v2606_v17 }
 0x395   : > { %731 = vmax.xlane.f32.xlu0 %v730_v11 }
 0x396   : > { %v733_v12 = vsel %vm387_vm4, %v2822_v10, -inf }
 0x397   : > { %734 = vmax.xlane.f32.xlu1 %v733_v12  ;;  %v701_v15 = vpop.f32.mrb[16].mxu1 }
 0x398   : > { %v717_v16 = vmul.f32 0.35355338, %v701_v15  ;;  %v2204_v18 = vpop.f32.mrb[17].mxu1 }
 0x399   : > { %v704_v19 = vpop.f32.mrb[18].mxu1 }
 0x39a   : > { %v718_v20 = vmul.f32 0.35355338, %v704_v19  ;;  %v2205_v21 = vpop.f32.mrb[19].mxu1  ;;  %v2827_v22 = vadd.f32 %v717_v16, %v2606_v17 }
 0x39c   : > { %v736_v23 = vsel %vm387_vm4, %v2827_v22, -inf  ;;  %v2832_v24 = vadd.f32 %v718_v20, %v2606_v17 }
 0x39d   : > { %737 = vmax.xlane.f32.xlu0 %v736_v23 }
 0x39e   : > { %v739_v26 = vsel %vm387_vm4, %v2832_v24, -inf }
 0x39f   : > { %740 = vmax.xlane.f32.xlu1 %v739_v26  ;;  %v709_v45 = vpop.f32.mrb[20].mxu1 }
 0x3a0   : > { %v719_v48 = vmul.f32 0.35355338, %v709_v45  ;;  %v2208_v47 = vpop.f32.mrb[21].mxu1 }
 0x3a1   : > { %v712_v50 = vpop.f32.mrb[22].mxu1 }
 0x3a2   : > { %v2837_v51 = vadd.f32 %v719_v48, %v2606_v17  ;;  %v2209_v52 = vpop.f32.mrb[23].mxu1 }
 0x3a4   : > { %v742_v53 = vsel %vm387_vm4, %v2837_v51, -inf }
 0x3a5   : > { %743 = vmax.xlane.f32.xlu1 %v742_v53 }
 0x3a7   : > { %v1055_v56 = vpop.f32.mrb[24].mxu1 }
 0x3a8   : > { %v1077_v58 = vmul.f32 0.35355338, %v1055_v56  ;;  %v2236_v59 = vpop.f32.mrb[25].mxu1 }
 0x3a9   : > { %v1058_v60 = vpop.f32.mrb[26].mxu1 }
 0x3aa   : > { %v1078_v29 = vmul.f32 0.35355338, %v1058_v60  ;;  %v2842_v30 = vadd.f32 %v1077_v58, %v2606_v17  ;;  %v2237_v31 = vpop.f32.mrb[27].mxu1 }
 0x3ac   : > { %v1092_v32 = vsel %vm387_vm4, %v2842_v30, -inf  ;;  %v2852_v33 = vadd.f32 %v1078_v29, %v2606_v17 }
 0x3ad   : > { %1093 = vmax.xlane.f32.xlu1 %v1092_v32 }
 0x3ae   : > { %v1095_v34 = vsel %vm387_vm4, %v2852_v33, -inf }
 0x3af   : > { %v1063_v63 = vpop.f32.mrb[28].mxu1 }
 0x3b0   : > { %v1079_v4 = vmul.f32 0.35355338, %v1063_v63  ;;  %v2240_v35 = vpop.f32.mrb[29].mxu1 }
 0x3b1   : > { %1096 = vmax.xlane.f32.xlu1 %v1095_v34  ;;  %v1066_v36 = vpop.f32.mrb[30].mxu1  ;;  %v2904_v35 = vld [vmem:[#allocation2] sm:$0xff] }
 0x3b2   : > { %v1080_v38 = vmul.f32 0.35355338, %v1066_v36  ;;  %v2857_v40 = vadd.f32 %v1079_v4, %v2606_v17  ;;  %v2241_v42 = vpop.f32.mrb[31].mxu1 }
 0x3b3   : > { %506 = vperm.xlu0 %2347, %v2780_v25  }
 0x3b4   : > { %v1098_v46 = vsel %vm387_vm4, %v2857_v40, -inf  ;;  %v2863_v54 = vadd.f32 %v1080_v38, %v2606_v17 }
 0x3b5   : > { %1099 = vmax.xlane.f32.xlu1 %v1098_v46 }
 0x3b6   : > { %v1101_v57 = vsel %vm387_vm4, %v2863_v54, -inf }
 0x3b7   : > { %v1071_v62 = vpop.f32.mrb[32].mxu1  ;;  %2348 = vset.pattern.permute.xlu0 %v2505_v5 }
 0x3b8   : > { %v2244_v6 = vpop.f32.mrb[33].mxu1  ;;  %v1081_v12 = vmul.f32 0.35355338, %v1071_v62 }
 0x3b9   : > { %1102 = vmax.xlane.f32.xlu1 %v1101_v57  ;;  %v1074_v7 = vpop.f32.mrb[34].mxu1  ;;  %v3391_v6 = vmov 2  }
 0x3ba   : > { %v2245_v8 = vpop.f32.mrb[35].mxu1  ;;  %v2870_v20 = vadd.f32 %v1081_v12, %v2606_v17  ;;  %v2925_v7 = vld [vmem:[#allocation2 + $0x10] sm:$0xff] }
 0x3bc   : > { %v1104_v21 = vsel %vm387_vm4, %v2870_v20, -inf }
 0x3bf   : > { %v1417_v9 = vpop.f32.mrb[36].mxu1 }
 0x3c0   : > { %v2272_v25 = vpop.f32.mrb[37].mxu1  ;;  %v1439_v47 = vmul.f32 0.35355338, %v1417_v9 }
 0x3c1   : > { %v1420_v13 = vpop.f32.mrb[38].mxu1  ;;  %v2930_v25 = vld [vmem:[#allocation2 + $0x18] sm:$0xff] }
 0x3c2   : > { %v2273_v11 = vpop.f32.mrb[39].mxu1  ;;  %v1440_v50 = vmul.f32 0.35355338, %v1420_v13  ;;  %v2876_v52 = vadd.f32 %v1439_v47, %v2606_v17 }
 0x3c4   : > { %v2881_v56 = vadd.f32 %v1440_v50, %v2606_v17 }
 0x3c6   : > { %v1457_v58 = vsel %vm387_vm4, %v2881_v56, -inf }
 0x3c7   : > { %v1425_v15 = vpop.f32.mrb[40].mxu1 }
 0x3c8   : > { %v2276_v16 = vpop.f32.mrb[41].mxu1  ;;  %v1441_v53 = vmul.f32 0.35355338, %v1425_v15 }
 0x3c9   : > { %v1428_v18 = vpop.f32.mrb[42].mxu1  ;;  %v499_v16 = vld [vmem:[#allocation4] sm:$0xff] }
 0x3ca   : > { %511 = vperm.xlu1 %2346, %v2782_v27   ;;  %v2277_v19 = vpop.f32.mrb[43].mxu1  ;;  %v1454_v27 = vsel %vm387_vm4, %v2876_v52, -inf  ;;  %v1442_v59 = vmul.f32 0.35355338, %v1428_v18  ;;  %v2886_v60 = vadd.f32 %v1441_v53, %v2606_v17  ;;  %v2945_v18 = vld [vmem:[#allocation2 + $0x20] sm:$0xff] }
 0x3cc   : > { %v1460_v29 = vsel %vm387_vm4, %v2886_v60, -inf  ;;  %v2891_v32 = vadd.f32 %v1442_v59, %v2606_v17 }
 0x3ce   : > { %2349 = vset.pattern.permute.xlu1 %v2505_v5  ;;  %v1463_v34 = vsel %vm387_vm4, %v2891_v32, -inf }
 0x3cf   : > { %v1433_v23 = vpop.f32.mrb[44].mxu1 }
 0x3d0   : > { %v2280_v26 = vpop.f32.mrb[45].mxu1  ;;  %v1443_v31 = vmul.f32 0.35355338, %v1433_v23 }
 0x3d1   : > { %v1436_v45 = vpop.f32.mrb[46].mxu1 }
 0x3d2   : > { %1105 = vmax.xlane.f32.xlu0 %v1104_v21  ;;  %v2281_v48 = vpop.f32.mrb[47].mxu1  ;;  %v2896_v63 = vadd.f32 %v1443_v31, %v2606_v17  ;;  %v2909_v17 = vld [vmem:[#allocation2 + $0x8] sm:$0xff] }
 0x3d4   : > { %v1466_v4 = vsel %vm387_vm4, %v2896_v63, -inf }
 0x3ee   : > { %1455 = vmax.xlane.f32.xlu1 %v1454_v27 }
 0x3f2   : > { %1458 = vmax.xlane.f32.xlu1 %v1457_v58 }
 0x3f6   : > { %1461 = vmax.xlane.f32.xlu1 %v1460_v29 }
 0x3fa   : > { %1464 = vmax.xlane.f32.xlu1 %v1463_v34 }
 0x3fe   : > { %1467 = vmax.xlane.f32.xlu1 %v1466_v4 }
 0x40f   : > { %879 = vrot.lane.b32.xlu1 %v2558_v1, %s2506_s28 }
 0x413   : > { %881 = vrot.lane.b32.xlu1 %v2562_v2, %s2506_s28 }
 0x422   : > { %v732_v36 = vpop.xlane.xlu0 %731 }
 0x423   : > { %v2907_v38 = vmax.f32 %v2904_v35, %v732_v36 }
 0x424   : > { %v735_v42 = vpop.xlane.xlu1 %734 }
 0x425   : > { %v750_v46 = vsub.f32 %v2904_v35, %v2907_v38  ;;  %986 = vst.msk [vmem:[#allocation2] sm:$0xff] %vm835_vm8, %v2907_v38  ;;  %v2916_v57 = vmax.f32 %v2909_v17, %v735_v42  ;;  %767 = vperm.xlu0 %2348, %v2907_v38   ;;  %v2467_v35 = vld [vmem:[%s2555_s16 + $0x8] sm:$0xff]  }
 0x427   : > { %v751_v62 = vsub.f32 %v2909_v17, %v2916_v57  ;;  %987 = vst.msk [vmem:[#allocation2 + $0x8] sm:$0xff] %vm835_vm8, %v2916_v57  ;;  %772 = vperm.xlu1 %2349, %v2916_v57   ;;  %v2468_v57 = vld [vmem:[%s2555_s16 + $0x10] ss:$0 sps:$4 sm:$0xff]  }
 0x429   : > { %2351 = vset.pattern.permute.xlu0 %v3391_v6 }
 0x42a   : > { %v738_v8 = vpop.xlane.xlu0 %737 }
 0x42b   : > { %v2928_v9 = vmax.f32 %v2925_v7, %v738_v8 }
 0x42c   : > { %v741_v13 = vpop.xlane.xlu1 %740  ;;  %v2959_v50 = vld [vmem:[#allocation2] sm:$0xff] }
 0x42d   : > { %v752_v11 = vsub.f32 %v2925_v7, %v2928_v9  ;;  %988 = vst.msk [vmem:[#allocation2 + $0x10] sm:$0xff] %vm835_vm8, %v2928_v9  ;;  %v2937_v12 = vmax.f32 %v2930_v25, %v741_v13  ;;  %777 = vperm.xlu1 %2349, %v2928_v9  }
 0x42f   : > { %v753_v15 = vsub.f32 %v2930_v25, %v2937_v12  ;;  %989 = vst.msk [vmem:[#allocation2 + $0x18] sm:$0xff] %vm835_vm8, %v2937_v12  ;;  %v759_v17 = vmul.f32 1.442695, %v752_v11 }
 0x431   : > { %782 = vperm.xlu1 %2349, %v2937_v12   ;;  %v3394_v12 = vmov 2  }
 0x432   : > { %v744_v19 = vpop.xlane.xlu1 %743  ;;  %v507_v21 = vpop.permute.xlu0 %506 }
 0x433   : > { %v2948_v23 = vmax.f32 %v2945_v18, %v744_v19  ;;  %v529_v26 = vmul.f32 %v507_v21, %v499_v16  ;;  %v500_v16 = vld [vmem:[#allocation4 + $0x8] sm:$0xff]  ;;  %v755_v19 = vmul.f32 1.442695, %v750_v46 }
 0x434   : > { %v2979_v34 = vld [vmem:[#allocation2 + $0x10] sm:$0xff] }
 0x435   : > { %v754_v45 = vsub.f32 %v2945_v18, %v2948_v23  ;;  %990 = vst.msk [vmem:[#allocation2 + $0x20] sm:$0xff] %vm835_vm8, %v2948_v23  ;;  %v614_v48 = vadd.f32 %v2806_v37, %v529_v26  ;;  %883 = vrot.lane.b32.xlu1 %v2565_v3, %s2506_s28  ;;  %v2969_v37 = vld [vmem:[#allocation2 + $0x8] sm:$0xff]  ;;  %2396 = vpow2.f32 %v755_v19 }
 0x436   : > { %v2989_v42 = vld [vmem:[#allocation2 + $0x18] sm:$0xff] }
 0x437   : > { %619 = vst.msk [vmem:[#allocation4] sm:$0xff] %vm297_vm1, %v614_v48 }
 0x439   : > { %787 = vperm.xlu1 %2349, %v2948_v23  }
 0x43a   : > { %v1094_v47 = vpop.xlane.xlu1 %1093 }
 0x43b   : > { %v2962_v27 = vmax.f32 %v2959_v50, %v1094_v47  ;;  %v3389_v47 = vmov 3  }
 0x43d   : > { %1348 = vst.msk [vmem:[#allocation2] sm:$0xff] %vm1197_vm9, %v2962_v27  ;;  %2350 = vset.pattern.permute.xlu1 %v3391_v6 }
 0x43e   : > { %v1097_v58 = vpop.xlane.xlu1 %1096  ;;  %1129 = vperm.xlu1 %2350, %v2962_v27  }
 0x43f   : > { %v2973_v59 = vmax.f32 %v2969_v37, %v1097_v58  ;;  %v3005_v58 = vld [vmem:[#allocation2 + $0x20] sm:$0xff]  ;;  %v3095_v7 = vpop.eup %2396 }
 0x441   : > { %v1113_v29 = vsub.f32 %v2969_v37, %v2973_v59  ;;  %1349 = vst.msk [vmem:[#allocation2 + $0x8] sm:$0xff] %vm1197_vm9, %v2973_v59 }
 0x442   : > { %v1100_v31 = vpop.xlane.xlu1 %1099  ;;  %1134 = vperm.xlu1 %2350, %v2973_v59  }
 0x443   : > { %v2983_v4 = vmax.f32 %v2979_v34, %v1100_v31  ;;  %v1119_v46 = vmul.f32 1.442695, %v1113_v29 }
 0x445   : > { %1350 = vst.msk [vmem:[#allocation2 + $0x10] sm:$0xff] %vm1197_vm9, %v2983_v4 }
 0x446   : > { %v1103_v8 = vpop.xlane.xlu1 %1102  ;;  %1139 = vperm.xlu1 %2350, %v2983_v4  }
 0x447   : > { %v2993_v13 = vmax.f32 %v2989_v42, %v1103_v8 }
 0x449   : > { %1351 = vst.msk [vmem:[#allocation2 + $0x18] sm:$0xff] %vm1197_vm9, %v2993_v13  ;;  %1144 = vperm.xlu0 %2351, %v2993_v13  }
 0x44a   : > { %v512_v21 = vpop.permute.xlu1 %511  ;;  %1241 = vrot.lane.b32.xlu1 %v2558_v1, %s2508_s29 }
 0x44b   : > { %v530_v26 = vmul.f32 %v512_v21, %v500_v16  ;;  %v3027_v21 = vld [vmem:[#allocation2 + $0x8] sm:$0xff] }
 0x44d   : > { %v615_v48 = vadd.f32 %v2808_v39, %v530_v26  ;;  %1243 = vrot.lane.b32.xlu0 %v2562_v2, %s2508_s29  ;;  %v3017_v2 = vld [vmem:[#allocation2] sm:$0xff] }
 0x44e   : > { %2352 = vset.pattern.permute.xlu0 %v3389_v47 }
 0x44f   : > { %620 = vst.msk [vmem:[#allocation4 + $0x8] sm:$0xff] %vm297_vm1, %v615_v48 }
 0x45f   : > { %v1106_v31 = vpop.xlane.xlu0 %1105 }
 0x460   : > { %v3008_v8 = vmax.f32 %v3005_v58, %v1106_v31 }
 0x462   : > { %1352 = vst.msk [vmem:[#allocation2 + $0x20] sm:$0xff] %vm1197_vm9, %v3008_v8  ;;  %1149 = vperm.xlu1 %2350, %v3008_v8  }
 0x466   : > { %1245 = vrot.lane.b32.xlu1 %v2565_v3, %s2508_s29 }
 0x467   : > { %2353 = vset.pattern.permute.xlu1 %v3389_v47 }
 0x469   : > { %v3061_v53 = vld [vmem:[#allocation2 + $0x20] sm:$0xff] }
 0x47b   : > { %v1456_v1 = vpop.xlane.xlu1 %1455 }
 0x47c   : > { %v3020_v39 = vmax.f32 %v3017_v2, %v1456_v1  ;;  %v3037_v1 = vld [vmem:[#allocation2 + $0x10] sm:$0xff] }
 0x47e   : > { %1710 = vst.msk [vmem:[#allocation2] sm:$0xff] %vm1559_vm10, %v3020_v39  ;;  %1491 = vperm.xlu0 %2352, %v3020_v39  }
 0x47f   : > { %v1459_v3 = vpop.xlane.xlu1 %1458 }
 0x480   : > { %v3030_v26 = vmax.f32 %v3027_v21, %v1459_v3  ;;  %v3047_v3 = vld [vmem:[#allocation2 + $0x18] sm:$0xff] }
 0x482   : > { %1711 = vst.msk [vmem:[#allocation2 + $0x8] sm:$0xff] %vm1559_vm10, %v3030_v26  ;;  %1496 = vperm.xlu1 %2353, %v3030_v26  }
 0x483   : > { %v1462_v31 = vpop.xlane.xlu1 %1461 }
 0x484   : > { %v3040_v16 = vmax.f32 %v3037_v1, %v1462_v31  ;;  %v2466_v31 = vld [vmem:[%s2555_s16] sm:$0xff]  }
 0x486   : > { %1712 = vst.msk [vmem:[#allocation2 + $0x10] sm:$0xff] %vm1559_vm10, %v3040_v16  ;;  %1501 = vperm.xlu1 %2353, %v3040_v16  }
 0x487   : > { %v1465_v48 = vpop.xlane.xlu1 %1464 }
 0x488   : > { %v3050_v47 = vmax.f32 %v3047_v3, %v1465_v48  ;;  %v757_v48 = vmul.f32 1.442695, %v751_v62 }
 0x48a   : > { %1713 = vst.msk [vmem:[#allocation2 + $0x18] sm:$0xff] %vm1559_vm10, %v3050_v47  ;;  %1506 = vperm.xlu0 %2352, %v3050_v47   ;;  %1603 = vrot.lane.b32.xlu1 %v2466_v31, %s2510_s30  ;;  %2398 = vpow2.f32 %v757_v48 }
 0x48b   : > { %v1468_v6 = vpop.xlane.xlu1 %1467  ;;  %2354 = vset.pattern.permute.xlu1 %v2497_v44  ;;  %2400 = vpow2.f32 %v759_v17 }
 0x48c   : > { %v3068_v36 = vmax.f32 %v3061_v53, %v1468_v6  ;;  %v761_v6 = vmul.f32 1.442695, %v753_v15  ;;  %2402 = vpow2.f32 %v1119_v46  ;;  %v3395_v15 = vsub.f32 %v2979_v34, %v2983_v4 }
 0x48d   : > { %v3398_v4 = vsub.f32 %v3005_v58, %v3008_v8 }
 0x48e   : > { %v1478_v31 = vsub.f32 %v3061_v53, %v3068_v36  ;;  %1714 = vst.msk [vmem:[#allocation2 + $0x20] sm:$0xff] %vm1559_vm10, %v3068_v36  ;;  %1605 = vrot.lane.b32.xlu1 %v2467_v35, %s2510_s30  ;;  %1511 = vperm.xlu0 %2352, %v3068_v36   ;;  %2404 = vpow2.f32 %v761_v6  ;;  %v1121_v18 = vmul.f32 1.442695, %v3395_v15 }
 0x48f   : > { %v880_v38 = vpop.permute.xlu1 %879  ;;  %v1125_v35 = vmul.f32 1.442695, %v3398_v4 }
 0x490   : > { %2211 = vmatpush3.bf16.msra.mxu0 %v880_v38 }
 0x491   : > { %2212 = vmatprep.subr.bf16.mxu0 %v2493_v0 }
 0x492   : > { %516 = vperm.xlu1 %2354, %v2794_v55   ;;  %1607 = vrot.lane.b32.xlu0 %v2468_v57, %s2510_s30  ;;  %v763_v55 = vmul.f32 1.442695, %v754_v45 }
 0x493   : > { %2355 = vset.pattern.permute.xlu0 %v2497_v44  ;;  %v882_v62 = vpop.permute.xlu1 %881 }
 0x494   : > { %2213 = vmatpush3.bf16.msra.mxu0 %v882_v62  ;;  %v3097_v9 = vpop.eup %2398  ;;  %2406 = vpow2.f32 %v763_v55 }
 0x495   : > { %2214 = vmatprep.subr.bf16.mxu0 %v2493_v0  ;;  %v3106_v25 = vpop.eup %2400 }
 0x496   : > { %526 = vperm.xlu1 %2354, %v2802_v61   ;;  %521 = vperm.xlu0 %2355, %v2797_v28   ;;  %v3393_v28 = vsub.f32 %v2959_v50, %v2962_v27  ;;  %v3108_v11 = vpop.eup %2402  ;;  %v3396_v50 = vmov 3   ;;  %v3397_v27 = vsub.f32 %v2989_v42, %v2993_v13 }
 0x498   : > { %v1117_v61 = vmul.f32 1.442695, %v3393_v28  ;;  %v3116_v23 = vpop.eup %2404  ;;  %v1123_v37 = vmul.f32 1.442695, %v3397_v27 }
 0x49a   : > { %2357 = vset.pattern.permute.xlu1 %v2505_v5  ;;  %2356 = vset.pattern.permute.xlu0 %v2505_v5  ;;  %2408 = vpow2.f32 %v1117_v61 }
 0x49b   : > { %853 = vperm.xlu1 %2357, %v3097_v9   ;;  %848 = vperm.xlu0 %2356, %v3095_v7   ;;  %2410 = vpow2.f32 %v1121_v18 }
 0x49c   : > { %2412 = vpow2.f32 %v1123_v37 }
 0x49e   : > { %v3124_v29 = vpop.eup %2406 }
 0x49f   : > { %858 = vperm.xlu1 %2357, %v3106_v25   ;;  %2359 = vset.pattern.permute.xlu0 %v3394_v12 }
 0x4a0   : > { %1215 = vperm.xlu0 %2359, %v3108_v11  }
 0x4a3   : > { %863 = vperm.xlu1 %2357, %v3116_v23  }
 0x4a4   : > { %v768_v45 = vpop.permute.xlu0 %767  ;;  %2361 = vset.pattern.permute.xlu0 %v3396_v50  ;;  %v3131_v17 = vpop.eup %2408 }
 0x4a5   : > { %v790_v59 = vsub.f32 %v2817_v14, %v768_v45  ;;  %v3136_v42 = vpop.eup %2410 }
 0x4a6   : > { %v773_v19 = vpop.permute.xlu1 %772  ;;  %v3140_v8 = vpop.eup %2412 }
 0x4a7   : > { %v795_v48 = vmul.f32 1.442695, %v790_v59  ;;  %v791_v34 = vsub.f32 %v2822_v10, %v773_v19  ;;  %868 = vperm.xlu1 %2357, %v3124_v29  }
 0x4a9   : > { %v797_v38 = vmul.f32 1.442695, %v791_v34  ;;  %2414 = vpow2.f32 %v795_v48 }
 0x4ab   : > { %2416 = vpow2.f32 %v797_v38  ;;  %2358 = vset.pattern.permute.xlu1 %v3394_v12 }
 0x4ac   : > { %v778_v14 = vpop.permute.xlu1 %777  ;;  %1210 = vperm.xlu1 %2358, %v3131_v17   ;;  %2418 = vpow2.f32 %v1125_v35 }
 0x4ad   : > { %v792_v10 = vsub.f32 %v2827_v22, %v778_v14 }
 0x4af   : > { %v799_v13 = vmul.f32 1.442695, %v792_v10 }
 0x4b0   : > { %v783_v46 = vpop.permute.xlu1 %782  ;;  %1220 = vperm.xlu1 %2358, %v3136_v42  }
 0x4b1   : > { %v793_v58 = vsub.f32 %v2832_v24, %v783_v46  ;;  %2420 = vpow2.f32 %v799_v13 }
 0x4b3   : > { %v801_v57 = vmul.f32 1.442695, %v793_v58  ;;  %v2415_v62 = vpop.eup %2414 }
 0x4b4   : > { %v884_v6 = vpop.permute.xlu1 %883  ;;  %1225 = vperm.xlu1 %2358, %v3140_v8  }
 0x4b5   : > { %v2417_v55 = vpop.eup %2416  ;;  %2422 = vpow2.f32 %v801_v57  ;;  %v897_v22 = vsel %vm554_vm6, %v884_v6, 0 }
 0x4b6   : > { %v876_v28 = vpack.c.bf16 %v2417_v55, %v2415_v62  ;;  %2215 = vmatpush3.bf16.msra.mxu0 %v897_v22  ;;  %v3144_v61 = vpop.eup %2418  ;;  %v818_v37 = vsel %vm387_vm4, %v2417_v55, 0.0 }
 0x4b7   : > { %2246 = vmatprep.subr.bf16.mxu0 %v2493_v0 }
 0x4b8   : > { %v788_v15 = vpop.permute.xlu1 %787  ;;  %1230 = vperm.xlu1 %2358, %v3144_v61  }
 0x4b9   : > { %v794_v24 = vsub.f32 %v2837_v51, %v788_v15  ;;  %2217 = vmatmul.mubr.msk.bf16.vlgmr.msra.gmra.mrb[12].mxu0 %vm387_vm4, %v876_v28 }
 0x4ba   : > { %2220 = vmatprep.mubr.msk.bf16.mxu0 %vm2495_vm0, %v2493_v0 }
 0x4bb   : > { %v803_v18 = vmul.f32 1.442695, %v794_v24  ;;  %v2421_v27 = vpop.eup %2420 }
 0x4bc   : > { %2360 = vset.pattern.permute.xlu1 %v3396_v50  ;;  %v821_v51 = vsel %vm387_vm4, %v2421_v27, 0.0 }
 0x4bd   : > { %2424 = vpow2.f32 %v803_v18  ;;  %v1130_v45 = vpop.permute.xlu1 %1129 }
 0x4bf   : > { %v2423_v59 = vpop.eup %2422  ;;  %819 = vadd.xlane.f32.xlu0 %v818_v37 }
 0x4c0   : > { %v877_v19 = vpack.c.bf16 %v2423_v59, %v2421_v27  ;;  %v824_v14 = vsel %vm387_vm4, %v2423_v59, 0.0  ;;  %v815_v27 = vsel %vm387_vm4, %v2415_v62, 0.0 }
 0x4c1   : > { %v1135_v48 = vpop.permute.xlu1 %1134 }
 0x4c2   : > { %v1153_v34 = vsub.f32 %v2852_v33, %v1135_v48  ;;  %2221 = vmatmul.mubr.msk.bf16.gmra.mrb[16].mxu0 %vm387_vm4, %v877_v19 }
 0x4c3   : > { %822 = vadd.xlane.f32.xlu0 %v821_v51  ;;  %2224 = vmatprep.mubr.msk.bf16.mxu0 %vm2495_vm0, %v2493_v0 }
 0x4c4   : > { %v1159_v4 = vmul.f32 1.442695, %v1153_v34 }
 0x4c5   : > { %v1140_v35 = vpop.permute.xlu1 %1139 }
 0x4c6   : > { %2426 = vpow2.f32 %v1159_v4  ;;  %v1154_v38 = vsub.f32 %v2857_v40, %v1140_v35  ;;  %v1152_v40 = vsub.f32 %v2842_v30, %v1130_v45 }
 0x4c7   : > { %v2425_v10 = vpop.eup %2424  ;;  %825 = vadd.xlane.f32.xlu0 %v824_v14 }
 0x4c8   : > { %v1161_v13 = vmul.f32 1.442695, %v1154_v38  ;;  %v1145_v46 = vpop.permute.xlu0 %1144  ;;  %v878_v33 = vpack.c.bf16 %v2425_v10, %v2425_v10  ;;  %v1157_v22 = vmul.f32 1.442695, %v1152_v40  ;;  %v827_v30 = vsel %vm387_vm4, %v2425_v10, 0.0 }
 0x4c9   : > { %v1242_v58 = vpop.permute.xlu1 %1241  ;;  %v1155_v28 = vsub.f32 %v2863_v54, %v1145_v46 }
 0x4ca   : > { %2428 = vpow2.f32 %v1161_v13  ;;  %2225 = vmatmul.mubr.msk.bf16.gmra.mrb[20].mxu0 %vm387_vm4, %v878_v33 }
 0x4cb   : > { %2247 = vmatpush3.bf16.msra.mxu0 %v1242_v58  ;;  %2252 = vmatprep.mubr.msk.bf16.mxu0 %vm2495_vm0, %v2493_v0  ;;  %2430 = vpow2.f32 %v1157_v22  ;;  %v1163_v18 = vmul.f32 1.442695, %v1155_v28 }
 0x4cc   : > { %2248 = vmatprep.subr.bf16.mxu0 %v2493_v0  ;;  %v1244_v57 = vpop.permute.xlu0 %1243 }
 0x4cd   : > { %2432 = vpow2.f32 %v1163_v18 }
 0x4cf   : > { %2249 = vmatpush3.bf16.msra.mxu0 %v1244_v57 }
 0x4d0   : > { %v2427_v6 = vpop.eup %2426  ;;  %2250 = vmatprep.subr.bf16.mxu0 %v2493_v0 }
 0x4d1   : > { %v1180_v55 = vsel %vm387_vm4, %v2427_v6, 0.0 }
 0x4d2   : > { %1181 = vadd.xlane.f32.xlu0 %v1180_v55 }
 0x4d4   : > { %v2429_v15 = vpop.eup %2428 }
 0x4d5   : > { %v1183_v24 = vsel %vm387_vm4, %v2429_v15, 0.0  ;;  %v2431_v45 = vpop.eup %2430 }
 0x4d6   : > { %1184 = vadd.xlane.f32.xlu0 %v1183_v24  ;;  %v1177_v54 = vsel %vm387_vm4, %v2431_v45, 0.0  ;;  %v1238_v4 = vpack.c.bf16 %v2427_v6, %v2431_v45 }
 0x4d7   : > { %v2433_v19 = vpop.eup %2432 }
 0x4d8   : > { %v1186_v62 = vsel %vm387_vm4, %v2433_v19, 0.0  ;;  %v1239_v35 = vpack.c.bf16 %v2433_v19, %v2429_v15 }
 0x4dc   : > { %816 = vadd.xlane.f32.xlu1 %v815_v27 }
 0x4e0   : > { %828 = vadd.xlane.f32.xlu1 %v827_v30  ;;  %v501_v30 = vld [vmem:[#allocation4 + $0x10] sm:$0xff] }
 0x4e1   : > { %v1150_v37 = vpop.permute.xlu1 %1149 }
 0x4e2   : > { %v1156_v59 = vsub.f32 %v2870_v20, %v1150_v37 }
 0x4e4   : > { %v1165_v48 = vmul.f32 1.442695, %v1156_v59  ;;  %1178 = vadd.xlane.f32.xlu1 %v1177_v54 }
 0x4e5   : > { %v1246_v34 = vpop.permute.xlu1 %1245 }
 0x4e6   : > { %2434 = vpow2.f32 %v1165_v48  ;;  %v1259_v51 = vsel %vm554_vm6, %v1246_v34, 0  ;;  %v503_v34 = vld [vmem:[#allocation4 + $0x20] sm:$0xff] }
 0x4e7   : > { %2251 = vmatpush3.bf16.msra.mxu0 %v1259_v51  ;;  %v502_v51 = vld [vmem:[#allocation4 + $0x18] sm:$0xff] }
 0x4e8   : > { %1187 = vadd.xlane.f32.xlu1 %v1186_v62  ;;  %2282 = vmatprep.subr.bf16.mxu0 %v2493_v0 }
 0x4ea   : > { %2253 = vmatmul.mubr.msk.bf16.vlgmr.msra.gmra.mrb[24].mxu0 %vm387_vm4, %v1238_v4 }
 0x4eb   : > { %2256 = vmatprep.mubr.msk.bf16.mxu0 %vm2495_vm0, %v2493_v0 }
 0x4f0   : > { %v2435_v20 = vpop.eup %2434 }
 0x4f1   : > { %v1189_v38 = vsel %vm387_vm4, %v2435_v20, 0.0  ;;  %v1240_v14 = vpack.c.bf16 %v2435_v20, %v2435_v20 }
 0x4f2   : > { %1190 = vadd.xlane.f32.xlu0 %v1189_v38  ;;  %2257 = vmatmul.mubr.msk.bf16.gmra.mrb[28].mxu0 %vm387_vm4, %v1239_v35 }
 0x4f3   : > { %2260 = vmatprep.mubr.msk.bf16.mxu0 %vm2495_vm0, %v2493_v0 }
 0x4fa   : > { %2261 = vmatmul.mubr.msk.bf16.gmra.mrb[32].mxu0 %vm387_vm4, %v1240_v14 }
 0x4fb   : > { %2288 = vmatprep.mubr.msk.bf16.mxu0 %vm2495_vm0, %v2493_v0 }
 0x4fd   : > { %v1492_v10 = vpop.permute.xlu0 %1491 }
 0x4fe   : > { %v1514_v13 = vsub.f32 %v2876_v52, %v1492_v10 }
 0x500   : > { %v1519_v46 = vmul.f32 1.442695, %v1514_v13 }
 0x501   : > { %v1497_v33 = vpop.permute.xlu1 %1496 }
 0x502   : > { %2436 = vpow2.f32 %v1519_v46  ;;  %v1515_v58 = vsub.f32 %v2881_v56, %v1497_v33 }
 0x504   : > { %v1521_v57 = vmul.f32 1.442695, %v1515_v58 }
 0x505   : > { %v1502_v40 = vpop.permute.xlu1 %1501 }
 0x506   : > { %2438 = vpow2.f32 %v1521_v57  ;;  %v1516_v6 = vsub.f32 %v2886_v60, %v1502_v40 }
 0x508   : > { %v1523_v55 = vmul.f32 1.442695, %v1516_v6 }
 0x509   : > { %v1604_v22 = vpop.permute.xlu1 %1603  ;;  %v1507_v28 = vpop.permute.xlu0 %1506 }
 0x50a   : > { %2440 = vpow2.f32 %v1523_v55  ;;  %v1517_v15 = vsub.f32 %v2891_v32, %v1507_v28  ;;  %2283 = vmatpush3.bf16.msra.mxu0 %v1604_v22  ;;  %v806_v28 = vld [vmem:[#allocation3 + $0x8] sm:$0xff] }
 0x50b   : > { %2284 = vmatprep.subr.bf16.mxu0 %v2493_v0 }
 0x50c   : > { %v2437_v52 = vpop.eup %2436  ;;  %v1525_v24 = vmul.f32 1.442695, %v1517_v15 }
 0x50d   : > { %v1606_v18 = vpop.permute.xlu1 %1605  ;;  %v1512_v27 = vpop.permute.xlu0 %1511  ;;  %v1539_v56 = vsel %vm387_vm4, %v2437_v52, 0.0 }
 0x50e   : > { %2442 = vpow2.f32 %v1525_v24  ;;  %1540 = vadd.xlane.f32.xlu0 %v1539_v56  ;;  %2285 = vmatpush3.bf16.msra.mxu0 %v1606_v18  ;;  %v1518_v60 = vsub.f32 %v2896_v63, %v1512_v27  ;;  %v807_v18 = vld [vmem:[#allocation3 + $0x10] sm:$0xff] }
 0x50f   : > { %2286 = vmatprep.subr.bf16.mxu0 %v2493_v0  ;;  %v812_v27 = vmul.f32 %v3106_v25, %v807_v18 }
 0x510   : > { %v2439_v45 = vpop.eup %2438  ;;  %v1527_v48 = vmul.f32 1.442695, %v1518_v60 }
 0x511   : > { %v517_v37 = vpop.permute.xlu1 %516  ;;  %v1608_v32 = vpop.permute.xlu0 %1607  ;;  %v1542_v59 = vsel %vm387_vm4, %v2439_v45, 0.0  ;;  %v1600_v4 = vpack.c.bf16 %v2439_v45, %v2437_v52 }
 0x512   : > { %v531_v54 = vmul.f32 %v517_v37, %v501_v30  ;;  %v1621_v19 = vsel %vm554_vm6, %v1608_v32, 0  ;;  %1543 = vadd.xlane.f32.xlu1 %v1542_v59  ;;  %2444 = vpow2.f32 %v1527_v48  ;;  %v808_v30 = vld [vmem:[#allocation3 + $0x18] sm:$0xff] }
 0x513   : > { %2287 = vmatpush3.bf16.msra.mxu0 %v1621_v19  ;;  %v813_v37 = vmul.f32 %v3116_v23, %v808_v30  ;;  %v3400_v30 = vsub.f32 %v3027_v21, %v3030_v26 }
 0x514   : > { %v2441_v62 = vpop.eup %2440  ;;  %v616_v63 = vadd.f32 %v2810_v41, %v531_v54 }
 0x515   : > { %v527_v20 = vpop.permute.xlu1 %526  ;;  %v522_v35 = vpop.permute.xlu0 %521  ;;  %v1545_v38 = vsel %vm387_vm4, %v2441_v62, 0.0 }
 0x516   : > { %621 = vst.msk [vmem:[#allocation4 + $0x10] sm:$0xff] %vm297_vm1, %v616_v63  ;;  %v533_v14 = vmul.f32 %v527_v20, %v503_v34  ;;  %v532_v10 = vmul.f32 %v522_v35, %v502_v51  ;;  %1546 = vadd.xlane.f32.xlu0 %v1545_v38  ;;  %2289 = vmatmul.mubr.msk.bf16.vlgmr.msra.gmra.mrb[36].mxu0 %vm387_vm4, %v1600_v4  ;;  %v805_v20 = vld [vmem:[#allocation3] sm:$0xff] }
 0x517   : > { %2292 = vmatprep.mubr.msk.bf16.mxu0 %vm2495_vm0, %v2493_v0  ;;  %v810_v35 = vmul.f32 %v3095_v7, %v805_v20 }
 0x518   : > { %v2443_v13 = vpop.eup %2442  ;;  %v618_v46 = vadd.f32 %v2814_v49, %v533_v14  ;;  %v617_v41 = vadd.f32 %v2812_v43, %v532_v10  ;;  %v809_v14 = vld [vmem:[#allocation3 + $0x20] sm:$0xff] }
 0x519   : > { %v1548_v33 = vsel %vm387_vm4, %v2443_v13, 0.0  ;;  %v1601_v58 = vpack.c.bf16 %v2443_v13, %v2441_v62  ;;  %v814_v10 = vmul.f32 %v3124_v29, %v809_v14 }
 0x51a   : > { %623 = vst.msk [vmem:[#allocation4 + $0x20] sm:$0xff] %vm297_vm1, %v618_v46  ;;  %622 = vst.msk [vmem:[#allocation4 + $0x18] sm:$0xff] %vm297_vm1, %v617_v41  ;;  %1549 = vadd.xlane.f32.xlu0 %v1548_v33  ;;  %v3216_v43 = vpop.permute.xlu1 %853  ;;  %v3220_v6 = vpop.permute.xlu0 %848 }
 0x51c   : > { %v3211_v57 = vpop.eup %2444 }
 0x51d   : > { %v1602_v49 = vpack.c.bf16 %v3211_v57, %v3211_v57 }
 0x51e   : > { %2293 = vmatmul.mubr.msk.bf16.gmra.mrb[40].mxu0 %vm387_vm4, %v1601_v58  ;;  %v3218_v40 = vpop.permute.xlu1 %858 }
 0x51f   : > { %2296 = vmatprep.mubr.msk.bf16.mxu0 %vm2495_vm0, %v2493_v0  ;;  %v3224_v22 = vpop.permute.xlu0 %1215  ;;  %v811_v0 = vmul.f32 %v3097_v9, %v806_v28 }
 0x522   : > { %v3222_v55 = vpop.permute.xlu1 %863 }
 0x526   : > { %2297 = vmatmul.mubr.msk.bf16.gmra.mrb[44].mxu0 %vm387_vm4, %v1602_v49  ;;  %v3227_v52 = vpop.permute.xlu1 %868 }
 0x52b   : > { %v3231_v45 = vpop.permute.xlu1 %1210 }
 0x52f   : > { %v3236_v59 = vpop.permute.xlu1 %1220 }
 0x533   : > { %v3239_v48 = vpop.permute.xlu1 %1225 }
 0x537   : > { %v3243_v63 = vpop.permute.xlu1 %1230 }
 0x54c   : > { %v820_v15 = vpop.xlane.xlu0 %819 }
 0x54d   : > { %v831_v24 = vadd.f32 %v820_v15, %v811_v0 }
 0x54f   : > { %837 = vst.msk [vmem:[#allocation3 + $0x8] sm:$0xff] %vm835_vm8, %v831_v24 }
 0x550   : > { %v823_v56 = vpop.xlane.xlu0 %822 }
 0x551   : > { %v832_v60 = vadd.f32 %v823_v56, %v812_v27  ;;  %v3399_v27 = vsub.f32 %v3017_v2, %v3020_v39  ;;  %v3402_v39 = vsub.f32 %v3047_v3, %v3050_v47 }
 0x553   : > { %838 = vst.msk [vmem:[#allocation3 + $0x10] sm:$0xff] %vm835_vm8, %v832_v60 }
 0x554   : > { %v826_v32 = vpop.xlane.xlu0 %825 }
 0x555   : > { %v833_v9 = vadd.f32 %v826_v32, %v813_v37  ;;  %v1481_v37 = vmul.f32 1.442695, %v3400_v30 }
 0x556   : > { %v1168_v54 = vld [vmem:[#allocation3 + $0x8] sm:$0xff] }
 0x557   : > { %839 = vst.msk [vmem:[#allocation3 + $0x18] sm:$0xff] %vm835_vm8, %v833_v9  ;;  %v1173_v19 = vmul.f32 %v3108_v11, %v1168_v54 }
 0x55a   : > { %v1169_v34 = vld [vmem:[#allocation3 + $0x10] sm:$0xff] }
 0x55b   : > { %v1174_v62 = vmul.f32 %v3136_v42, %v1169_v34 }
 0x55e   : > { %v1170_v41 = vld [vmem:[#allocation3 + $0x18] sm:$0xff] }
 0x55f   : > { %v1182_v25 = vpop.xlane.xlu0 %1181  ;;  %v1175_v49 = vmul.f32 %v3140_v8, %v1170_v41 }
 0x560   : > { %v1193_v51 = vadd.f32 %v1182_v25, %v1173_v19  ;;  %v1485_v19 = vmul.f32 1.442695, %v3402_v39 }
 0x562   : > { %1199 = vst.msk [vmem:[#allocation3 + $0x8] sm:$0xff] %vm1197_vm9, %v1193_v51 }
 0x563   : > { %v1185_v4 = vpop.xlane.xlu0 %1184 }
 0x564   : > { %v1194_v23 = vadd.f32 %v1185_v4, %v1174_v62 }
 0x566   : > { %1200 = vst.msk [vmem:[#allocation3 + $0x10] sm:$0xff] %vm1197_vm9, %v1194_v23 }
 0x569   : > { %v817_v38 = vpop.xlane.xlu1 %816  ;;  %v1530_v62 = vld [vmem:[#allocation3 + $0x8] sm:$0xff] }
 0x56a   : > { %v830_v11 = vadd.f32 %v817_v38, %v810_v35 }
 0x56c   : > { %836 = vst.msk [vmem:[#allocation3] sm:$0xff] %vm835_vm8, %v830_v11 }
 0x56d   : > { %v829_v13 = vpop.xlane.xlu1 %828  ;;  %v1531_v11 = vld [vmem:[#allocation3 + $0x10] sm:$0xff] }
 0x56e   : > { %v834_v46 = vadd.f32 %v829_v13, %v814_v10 }
 0x570   : > { %840 = vst.msk [vmem:[#allocation3 + $0x20] sm:$0xff] %vm835_vm8, %v834_v46 }
 0x571   : > { %v1179_v42 = vpop.xlane.xlu1 %1178 }
 0x573   : > { %v1167_v33 = vld [vmem:[#allocation3] sm:$0xff] }
 0x574   : > { %v1172_v58 = vmul.f32 %v3131_v17, %v1167_v33  ;;  %v1479_v17 = vmul.f32 1.442695, %v3399_v27 }
 0x575   : > { %v1188_v28 = vpop.xlane.xlu1 %1187 }
 0x576   : > { %v1192_v7 = vadd.f32 %v1179_v42, %v1172_v58  ;;  %v1195_v0 = vadd.f32 %v1188_v28, %v1175_v49  ;;  %2446 = vpow2.f32 %v1479_v17 }
 0x577   : > { %v1171_v15 = vld [vmem:[#allocation3 + $0x20] sm:$0xff]  ;;  %2448 = vpow2.f32 %v1481_v37 }
 0x578   : > { %1198 = vst.msk [vmem:[#allocation3] sm:$0xff] %vm1197_vm9, %v1192_v7  ;;  %1201 = vst.msk [vmem:[#allocation3 + $0x18] sm:$0xff] %vm1197_vm9, %v1195_v0  ;;  %v1176_v29 = vmul.f32 %v3144_v61, %v1171_v15  ;;  %v3401_v61 = vsub.f32 %v3037_v1, %v3040_v16  ;;  %v1487_v16 = vmul.f32 1.442695, %v1478_v31 }
 0x57a   : > { %v1483_v9 = vmul.f32 1.442695, %v3401_v61 }
 0x57c   : > { %2450 = vpow2.f32 %v1483_v9 }
 0x57d   : > { %2452 = vpow2.f32 %v1485_v19 }
 0x57e   : > { %2454 = vpow2.f32 %v1487_v16 }
 0x57f   : > { %v1191_v24 = vpop.xlane.xlu0 %1190  ;;  %v1529_v34 = vld [vmem:[#allocation3] sm:$0xff]  ;;  %v1532_v31 = vld [vmem:[#allocation3 + $0x18] sm:$0xff] }
 0x580   : > { %v1196_v18 = vadd.f32 %v1191_v24, %v1176_v29  ;;  %v2447_v21 = vpop.eup %2446  ;;  %v1551_v29 = vsel %vm387_vm4, %v3211_v57, 0.0 }
 0x581   : > { %v1534_v26 = vmul.f32 %v2447_v21, %v1529_v34  ;;  %v2449_v23 = vpop.eup %2448 }
 0x582   : > { %1202 = vst.msk [vmem:[#allocation3 + $0x20] sm:$0xff] %vm1197_vm9, %v1196_v18  ;;  %v1535_v3 = vmul.f32 %v2449_v23, %v1530_v62 }
 0x586   : > { %v2451_v13 = vpop.eup %2450 }
 0x587   : > { %v1536_v53 = vmul.f32 %v2451_v13, %v1531_v11  ;;  %v2453_v42 = vpop.eup %2452 }
 0x588   : > { %v1537_v41 = vmul.f32 %v2453_v42, %v1532_v31  ;;  %v3274_v49 = vpop.eup %2454 }
 0x58c   : > { %v933_v56 = vpop.f32.mrb[12].mxu0 }
 0x58d   : > { %960 = vrot.lane.b32.xlu1 %v933_v56, %s2511_s3  ;;  %v2218_v8 = vpop.f32.mrb[13].mxu0 }
 0x58e   : > { %v936_v60 = vpop.f32.mrb[14].mxu0 }
 0x58f   : > { %v2219_v32 = vpop.f32.mrb[15].mxu0 }
 0x591   : > { %962 = vrot.lane.b32.xlu1 %v936_v60, %s2511_s3 }
 0x595   : > { %v941_v54 = vpop.f32.mrb[16].mxu0 }
 0x596   : > { %964 = vrot.lane.b32.xlu1 %v941_v54, %s2511_s3  ;;  %v2222_v2 = vpop.f32.mrb[17].mxu0 }
 0x597   : > { %v944_v25 = vpop.f32.mrb[18].mxu0 }
 0x598   : > { %v2223_v51 = vpop.f32.mrb[19].mxu0 }
 0x59a   : > { %966 = vrot.lane.b32.xlu1 %v944_v25, %s2511_s3 }
 0x59b   : > { %v1541_v1 = vpop.xlane.xlu0 %1540 }
 0x59c   : > { %v1554_v4 = vadd.f32 %v1541_v1, %v1534_v26 }
 0x59d   : > { %v949_v20 = vpop.f32.mrb[20].mxu0 }
 0x59e   : > { %1560 = vst.msk [vmem:[#allocation3] sm:$0xff] %vm1559_vm10, %v1554_v4  ;;  %1572 = vperm.xlu1 %2360, %v2447_v21   ;;  %968 = vrot.lane.b32.xlu0 %v949_v20, %s2511_s3  ;;  %v2226_v47 = vpop.f32.mrb[21].mxu0  ;;  %v841_v20 = vld [vmem:[#allocation4] sm:$0xff] }
 0x59f   : > { %v1544_v35 = vpop.xlane.xlu1 %1543  ;;  %v952_v38 = vpop.f32.mrb[22].mxu0  ;;  %v871_v47 = vmul.f32 %v3220_v6, %v841_v20 }
 0x5a0   : > { %v1555_v14 = vadd.f32 %v1544_v35, %v1535_v3  ;;  %v2227_v10 = vpop.f32.mrb[23].mxu0  ;;  %v842_v38 = vld [vmem:[#allocation4 + $0x8] sm:$0xff] }
 0x5a1   : > { %v872_v11 = vmul.f32 %v3216_v43, %v842_v38  ;;  %v843_v10 = vld [vmem:[#allocation4 + $0x10] sm:$0xff] }
 0x5a2   : > { %1561 = vst.msk [vmem:[#allocation3 + $0x8] sm:$0xff] %vm1559_vm10, %v1555_v14  ;;  %1582 = vperm.xlu1 %2360, %v2451_v13  }
 0x5a3   : > { %v1547_v36 = vpop.xlane.xlu0 %1546 }
 0x5a4   : > { %v1556_v46 = vadd.f32 %v1547_v36, %v1536_v53  ;;  %v873_v53 = vmul.f32 %v3218_v40, %v843_v10  ;;  %v844_v36 = vld [vmem:[#allocation4 + $0x18] sm:$0xff] }
 0x5a5   : > { %v1873_v37 = vld [vmem:[#allocation3] sm:$0xff]  ;;  %v874_v6 = vmul.f32 %v3222_v55, %v844_v36 }
 0x5a6   : > { %1562 = vst.msk [vmem:[#allocation3 + $0x10] sm:$0xff] %vm1559_vm10, %v1556_v46  ;;  %1587 = vperm.xlu1 %2360, %v2453_v42  }
 0x5a7   : > { %v1550_v33 = vpop.xlane.xlu0 %1549 }
 0x5a8   : > { %v1557_v58 = vadd.f32 %v1550_v33, %v1537_v41  ;;  %v845_v33 = vld [vmem:[#allocation4 + $0x20] sm:$0xff] }
 0x5a9   : > { %v1724_v28 = vld [vmem:[#allocation3 + $0x8] sm:$0xff]  ;;  %v875_v43 = vmul.f32 %v3227_v52, %v845_v33 }
 0x5aa   : > { %2456 = vrcp.f32 %v1724_v28  ;;  %1563 = vst.msk [vmem:[#allocation3 + $0x18] sm:$0xff] %vm1559_vm10, %v1557_v58  ;;  %1592 = vperm.xlu1 %2360, %v3274_v49  }
 0x5ad   : > { %v1725_v7 = vld [vmem:[#allocation3 + $0x10] sm:$0xff] }
 0x5ae   : > { %2458 = vrcp.f32 %v1725_v7  ;;  %2363 = vset.pattern.permute.xlu1 %v2497_v44  ;;  %v1533_v7 = vld [vmem:[#allocation3 + $0x20] sm:$0xff] }
 0x5af   : > { %2460 = vrcp.f32 %v1873_v37  ;;  %v1538_v40 = vmul.f32 %v3274_v49, %v1533_v7 }
 0x5b1   : > { %v1876_v61 = vld [vmem:[#allocation3 + $0x18] sm:$0xff] }
 0x5b2   : > { %2462 = vrcp.f32 %v1876_v61 }
 0x5b4   : > { %v3279_v0 = vpop.eup %2456 }
 0x5b5   : > { %1740 = vperm.xlu1 %2363, %v3279_v0  }
 0x5b8   : > { %v3282_v15 = vpop.eup %2458 }
 0x5b9   : > { %1745 = vperm.xlu1 %2363, %v3282_v15   ;;  %v2461_v2 = vpop.eup %2460 }
 0x5bc   : > { %v2463_v39 = vpop.eup %2462 }
 0x5bd   : > { %1552 = vadd.xlane.f32.xlu0 %v1551_v29  ;;  %v3287_v24 = vpop.f32.mrb[24].mxu0 }
 0x5be   : > { %v2254_v18 = vpop.f32.mrb[25].mxu0 }
 0x5bf   : > { %v3289_v27 = vpop.f32.mrb[26].mxu0 }
 0x5c0   : > { %v2255_v17 = vpop.f32.mrb[27].mxu0 }
 0x5c5   : > { %v3291_v56 = vpop.f32.mrb[28].mxu0 }
 0x5c6   : > { %v2258_v8 = vpop.f32.mrb[29].mxu0 }
 0x5c7   : > { %v3293_v60 = vpop.f32.mrb[30].mxu0 }
 0x5c8   : > { %v2259_v30 = vpop.f32.mrb[31].mxu0 }
 0x5cd   : > { %v3295_v32 = vpop.f32.mrb[32].mxu0 }
 0x5ce   : > { %v2262_v9 = vpop.f32.mrb[33].mxu0 }
 0x5cf   : > { %v1314_v57 = vpop.f32.mrb[34].mxu0 }
 0x5d0   : > { %v2263_v54 = vpop.f32.mrb[35].mxu0 }
 0x5d3   : > { %1577 = vperm.xlu0 %2361, %v2449_v23  }
 0x5d7   : > { %2362 = vset.pattern.permute.xlu0 %v2497_v44 }
 0x5d8   : > { %1735 = vperm.xlu0 %2362, %v2461_v2  }
 0x5dc   : > { %1750 = vperm.xlu0 %2362, %v2463_v39  }
 0x5e0   : > { %2364 = vset.pattern.permute.xlu0 %v2505_v5 }
 0x5e1   : > { %1785 = vperm.xlu0 %2364, %v2461_v2  }
 0x5e5   : > { %1800 = vperm.xlu0 %2364, %v2463_v39  }
 0x5e9   : > { %2366 = vset.pattern.permute.xlu0 %v3394_v12  ;;  %v1657_v19 = vpop.f32.mrb[36].mxu0 }
 0x5ea   : > { %1835 = vperm.xlu0 %2366, %v2461_v2   ;;  %v2290_v25 = vpop.f32.mrb[37].mxu0 }
 0x5eb   : > { %v1660_v34 = vpop.f32.mrb[38].mxu0 }
 0x5ec   : > { %v2291_v51 = vpop.f32.mrb[39].mxu0 }
 0x5ee   : > { %1850 = vperm.xlu0 %2366, %v2463_v39  }
 0x5f1   : > { %v1665_v21 = vpop.f32.mrb[40].mxu0 }
 0x5f2   : > { %2368 = vset.pattern.permute.xlu0 %v3396_v50  ;;  %v2294_v26 = vpop.f32.mrb[41].mxu0 }
 0x5f3   : > { %1885 = vperm.xlu0 %2368, %v2461_v2   ;;  %v1668_v44 = vpop.f32.mrb[42].mxu0 }
 0x5f4   : > { %v2295_v16 = vpop.f32.mrb[43].mxu0 }
 0x5f7   : > { %1900 = vperm.xlu0 %2368, %v2463_v39  }
 0x5f9   : > { %v1673_v1 = vpop.f32.mrb[44].mxu0 }
 0x5fa   : > { %v2298_v62 = vpop.f32.mrb[45].mxu0 }
 0x5fb   : > { %v1676_v4 = vpop.f32.mrb[46].mxu0 }
 0x5fc   : > { %v2299_v23 = vpop.f32.mrb[47].mxu0 }
 0x5ff   : > { %v961_v3 = vpop.permute.xlu1 %960 }
 0x600   : > { %v975_v35 = vadd.f32 %v961_v3, %v871_v47 }
 0x602   : > { %981 = vst.msk [vmem:[#allocation4] sm:$0xff] %vm980_vm11, %v975_v35 }
 0x603   : > { %v963_v14 = vpop.permute.xlu1 %962 }
 0x604   : > { %v976_v13 = vadd.f32 %v963_v14, %v872_v11 }
 0x606   : > { %982 = vst.msk [vmem:[#allocation4 + $0x8] sm:$0xff] %vm980_vm11, %v976_v13 }
 0x608   : > { %v965_v31 = vpop.permute.xlu1 %964 }
 0x609   : > { %v977_v46 = vadd.f32 %v965_v31, %v873_v53  ;;  %v1203_v8 = vld [vmem:[#allocation4] sm:$0xff] }
 0x60b   : > { %983 = vst.msk [vmem:[#allocation4 + $0x10] sm:$0xff] %vm980_vm11, %v977_v46 }
 0x60c   : > { %v967_v42 = vpop.permute.xlu1 %966 }
 0x60d   : > { %v978_v41 = vadd.f32 %v967_v42, %v874_v6 }
 0x60f   : > { %984 = vst.msk [vmem:[#allocation4 + $0x18] sm:$0xff] %vm980_vm11, %v978_v41 }
 0x610   : > { %v969_v58 = vpop.permute.xlu0 %968 }
 0x611   : > { %v979_v28 = vadd.f32 %v969_v58, %v875_v43 }
 0x613   : > { %985 = vst.msk [vmem:[#allocation4 + $0x20] sm:$0xff] %vm980_vm11, %v979_v28 }
 0x616   : > { %v1206_v54 = vld [vmem:[#allocation4 + $0x18] sm:$0xff] }
 0x64a   : > { %v1553_v29 = vpop.xlane.xlu0 %1552 }
 0x64b   : > { %v1558_v18 = vadd.f32 %v1553_v29, %v1538_v40 }
 0x64d   : > { %1564 = vst.msk [vmem:[#allocation3 + $0x20] sm:$0xff] %vm1559_vm10, %v1558_v18 }
 0x652   : > { %v1578_v26 = vpop.permute.xlu0 %1577 }
 0x654   : > { %v1727_v55 = vld [vmem:[#allocation3 + $0x20] sm:$0xff] }
 0x655   : > { %2464 = vrcp.f32 %v1727_v55 }
 0x657   : > { %v1736_v62 = vpop.permute.xlu0 %1735 }
 0x65b   : > { %v1751_v38 = vpop.permute.xlu0 %1750 }
 0x65f   : > { %v2465_v17 = vpop.eup %2464 }
 0x660   : > { %1755 = vperm.xlu1 %2363, %v2465_v17   ;;  %v1786_v42 = vpop.permute.xlu0 %1785 }
 0x664   : > { %1322 = vrot.lane.b32.xlu1 %v3287_v24, %s2512_s4  ;;  %v1801_v29 = vpop.permute.xlu0 %1800 }
 0x665   : > { %2365 = vset.pattern.permute.xlu1 %v2505_v5  ;;  %v1573_v5 = vpop.permute.xlu1 %1572 }
 0x668   : > { %1324 = vrot.lane.b32.xlu1 %v3289_v27, %s2512_s4 }
 0x669   : > { %v1583_v52 = vpop.permute.xlu1 %1582 }
 0x66c   : > { %1326 = vrot.lane.b32.xlu1 %v3291_v56, %s2512_s4 }
 0x66d   : > { %v1588_v49 = vpop.permute.xlu1 %1587 }
 0x670   : > { %1328 = vrot.lane.b32.xlu1 %v3293_v60, %s2512_s4  ;;  %v1233_v60 = vmul.f32 %v3231_v45, %v1203_v8  ;;  %v1236_v45 = vmul.f32 %v3239_v48, %v1206_v54 }
 0x671   : > { %v1593_v24 = vpop.permute.xlu1 %1592 }
 0x674   : > { %1330 = vrot.lane.b32.xlu1 %v3295_v32, %s2512_s4  ;;  %v1205_v32 = vld [vmem:[#allocation4 + $0x10] sm:$0xff] }
 0x675   : > { %v1741_v27 = vpop.permute.xlu1 %1740  ;;  %v1235_v9 = vmul.f32 %v3236_v59, %v1205_v32 }
 0x678   : > { %1684 = vrot.lane.b32.xlu1 %v1657_v19, %s2513_s5  ;;  %v1207_v19 = vld [vmem:[#allocation4 + $0x20] sm:$0xff] }
 0x679   : > { %v3327_v56 = vpop.permute.xlu1 %1745 }
 0x67c   : > { %1686 = vrot.lane.b32.xlu1 %v1660_v34, %s2513_s5 }
 0x680   : > { %1688 = vrot.lane.b32.xlu1 %v1665_v21, %s2513_s5 }
 0x684   : > { %1690 = vrot.lane.b32.xlu1 %v1668_v44, %s2513_s5 }
 0x688   : > { %1692 = vrot.lane.b32.xlu1 %v1673_v1, %s2513_s5 }
 0x68c   : > { %1790 = vperm.xlu1 %2365, %v3279_v0  }
 0x690   : > { %1795 = vperm.xlu1 %2365, %v3282_v15  }
 0x694   : > { %1805 = vperm.xlu1 %2365, %v2465_v17  }
 0x698   : > { %2367 = vset.pattern.permute.xlu1 %v3394_v12 }
 0x699   : > { %1840 = vperm.xlu1 %2367, %v3279_v0  }
 0x69d   : > { %1845 = vperm.xlu1 %2367, %v3282_v15  }
 0x6a1   : > { %1855 = vperm.xlu1 %2367, %v2465_v17  }
 0x6a5   : > { %2369 = vset.pattern.permute.xlu1 %v3396_v50  ;;  %v1204_v50 = vld [vmem:[#allocation4 + $0x8] sm:$0xff] }
 0x6a6   : > { %1890 = vperm.xlu1 %2369, %v3279_v0   ;;  %v1234_v0 = vmul.f32 %v3224_v22, %v1204_v50  ;;  %v1237_v22 = vmul.f32 %v3243_v63, %v1207_v19 }
 0x6aa   : > { %1895 = vperm.xlu1 %2369, %v3282_v15  }
 0x6ae   : > { %1905 = vperm.xlu1 %2369, %v2465_v17  }
 0x6df   : > { %v3329_v12 = vpop.permute.xlu1 %1755 }
 0x6e3   : > { %v1323_v30 = vpop.permute.xlu1 %1322 }
 0x6e4   : > { %v1337_v37 = vadd.f32 %v1323_v30, %v1233_v60 }
 0x6e6   : > { %1343 = vst.msk [vmem:[#allocation4] sm:$0xff] %vm1342_vm12, %v1337_v37 }
 0x6e7   : > { %v1325_v15 = vpop.permute.xlu1 %1324 }
 0x6e8   : > { %v1338_v61 = vadd.f32 %v1325_v15, %v1234_v0 }
 0x6ea   : > { %1344 = vst.msk [vmem:[#allocation4 + $0x8] sm:$0xff] %vm1342_vm12, %v1338_v61 }
 0x6eb   : > { %v1327_v57 = vpop.permute.xlu1 %1326 }
 0x6ec   : > { %v1339_v2 = vadd.f32 %v1327_v57, %v1235_v9 }
 0x6ed   : > { %v1565_v51 = vld [vmem:[#allocation4] sm:$0xff] }
 0x6ee   : > { %1345 = vst.msk [vmem:[#allocation4 + $0x10] sm:$0xff] %vm1342_vm12, %v1339_v2  ;;  %v1595_v59 = vmul.f32 %v1573_v5, %v1565_v51 }
 0x6ef   : > { %v1329_v39 = vpop.permute.xlu1 %1328 }
 0x6f0   : > { %v1340_v25 = vadd.f32 %v1329_v39, %v1236_v45 }
 0x6f1   : > { %v1566_v16 = vld [vmem:[#allocation4 + $0x8] sm:$0xff] }
 0x6f2   : > { %1346 = vst.msk [vmem:[#allocation4 + $0x18] sm:$0xff] %vm1342_vm12, %v1340_v25  ;;  %v1596_v48 = vmul.f32 %v1578_v26, %v1566_v16 }
 0x6f3   : > { %v1331_v34 = vpop.permute.xlu1 %1330 }
 0x6f4   : > { %v1341_v21 = vadd.f32 %v1331_v34, %v1237_v22 }
 0x6f5   : > { %v1567_v23 = vld [vmem:[#allocation4 + $0x10] sm:$0xff] }
 0x6f6   : > { %1347 = vst.msk [vmem:[#allocation4 + $0x20] sm:$0xff] %vm1342_vm12, %v1341_v21  ;;  %v1597_v63 = vmul.f32 %v1583_v52, %v1567_v23 }
 0x6f7   : > { %v1685_v44 = vpop.permute.xlu1 %1684 }
 0x6f8   : > { %v1699_v1 = vadd.f32 %v1685_v44, %v1595_v59 }
 0x6f9   : > { %v1568_v3 = vld [vmem:[#allocation4 + $0x18] sm:$0xff] }
 0x6fa   : > { %1705 = vst.msk [vmem:[#allocation4] sm:$0xff] %vm1704_vm13, %v1699_v1  ;;  %v1598_v10 = vmul.f32 %v1588_v49, %v1568_v3 }
 0x6fb   : > { %v1687_v4 = vpop.permute.xlu1 %1686 }
 0x6fc   : > { %v1700_v20 = vadd.f32 %v1687_v4, %v1596_v48 }
 0x6fd   : > { %v1569_v53 = vld [vmem:[#allocation4 + $0x20] sm:$0xff] }
 0x6fe   : > { %1706 = vst.msk [vmem:[#allocation4 + $0x8] sm:$0xff] %vm1704_vm13, %v1700_v20  ;;  %v1599_v46 = vmul.f32 %v1593_v24, %v1569_v53 }
 0x6ff   : > { %v1689_v47 = vpop.permute.xlu1 %1688 }
 0x700   : > { %v1701_v35 = vadd.f32 %v1689_v47, %v1597_v63 }
 0x701   : > { %v1718_v11 = vld [vmem:[#allocation4] sm:$0xff] }
 0x702   : > { %v1758_v14 = vmul.f32 %v1736_v62, %v1718_v11  ;;  %1707 = vst.msk [vmem:[#allocation4 + $0x10] sm:$0xff] %vm1704_vm13, %v1701_v35 }
 0x703   : > { %v1691_v13 = vpop.permute.xlu1 %1690 }
 0x704   : > { %1763 = vst.msk [vmem:[#allocation4] sm:$0xff] %vm297_vm1, %v1758_v14  ;;  %v1702_v36 = vadd.f32 %v1691_v13, %v1598_v10 }
 0x705   : > { %v1719_v31 = vld [vmem:[#allocation4 + $0x8] sm:$0xff] }
 0x706   : > { %1708 = vst.msk [vmem:[#allocation4 + $0x18] sm:$0xff] %vm1704_vm13, %v1702_v36  ;;  %v1759_v6 = vmul.f32 %v1741_v27, %v1719_v31  ;;  %v1836_v27 = vpop.permute.xlu0 %1835 }
 0x707   : > { %v1693_v41 = vpop.permute.xlu1 %1692 }
 0x708   : > { %v1703_v33 = vadd.f32 %v1693_v41, %v1599_v46  ;;  %1764 = vst.msk [vmem:[#allocation4 + $0x8] sm:$0xff] %vm297_vm1, %v1759_v6 }
 0x709   : > { %v1720_v43 = vld [vmem:[#allocation4 + $0x10] sm:$0xff] }
 0x70a   : > { %1709 = vst.msk [vmem:[#allocation4 + $0x20] sm:$0xff] %vm1704_vm13, %v1703_v33  ;;  %v1760_v58 = vmul.f32 %v3327_v56, %v1720_v43  ;;  %v1851_v32 = vpop.permute.xlu0 %1850 }
 0x70b   : > { %v1768_v28 = vld [vmem:[#allocation4] sm:$0xff]  ;;  %v1791_v7 = vpop.permute.xlu1 %1790 }
 0x70c   : > { %v1808_v40 = vmul.f32 %v1786_v42, %v1768_v28  ;;  %1765 = vst.msk [vmem:[#allocation4 + $0x10] sm:$0xff] %vm297_vm1, %v1760_v58 }
 0x70d   : > { %v1721_v18 = vld [vmem:[#allocation4 + $0x18] sm:$0xff] }
 0x70e   : > { %1813 = vst.msk [vmem:[#allocation4] sm:$0xff] %vm980_vm11, %v1808_v40  ;;  %v1761_v55 = vmul.f32 %v1751_v38, %v1721_v18  ;;  %v1886_v39 = vpop.permute.xlu0 %1885 }
 0x70f   : > { %v1769_v17 = vld [vmem:[#allocation4 + $0x8] sm:$0xff]  ;;  %v1796_v5 = vpop.permute.xlu1 %1795 }
 0x710   : > { %1766 = vst.msk [vmem:[#allocation4 + $0x18] sm:$0xff] %vm297_vm1, %v1761_v55  ;;  %v1809_v52 = vmul.f32 %v1791_v7, %v1769_v17 }
 0x711   : > { %v1722_v49 = vld [vmem:[#allocation4 + $0x20] sm:$0xff] }
 0x712   : > { %1814 = vst.msk [vmem:[#allocation4 + $0x8] sm:$0xff] %vm980_vm11, %v1809_v52  ;;  %v1762_v24 = vmul.f32 %v3329_v12, %v1722_v49  ;;  %v1901_v20 = vpop.permute.xlu0 %1900 }
 0x713   : > { %v1770_v56 = vld [vmem:[#allocation4 + $0x10] sm:$0xff]  ;;  %v1806_v8 = vpop.permute.xlu1 %1805 }
 0x714   : > { %v1810_v60 = vmul.f32 %v1796_v5, %v1770_v56  ;;  %1767 = vst.msk [vmem:[#allocation4 + $0x20] sm:$0xff] %vm297_vm1, %v1762_v24 }
 0x715   : > { %v1818_v30 = vld [vmem:[#allocation4] sm:$0xff] }
 0x716   : > { %v1858_v50 = vmul.f32 %v1836_v27, %v1818_v30  ;;  %1815 = vst.msk [vmem:[#allocation4 + $0x10] sm:$0xff] %vm980_vm11, %v1810_v60 }
 0x717   : > { %v1771_v37 = vld [vmem:[#allocation4 + $0x18] sm:$0xff] }
 0x718   : > { %1863 = vst.msk [vmem:[#allocation4] sm:$0xff] %vm1342_vm12, %v1858_v50  ;;  %v1811_v0 = vmul.f32 %v1801_v29, %v1771_v37  ;;  %v1841_v15 = vpop.permute.xlu1 %1840 }
 0x719   : > { %v1819_v61 = vld [vmem:[#allocation4 + $0x8] sm:$0xff] }
 0x71a   : > { %1816 = vst.msk [vmem:[#allocation4 + $0x18] sm:$0xff] %vm980_vm11, %v1811_v0  ;;  %v1859_v12 = vmul.f32 %v1841_v15, %v1819_v61 }
 0x71b   : > { %v1772_v9 = vld [vmem:[#allocation4 + $0x20] sm:$0xff] }
 0x71c   : > { %v1812_v57 = vmul.f32 %v1806_v8, %v1772_v9  ;;  %1864 = vst.msk [vmem:[#allocation4 + $0x8] sm:$0xff] %vm1342_vm12, %v1859_v12  ;;  %v1846_v54 = vpop.permute.xlu1 %1845 }
 0x71d   : > { %v1820_v2 = vld [vmem:[#allocation4 + $0x10] sm:$0xff] }
 0x71e   : > { %1817 = vst.msk [vmem:[#allocation4 + $0x20] sm:$0xff] %vm980_vm11, %v1812_v57  ;;  %v1860_v45 = vmul.f32 %v1846_v54, %v1820_v2 }
 0x71f   : > { %v1868_v19 = vld [vmem:[#allocation4] sm:$0xff] }
 0x720   : > { %v1908_v25 = vmul.f32 %v1886_v39, %v1868_v19  ;;  %1865 = vst.msk [vmem:[#allocation4 + $0x10] sm:$0xff] %vm1342_vm12, %v1860_v45  ;;  %v1856_v22 = vpop.permute.xlu1 %1855 }
 0x721   : > { %v1821_v34 = vld [vmem:[#allocation4 + $0x18] sm:$0xff] }
 0x722   : > { %1913 = vst.msk [vmem:[#allocation4] sm:$0xff] %vm1704_vm13, %v1908_v25  ;;  %v1861_v51 = vmul.f32 %v1851_v32, %v1821_v34 }
 0x723   : > { %v1869_v26 = vld [vmem:[#allocation4 + $0x8] sm:$0xff] }
 0x724   : > { %1866 = vst.msk [vmem:[#allocation4 + $0x18] sm:$0xff] %vm1342_vm12, %v1861_v51 }
 0x725   : > { %v1822_v21 = vld [vmem:[#allocation4 + $0x20] sm:$0xff]  ;;  %v1891_v59 = vpop.permute.xlu1 %1890 }
 0x726   : > { %v1862_v44 = vmul.f32 %v1856_v22, %v1822_v21  ;;  %v1909_v16 = vmul.f32 %v1891_v59, %v1869_v26 }
 0x727   : > { %v1870_v48 = vld [vmem:[#allocation4 + $0x10] sm:$0xff] }
 0x728   : > { %1867 = vst.msk [vmem:[#allocation4 + $0x20] sm:$0xff] %vm1342_vm12, %v1862_v44 }
 0x729   : > { %1914 = vst.msk [vmem:[#allocation4 + $0x8] sm:$0xff] %vm1704_vm13, %v1909_v16  ;;  %v1918_v1 = vld [vmem:[#allocation4] sm:$0xff]  ;;  %v1896_v62 = vpop.permute.xlu1 %1895 }
 0x72a   : > { %v2103_v4 = vpack.c.bf16 %v1918_v1, %v1918_v1  ;;  %v1910_v23 = vmul.f32 %v1896_v62, %v1870_v48 }
 0x72b   : > { %v1871_v63 = vld [vmem:[#allocation4 + $0x18] sm:$0xff] }
 0x72c   : > { %v1911_v47 = vmul.f32 %v1901_v20, %v1871_v63  ;;  %1945 = vst.msk [vmem:[%s224_s8] sm:$0xf] %vm1944_vm14, %v2103_v4 }
 0x72d   : > { %1915 = vst.msk [vmem:[#allocation4 + $0x10] sm:$0xff] %vm1704_vm13, %v1910_v23  ;;  %v1906_v38 = vpop.permute.xlu1 %1905 }
 0x72e   : > { %1916 = vst.msk [vmem:[#allocation4 + $0x18] sm:$0xff] %vm1704_vm13, %v1911_v47 }
 0x72f   : > { %v1872_v35 = vld [vmem:[#allocation4 + $0x20] sm:$0xff] }
 0x730   : > { %v1919_v3 = vld [vmem:[#allocation4 + $0x8] sm:$0xff]  ;;  %v1912_v14 = vmul.f32 %v1906_v38, %v1872_v35 }
 0x731   : > { %v2104_v11 = vpack.c.bf16 %v1919_v3, %v1919_v3 }
 0x732   : > { %1917 = vst.msk [vmem:[#allocation4 + $0x20] sm:$0xff] %vm1704_vm13, %v1912_v14 }
 0x733   : > { %1946 = vst.msk [vmem:[%s224_s8 + $0x4] sm:$0xf] %vm1944_vm14, %v2104_v11 }
 0x734   : > { %v1920_v10 = vld [vmem:[#allocation4 + $0x10] sm:$0xff] }
 0x735   : > { %v2105_v13 = vpack.c.bf16 %v1920_v10, %v1920_v10  ;;  %v1921_v53 = vld [vmem:[#allocation4 + $0x18] sm:$0xff] }
 0x736   : > { %v2106_v36 = vpack.c.bf16 %v1921_v53, %v1921_v53 }
 0x737   : > { %1947 = vst.msk [vmem:[%s224_s8 + $0x8] sm:$0xf] %vm1944_vm14, %v2105_v13 }
 0x738   : > { %1948 = vst.msk [vmem:[%s224_s8 + $0xc] sm:$0xf] %vm1944_vm14, %v2106_v36 }
 0x739   : > { %v1922_v31 = vld [vmem:[#allocation4 + $0x20] sm:$0xff] }
 0x73a   : > { %v2107_v46 = vpack.c.bf16 %v1922_v31, %v1922_v31 }
 0x73c   : > { %1949 = vst.msk [vmem:[%s224_s8 + $0x10] sm:$0xf] %vm1944_vm14, %v2107_v46 }
 0x73d PF: > { %s12_s11 = sadd.s32 1, %s2491_s11   ;;  %s3403_s9 = smov %s2487_s10 }
 0x73e   : > { %p9_p5 = scmp.ge.s32.totalorder %s12_s11, 4   ;;  %s3404_s10 = smov %s3406_s12 }
 0x740   :  { %11 = sbr.rel (!%p9_p5) target bundleno = 2 (0x2), region = 69 }

// kernel: _lambda_.48
= control target key start
LH: loop header
LB: loop body
LE: loop exit
PB: predicated region body
PF: predicated region fallthrough
CT: control target
= control target key end

     0   :  { %s390_s12 = smov 0   ;;  %s413_s0 = inlined_call_operand.vmem [shape: bf16[4,17,32], index: 0, kind: input, shape index: {}]   ;;  %s414_s1 = inlined_call_operand.vmem [shape: bf16[4,17,32], index: 1, kind: input, shape index: {}]   ;;  %s415_s2 = inlined_call_operand.vmem [shape: f32[4,1,32], index: 2, kind: input, shape index: {}]   ;;  %s416_s3 = inlined_call_operand.vmem [shape: bf16[4,17,32], index: 3, kind: output, shape index: {}]  }
   0x1 LB: > { %s328_s13 = sadd.s32 4294967295, %s368_s12   ;;  %p332_p0 = scmp.ge.s32.totalorder %s368_s12, 1  ;;  %s368_s12 = sphi %s390_s12, %s13_s12  }
   0x2   : > { %p155_p1 = scmp.lt.s32.totalorder %s368_s12, 5 }
   0x4   : > { %p156_p2 = pnand %p332_p0, %p155_p1 }
   0x5   : > { %p187_p3 = scmp.lt.s32.totalorder (!%p156_p2), %s328_s13, 3  ;;  %vm246_vm0 = vcmask (!%p156_p2), 253952   ;;  %vm247_vm1 = vsmask.f32 (!%p156_p2), 256  ;;  %vm243_vm2 = vcmask (!%p156_p2), 257024  }
   0x6   : > { %159 = sbr.rel (%p156_p2) target bundleno = 29 (0x1d), region = 32  ;;  %vm248_vm3 = vmand (!%p156_p2), %vm246_vm0, %vm247_vm1 }
   0xd   : > { %s418_s13 = smov (!%p187_p3, %s328_s13), 3 }
   0xe   : > { %s353_s14 = smul.u32 12, %s418_s13  ;;  %s199_s17 = scalar_lea.vmem %s415_s2, %s418_s13 }
   0xf   : > { %v336_v0 = vld [vmem:[%s199_s17] ss:$0 sm:$0xff] }
  0x10   : > { %s191_s20 = scalar_lea.vmem %s413_s0, %s353_s14  ;;  %s196_s23 = scalar_lea.vmem %s414_s1, %s353_s14 }
  0x11   : > { %v346_v1 = vld [vmem:[%s191_s20] sm:$0xff]   ;;  %v207_v3 = vld [vmem:[%s191_s20 + $0x8] sm:$0x1]  ;;  %s204_s26 = scalar_lea.vmem %s416_s3, %s353_s14 }
  0x12   : > { %v350_v2 = vld [vmem:[%s196_s23] sm:$0xff]   ;;  %v347_v4 = vunpack.c.l.bf16 %v346_v1  ;;  %v348_v6 = vunpack.c.h.bf16 %v346_v1  ;;  %v213_v8 = vld [vmem:[%s196_s23 + $0x8] sm:$0x1]  ;;  %v210_v9 = vunpack.c.l.bf16 %v207_v3 }
  0x13   : > { %v351_v5 = vunpack.c.l.bf16 %v350_v2  ;;  %v352_v7 = vunpack.c.h.bf16 %v350_v2  ;;  %v216_v10 = vunpack.c.l.bf16 %v213_v8  ;;  %v249_v19 = vld [vmem:[%s204_s26 + $0x8] sm:$0x1] }
  0x15   : > { %v224_v11 = vmul.f32 %v351_v5, %v336_v0  ;;  %v225_v12 = vmul.f32 %v352_v7, %v336_v0  ;;  %v226_v13 = vmul.f32 %v336_v0, %v216_v10 }
  0x17   : > { %v227_v14 = vadd.f32 %v347_v4, %v224_v11  ;;  %v228_v15 = vadd.f32 %v348_v6, %v225_v12  ;;  %v229_v16 = vadd.f32 %v226_v13, %v210_v9 }
  0x19   : > { %v342_v17 = vpack.c.bf16 %v227_v14, %v227_v14  ;;  %v343_v18 = vpack.c.bf16 %v228_v15, %v228_v15  ;;  %v344_v20 = vpack.c.bf16 %v229_v16, %v229_v16 }
  0x1b   : > { %244 = vst.msk [vmem:[%s204_s26] sm:$0xf] %vm243_vm2, %v342_v17  ;;  %245 = vst.msk [vmem:[%s204_s26 + $0x4] sm:$0xf] %vm243_vm2, %v343_v18  ;;  %v250_v21 = vsel %vm248_vm3, %v344_v20, %v249_v19 }
  0x1c   : > { %251 = vst [vmem:[%s204_s26 + $0x8] sm:$0x1] %v250_v21 }
  0x1d PF: > { %s13_s12 = sadd.s32 1, %s368_s12  }
  0x1e   : > { %p10_p4 = scmp.ge.s32.totalorder %s13_s12, 6  }
  0x20   :  { %12 = sbr.rel (!%p10_p4) target bundleno = 1 (0x1), region = 68 }

// kernel: _lambda_.59
= control target key start
LH: loop header
LB: loop body
LE: loop exit
PB: predicated region body
PF: predicated region fallthrough
CT: control target
= control target key end

     0   :  { %s396_s12 = smov 0   ;;  %s432_s0 = inlined_call_operand.vmem [shape: bf16[4,16,32], index: 0, kind: input, shape index: {}]   ;;  %s433_s1 = inlined_call_operand.vmem [shape: f32[4,1,32], index: 1, kind: input, shape index: {}]   ;;  %s434_s2 = inlined_call_operand.vmem [shape: f32[4,1,32], index: 2, kind: input, shape index: {}]   ;;  %s435_s3 = inlined_call_operand.vmem [shape: bf16[4,16,32], index: 3, kind: output, shape index: {}]  }
   0x1 LB: > { %s334_s13 = sadd.s32 4294967295, %s374_s12   ;;  %p338_p0 = scmp.ge.s32.totalorder %s374_s12, 1  ;;  %s374_s12 = sphi %s396_s12, %s13_s12  }
   0x2   : > { %p153_p1 = scmp.lt.s32.totalorder %s374_s12, 5 }
   0x4   : > { %p154_p2 = pnand %p338_p0, %p153_p1 }
   0x5   : > { %p183_p3 = scmp.lt.s32.totalorder (!%p154_p2), %s334_s13, 3  ;;  %vm203_vm0 = vcmask (!%p154_p2), 261120   ;;  %v235_v17 = vlaneseq (!%p154_p2)  ;;  %vm258_vm1 = vcmask (!%p154_p2), 257024  }
   0x6   : > { %157 = sbr.rel (%p154_p2) target bundleno = 339 (0x153), region = 32 }
   0x7   : > { %v236_v21 = vshrl.u32 (!%p154_p2), %v235_v17, 7 }
   0x9   : > { %v237_v25 = vsub.s32 (!%p154_p2), 0, %v236_v21 }
   0xd   : > { %s437_s13 = smov (!%p183_p3, %s334_s13), 3 }
   0xe   : > { %s348_s14 = sshll.u32 %s437_s13, 3  ;;  %s193_s20 = scalar_lea.vmem %s434_s2, %s437_s13 }
   0xf   : > { %s187_s17 = scalar_lea.vmem %s432_s0, %s348_s14  ;;  %v232_v22 = vld [vmem:[%s193_s20] sm:$0x1]  ;;  %s190_s23 = scalar_lea.vmem %s433_s1, %s437_s13 }
  0x10   : > { %v353_v0 = vld [vmem:[%s187_s17] sm:$0xff]   ;;  %v233_v24 = vadd.f32 1.0, %v232_v22  ;;  %s198_s26 = scalar_lea.vmem %s435_s3, %s348_s14 }
  0x11   : > { %v354_v1 = vunpack.c.l.bf16 %v353_v0  ;;  %v355_v2 = vunpack.c.h.bf16 %v353_v0  ;;  %v343_v29 = vld [vmem:[%s190_s23] ss:$0 sm:$0xff] }
  0x12   : > { %v238_v26 = vrot.slane %v233_v24, %v237_v25 }
  0x13   : > { %v204_v3 = vsel %vm203_vm0, %v354_v1, 0.0  ;;  %v207_v4 = vsel %vm203_vm0, %v355_v2, 0.0 }
  0x14   : > { %205 = vadd.xlane.f32.xlu0 %v204_v3 }
  0x18   : > { %208 = vadd.xlane.f32.xlu0 %v207_v4 }
  0xa1   : > { %v206_v5 = vpop.xlane.xlu0 %205 }
  0xa2   : > { %v211_v6 = vmul.f32 0.03125, %v206_v5 }
  0xa4   : > { %v213_v7 = vsub.f32 %v354_v1, %v211_v6 }
  0xa5   : > { %v209_v8 = vpop.xlane.xlu0 %208 }
  0xa6   : > { %v212_v9 = vmul.f32 0.03125, %v209_v8  ;;  %v215_v10 = vmul.f32 %v213_v7, %v213_v7 }
  0xa8   : > { %v214_v11 = vsub.f32 %v355_v2, %v212_v9  ;;  %v217_v12 = vsel %vm203_vm0, %v215_v10, 0.0 }
  0xa9   : > { %218 = vadd.xlane.f32.xlu1 %v217_v12 }
  0xaa   : > { %v216_v13 = vmul.f32 %v214_v11, %v214_v11 }
  0xac   : > { %v220_v14 = vsel %vm203_vm0, %v216_v13, 0.0 }
  0xad   : > { %221 = vadd.xlane.f32.xlu1 %v220_v14 }
 0x136   : > { %v219_v15 = vpop.xlane.xlu1 %218 }
 0x137   : > { %v223_v16 = vmul.f32 0.03125, %v219_v15 }
 0x139   : > { %v225_v18 = vadd.f32 1e-05, %v223_v16 }
 0x13a   : > { %v222_v19 = vpop.xlane.xlu1 %221 }
 0x13b   : > { %364 = vrsqrt.f32 %v225_v18  ;;  %v224_v20 = vmul.f32 0.03125, %v222_v19 }
 0x13d   : > { %v226_v23 = vadd.f32 1e-05, %v224_v20 }
 0x13f   : > { %366 = vrsqrt.f32 %v226_v23 }
 0x145   : > { %v365_v27 = vpop.eup %364 }
 0x146   : > { %v229_v28 = vmul.f32 %v365_v27, %v213_v7 }
 0x148   : > { %v240_v30 = vmul.f32 %v238_v26, %v229_v28 }
 0x149   : > { %v367_v31 = vpop.eup %366 }
 0x14a   : > { %v248_v32 = vadd.f32 %v343_v29, %v240_v30  ;;  %v230_v33 = vmul.f32 %v367_v31, %v214_v11 }
 0x14c   : > { %v350_v34 = vpack.c.bf16 %v248_v32, %v248_v32  ;;  %v241_v35 = vmul.f32 %v238_v26, %v230_v33 }
 0x14e   : > { %259 = vst.msk [vmem:[%s198_s26] sm:$0xf] %vm258_vm1, %v350_v34  ;;  %v249_v36 = vadd.f32 %v343_v29, %v241_v35 }
 0x150   : > { %v351_v37 = vpack.c.bf16 %v249_v36, %v249_v36 }
 0x152   : > { %260 = vst.msk [vmem:[%s198_s26 + $0x4] sm:$0xf] %vm258_vm1, %v351_v37 }
 0x153 PF: > { %s13_s12 = sadd.s32 1, %s374_s12  }
 0x154   : > { %p10_p4 = scmp.ge.s32.totalorder %s13_s12, 6  }
 0x156   :  { %12 = sbr.rel (!%p10_p4) target bundleno = 1 (0x1), region = 68 }

// kernel: _lambda_.60
= control target key start
LH: loop header
LB: loop body
LE: loop exit
PB: predicated region body
PF: predicated region fallthrough
CT: control target
= control target key end

     0   :  { %vm79_vm0 = vcmask 261120   ;;  %s315_s1 = inlined_call_operand.vmem [shape: bf16[32,128], index: 1, kind: input, shape index: {}]   ;;  %s316_s0 = inlined_call_operand.vmem [shape: bf16[64,32], index: 0, kind: input, shape index: {}]   ;;  %s317_s2 = inlined_call_operand.vmem [shape: f32[1,128], index: 2, kind: input, shape index: {}]   ;;  %s318_s3 = inlined_call_operand.vmem [shape: f32[64,128], index: 3, kind: output, shape index: {}]  }
   0x1   :  { %v244_v0 = vld [vmem:[%s315_s1] sm:$0xff]   ;;  %v245_v1 = vld [vmem:[%s315_s1 + $0x8] sm:$0xff]   ;;  %v247_v3 = vld [vmem:[%s316_s0 + $0x10] sm:$0xff]  }
   0x2   :  { %228 = vmatprep.subr.bf16.mxu0 %v244_v0  ;;  %240 = vmatprep.subr.bf16.mxu1 %v244_v0  ;;  %v246_v2 = vld [vmem:[%s316_s0] sm:$0xff]   ;;  %v248_v4 = vld [vmem:[%s316_s0 + $0x8] sm:$0xff]   ;;  %v249_v5 = vld [vmem:[%s316_s0 + $0x18] sm:$0xff]  }
   0x3   :  { %229 = vmatpush3.bf16.msra.mxu0 %v244_v0  ;;  %242 = vmatpush3.bf16.msra.mxu1 %v244_v0  ;;  %v221_v6 = vld [vmem:[%s317_s2] ss:$0 sm:$0xff] }
   0x4   :  { %230 = vmatprep.subr.bf16.mxu0 %v245_v1  ;;  %241 = vmatprep.subr.bf16.mxu1 %v245_v1 }
   0x5   :  { %232 = vmatprep.mubr.msk.bf16.mxu0 %vm79_vm0, %v246_v2  ;;  %236 = vmatprep.mubr.msk.bf16.mxu1 %vm79_vm0, %v247_v3 }
   0x7   :  { %231 = vmatpush3.bf16.msra.mxu0 %v245_v1  ;;  %243 = vmatpush3.bf16.msra.mxu1 %v245_v1 }
   0xa   :  { %233 = vmatmul.mubr.msk.bf16.vlgmr.msra.gmra.mrb[0].mxu0 %vm79_vm0, %v248_v4  ;;  %237 = vmatmul.mubr.msk.bf16.vlgmr.msra.gmra.mrb[0].mxu1 %vm79_vm0, %v249_v5 }
  0xdd   :  { %v234_v7 = vpop.f32.mrb[0].mxu0  ;;  %v238_v8 = vpop.f32.mrb[0].mxu1 }
  0xde   :  { %v193_v9 = vadd.f32 %v234_v7, %v221_v6  ;;  %v197_v10 = vadd.f32 %v238_v8, %v221_v6  ;;  %v126_v11 = vpop.f32.mrb[1].mxu0  ;;  %v142_v12 = vpop.f32.mrb[1].mxu1 }
  0xdf   :  { %v191_v13 = vadd.f32 %v221_v6, %v126_v11  ;;  %v195_v14 = vadd.f32 %v221_v6, %v142_v12  ;;  %v235_v15 = vpop.f32.mrb[2].mxu0  ;;  %v239_v16 = vpop.f32.mrb[2].mxu1 }
  0xe0   :  { %201 = vst [vmem:[%s318_s3 + $0x10] sm:$0xff] %v193_v9  ;;  %205 = vst [vmem:[%s318_s3 + $0x30] sm:$0xff] %v197_v10  ;;  %v194_v17 = vadd.f32 %v235_v15, %v221_v6  ;;  %v198_v18 = vadd.f32 %v239_v16, %v221_v6  ;;  %v129_v19 = vpop.f32.mrb[3].mxu0  ;;  %v145_v20 = vpop.f32.mrb[3].mxu1 }
  0xe1   :  { %199 = vst [vmem:[%s318_s3] sm:$0xff] %v191_v13  ;;  %203 = vst [vmem:[%s318_s3 + $0x20] sm:$0xff] %v195_v14  ;;  %v192_v21 = vadd.f32 %v221_v6, %v129_v19  ;;  %v196_v22 = vadd.f32 %v221_v6, %v145_v20 }
  0xe2   :  { %202 = vst [vmem:[%s318_s3 + $0x18] sm:$0xff] %v194_v17  ;;  %206 = vst [vmem:[%s318_s3 + $0x38] sm:$0xff] %v198_v18 }
  0xe3   :  { %200 = vst [vmem:[%s318_s3 + $0x8] sm:$0xff] %v192_v21  ;;  %204 = vst [vmem:[%s318_s3 + $0x28] sm:$0xff] %v196_v22 }

// kernel: _lambda_.62
= control target key start
LH: loop header
LB: loop body
LE: loop exit
PB: predicated region body
PF: predicated region fallthrough
CT: control target
= control target key end

     0   :  { %s325_s12 = smov 0   ;;  %s351_s0 = inlined_call_operand.vmem [shape: bf16[4,1,32], index: 0, kind: input, shape index: {}]   ;;  %s352_s1 = inlined_call_operand.vmem [shape: f32[4,1,32], index: 1, kind: input, shape index: {}]   ;;  %s353_s2 = inlined_call_operand.vmem [shape: f32[4,1,32], index: 2, kind: input, shape index: {}]   ;;  %s354_s3 = inlined_call_operand.vmem [shape: bf16[4,1,32], index: 3, kind: output, shape index: {}]  }
   0x1 LB: > { %s280_s13 = sadd.s32 4294967295, %s303_s12   ;;  %p284_p0 = scmp.ge.s32.totalorder %s303_s12, 1  ;;  %s303_s12 = sphi %s325_s12, %s13_s12  }
   0x2   : > { %p151_p1 = scmp.lt.s32.totalorder %s303_s12, 5 }
   0x4   : > { %p152_p2 = pnand %p284_p0, %p151_p1 }
   0x5   : > { %p177_p3 = scmp.lt.s32.totalorder (!%p152_p2), %s280_s13, 3  ;;  %vm191_vm0 = vcmask (!%p152_p2), 253952   ;;  %vm213_vm1 = vsmask.f32 (!%p152_p2), 256 }
   0x6   : > { %155 = sbr.rel (%p152_p2) target bundleno = 335 (0x14f), region = 32  ;;  %vm214_vm2 = vmand (!%p152_p2), %vm191_vm0, %vm213_vm1 }
   0xd   : > { %s356_s13 = smov (!%p177_p3, %s280_s13), 3 }
   0xe   : > { %s179_s16 = scalar_lea.vmem %s351_s0, %s356_s13  ;;  %s185_s19 = scalar_lea.vmem %s353_s2, %s356_s13 }
   0xf   : > { %v189_v0 = vld [vmem:[%s179_s16] sm:$0x1]  ;;  %s182_s22 = scalar_lea.vmem %s352_s1, %s356_s13  ;;  %s188_s25 = scalar_lea.vmem %s354_s3, %s356_s13 }
  0x10   : > { %v190_v1 = vunpack.c.l.bf16 %v189_v0  ;;  %v207_v11 = vld [vmem:[%s185_s19] sm:$0x1] }
  0x11   : > { %v208_v12 = vadd.f32 1.0, %v207_v11  ;;  %v206_v15 = vld [vmem:[%s182_s22] sm:$0x1] }
  0x12   : > { %v192_v2 = vsel %vm191_vm0, %v190_v1, 0.0  ;;  %v215_v18 = vld [vmem:[%s188_s25] sm:$0x1] }
  0x13   : > { %193 = vadd.xlane.f32.xlu0 %v192_v2 }
  0xa0   : > { %v194_v3 = vpop.xlane.xlu0 %193 }
  0xa1   : > { %v196_v4 = vmul.f32 0.03125, %v194_v3 }
  0xa3   : > { %v197_v5 = vsub.f32 %v190_v1, %v196_v4 }
  0xa5   : > { %v198_v6 = vmul.f32 %v197_v5, %v197_v5 }
  0xa7   : > { %v199_v7 = vsel %vm191_vm0, %v198_v6, 0.0 }
  0xa8   : > { %200 = vadd.xlane.f32.xlu0 %v199_v7 }
 0x135   : > { %v201_v8 = vpop.xlane.xlu0 %200 }
 0x136   : > { %v202_v9 = vmul.f32 0.03125, %v201_v8 }
 0x138   : > { %v203_v10 = vadd.f32 1e-05, %v202_v9 }
 0x13a   : > { %295 = vrsqrt.f32 %v203_v10 }
 0x144   : > { %v296_v13 = vpop.eup %295 }
 0x145   : > { %v205_v14 = vmul.f32 %v296_v13, %v197_v5 }
 0x147   : > { %v209_v16 = vmul.f32 %v208_v12, %v205_v14 }
 0x149   : > { %v210_v17 = vadd.f32 %v209_v16, %v206_v15 }
 0x14b   : > { %v211_v19 = vpack.c.bf16 %v210_v17, %v210_v17 }
 0x14d   : > { %v216_v20 = vsel %vm214_vm2, %v211_v19, %v215_v18 }
 0x14e   : > { %217 = vst [vmem:[%s188_s25] sm:$0x1] %v216_v20 }
 0x14f PF: > { %s13_s12 = sadd.s32 1, %s303_s12  }
 0x150   : > { %p10_p4 = scmp.ge.s32.totalorder %s13_s12, 6  }
 0x152   :  { %12 = sbr.rel (!%p10_p4) target bundleno = 1 (0x1), region = 68 }

// kernel: _lambda_.63
= control target key start
LH: loop header
LB: loop body
LE: loop exit
PB: predicated region body
PF: predicated region fallthrough
CT: control target
= control target key end

     0   :  { %v156_v1 = vmov 0.0   ;;  %vm157_vm0 = vmmov 0   ;;  %s203_s0 = inlined_call_operand.vmem [shape: bf16[4,32], index: 0, kind: input, shape index: {}]   ;;  %s204_s1 = inlined_call_operand.vmem [shape: bf16[32,128], index: 1, kind: input, shape index: {}]   ;;  %s205_s2 = inlined_call_operand.vmem [shape: f32[1,128], index: 2, kind: input, shape index: {}]   ;;  %s206_s3 = inlined_call_operand.hbm [shape: f32[4,128], index: 3, kind: output, shape index: {}]  }
   0x1   :  { %v130_v0 = vld [vmem:[%s204_s1] sm:$0xff]   ;;  %119 = vmatprep.subr.bf16.mxu0 %v156_v1  ;;  %20 = vst [vmem:[#allocation2] sm:$0xf] %v156_v1  ;;  %v131_v2 = vld [vmem:[%s204_s1 + $0x8] sm:$0xff]   ;;  %123 = vmatprep.mubr.msk.bf16.mxu0 %vm157_vm0, %v156_v1 }
   0x2   :  { %120 = vmatpush3.bf16.msra.mxu0 %v130_v0 }
   0x3   :  { %8 = vsyncpa [#allocation4], 0  ;;  %121 = vmatprep.subr.bf16.mxu0 %v156_v1  ;;  %v22_v3 = vld [vmem:[%s203_s0] sm:$0x3]  ;;  %vm39_vm1 = vcmask 261120   ;;  %s158_s19 = smov [#allocation3]  }
   0x4   :  { %v115_v10 = vld [vmem:[%s205_s2] ss:$0 sm:$0xff]  ;;  %s104_s20 = sshll.u32 %s158_s19, 4  ;;  %s105_s20 = int_to_ptr.vmem [resolvable:$true] %s104_s20 }
   0x5   :  { %s132_s0 = scalar_lea.vmem %s105_s20, 64  ;;  %p137_p1 = scmp.lt.s32.totalorder %s105_s20, %s105_s20 }
   0x6   :  { %122 = vmatpush3.bf16.msra.mxu0 %v131_v2  ;;  %p133_p0 = scmp.ne.s32.totalorder %s105_s20, %s132_s0  ;;  %p138_p2 = scmp.lt.s32.totalorder %s132_s0, %s132_s0 }
   0x8   :  { %v21_v4 = vld [vmem:[#allocation2] sm:$0xf]  ;;  %p139_p3 = por %p138_p2, %p137_p1 }
   0x9   :  { %124 = vmatmul.mubr.msk.bf16.vlgmr.msra.gmra.mrb[0].mxu0 %vm39_vm1, %v22_v3 }
   0xa   :  { %p140_p4 = pnand %p139_p3, %p133_p0 }
  0xdc   :  { %v77_v5 = vpop.f32.mrb[0].mxu0 }
  0xdd   :  { %v83_v6 = vadd.f32 %v77_v5, %v21_v4  ;;  %v125_v7 = vpop.f32.mrb[1].mxu0 }
  0xde   :  { %v80_v8 = vpop.f32.mrb[2].mxu0 }
  0xdf   :  { %84 = vst [vmem:[#allocation2] sm:$0xf] %v83_v6  ;;  %v126_v9 = vpop.f32.mrb[3].mxu0 }
  0xe6   :  { %v88_v11 = vld [vmem:[#allocation2] sm:$0xf] }
  0xe7   :  { %v96_v12 = vadd.f32 %v115_v10, %v88_v11 }
  0xe9   :  { %97 = vst [vmem:[#allocation3] sm:$0xf] %v96_v12 }
  0xea   :  { %143 = shalt.err (!%p140_p4)
}
  0xeb   :  { %s144_s23 = scalar_lea.hbm %s206_s3, 64 }
  0xec   :  { %p145_p5 = scmp.ne.s32.totalorder %s206_s3, %s144_s23  ;;  %p148_p6 = scmp.lt.u32.totalorder %s144_s23, %s206_s3 }
  0xee   :  { %p150_p7 = pnand %p148_p6, %p145_p5 }
  0xf0   :  { %153 = shalt.err (!%p150_p7)
}
  0xf1   :  { %107 = dma.vmem_to_hbm [thread:$0]  %s105_s20, 64, %s206_s3, [#allocation4]  }
  0xf2   :  { %154 = dma.done.wait [#allocation4], 64  }
  0xf3   :  { %155 = vsyncadd [#allocation4], 4294967232 }
  0xf4   :  { %111 = vsyncpa [#allocation4], 1 }

</bundles_post_ra>
